<compile_context>
chip_gen: v5e
topology: v5e:2x2
jax: 0.10.0
libtpu: 0.0.40
codegen_flags: <defaults>
</compile_context>

<pallas_src>
import jax
import jax.numpy as jnp
from jax import lax
from jax.experimental import pallas as pl

# ----------------------------- configuration --------------------------------
B = 2
NUM_ORIGINAL_JOINTS = 17
NUM_JOINTS = 8                      # keypoint_transform_config['num_joints']
IN_FEATURE_SIZE = (32, 24, 3)       # (H, W, C) of the "image" passed to __init__
FEAT_H, FEAT_W = IN_FEATURE_SIZE[0] // 4, IN_FEATURE_SIZE[1] // 4   # ViT feature map
FEAT_C = 32                         # ViT in_feature_size channel (per __init__)
PATCH = (4, 3)
EMBED = 32
DEPTH = 2
NUM_HEADS = 4
HEAD_DIM = EMBED // NUM_HEADS       # == 8 -> per-head sublane slices are tile aligned
MLP_RATIO = 3
MLP_HIDDEN = EMBED * MLP_RATIO
HEATMAP = (16, 12)
HEATMAP_DIM = HEATMAP[0] * HEATMAP[1]
HIDDEN_HEATMAP_DIM = HEATMAP_DIM // 8
GRID_H, GRID_W = FEAT_H // PATCH[0], FEAT_W // PATCH[1]
NUM_PATCHES = GRID_H * GRID_W
PATCH_DIM = PATCH[0] * PATCH[1] * FEAT_C
SEQ = NUM_JOINTS + NUM_PATCHES
S_TOT = B * SEQ                     # batch folded along sublanes
TWO_LAYER_HEAD = EMBED <= HIDDEN_HEATMAP_DIM * 0.5   # same branch condition as __init__

W32_W = EMBED
WIDE_W = max(MLP_HIDDEN, HEATMAP_DIM, HIDDEN_HEATMAP_DIM, EMBED)


# ---------------------- packed-slab layout (static) --------------------------
def _build_layout():
    w32_off, r32 = {}, 0

    def a32(name, rows):
        nonlocal r32
        w32_off[name] = r32
        r32 += rows

    a32("patch_w", PATCH_DIM)
    a32("pos", B * NUM_PATCHES)          # pos embedding, pre-tiled over batch
    a32("tok", B * NUM_JOINTS)           # keypoint tokens, pre-tiled over batch
    for d in range(DEPTH):
        a32(f"qkv_wT{d}", 3 * EMBED)     # transposed qkv weight (feature-major)
        a32(f"qkv_bT{d}", 3 * EMBED)     # qkv bias as a column (lane 0)
        a32(f"proj_w{d}", EMBED)
        a32(f"fc2_w{d}", MLP_HIDDEN)
    if TWO_LAYER_HEAD:
        a32("head_w1", EMBED)

    wide_off, vec_row, rw = {}, {}, 0

    def awide(name, rows):
        nonlocal rw
        wide_off[name] = rw
        rw += rows

    def avec(name):
        nonlocal rw
        vec_row[name] = rw
        rw += 1

    for d in range(DEPTH):
        awide(f"fc1_w{d}", EMBED)
    if TWO_LAYER_HEAD:
        awide("head_w2", HIDDEN_HEATMAP_DIM)
    else:
        awide("head_w", EMBED)
    avec("patch_b")
    for d in range(DEPTH):
        for nm in ("ln1_g", "ln1_b", "proj_b", "ln2_g", "ln2_b", "fc1_b", "fc2_b"):
            avec(f"{nm}{d}")
    avec("lnf_g")
    avec("lnf_b")
    if TWO_LAYER_HEAD:
        for nm in ("hln1_g", "hln1_b", "hb1", "hln2_g", "hln2_b", "hb2"):
            avec(nm)
    else:
        for nm in ("hln_g", "hln_b", "hb"):
            avec(nm)

    pad8 = lambda n: ((n + 7) // 8) * 8
    return w32_off, pad8(r32), wide_off, vec_row, pad8(rw)


W32_OFF, W32_ROWS, WIDE_OFF, VEC_ROW, WIDE_ROWS = _build_layout()


# ------------------------- in-kernel helper math ------------------------------
def _layer_norm(x, g, b, eps):
    mean = jnp.mean(x, axis=-1, keepdims=True)
    cen = x - mean
    var = jnp.mean(cen * cen, axis=-1, keepdims=True)
    return cen * lax.rsqrt(var + jnp.float32(eps)) * g + b


def _gelu(x):
    # tanh-approx GELU (safe Mosaic lowering: tanh goes to the EUP).
    # TODO(synk): PyTorch nn.GELU default is the exact erf formulation (~1e-3 deviation).
    c = jnp.float32(0.7978845608028654)
    return 0.5 * x * (1.0 + jnp.tanh(c * (x + 0.044715 * x * x * x)))


# ------------------------------ fused kernel ----------------------------------
def _fused_kernel(xp_ref, w32_ref, wide_ref, out_ref):
    f32 = jnp.float32

    def m32(name, rows, cols=W32_W):
        r = W32_OFF[name]
        return w32_ref[r:r + rows, 0:cols]

    def mwide(name, rows, cols):
        r = WIDE_OFF[name]
        return wide_ref[r:r + rows, 0:cols]

    def vec(name, cols=EMBED):
        r = VEC_ROW[name]
        return wide_ref[r:r + 1, 0:cols]                     # (1, cols) row vector

    # --- patch embedding (+ positional embedding on the patch tokens) ---
    patches = jnp.dot(xp_ref[...], m32("patch_w", PATCH_DIM),
                      preferred_element_type=f32)
    patches = patches + vec("patch_b") + m32("pos", B * NUM_PATCHES)
    # TODO(synk): pos embedding is added to patch tokens only (TokenPose convention);
    # the VisionTransformer source is not provided, some variants add it to the full seq.

    # --- residual stream, batch folded along sublanes (tile-aligned boundaries):
    #     rows [0, B*NP)            = patches, batch-major
    #     rows [B*NP, B*NP + B*J)   = keypoint tokens, batch-major
    seq = jnp.concatenate([patches, m32("tok", B * NUM_JOINTS)], axis=0)   # (S_TOT, E)

    # --- block-diagonal mask so tokens never attend across batch elements ---
    row = lax.broadcasted_iota(jnp.int32, (S_TOT, S_TOT), 0)
    col = lax.broadcasted_iota(jnp.int32, (S_TOT, S_TOT), 1)

    def _batch_id(idx):
        pid = jnp.zeros_like(idx)
        tid = jnp.zeros_like(idx)
        for bb in range(1, B):
            pid = pid + (idx >= bb * NUM_PATCHES).astype(jnp.int32)
            tid = tid + (idx >= B * NUM_PATCHES + bb * NUM_JOINTS).astype(jnp.int32)
        return jnp.where(idx < B * NUM_PATCHES, pid, tid)

    same_batch = _batch_id(row) == _batch_id(col)
    neg_inf = f32(-1e30)

    # --- transformer blocks (pre-norm, LayerNorm eps=1e-6) ---
    for d in range(DEPTH):
        # ----- attention sub-block -----
        h = _layer_norm(seq, vec(f"ln1_g{d}"), vec(f"ln1_b{d}"), 1e-6)
        # qkvT[c, s] = sum_e Wqkv[e, c] * h[s, e]   -> (3E, S), feature-major, so every
        # per-head q/k/v slice below is a tile-aligned *sublane* slice (HEAD_DIM == 8).
        qkvT = lax.dot_general(m32(f"qkv_wT{d}", 3 * EMBED), h,
                               (((1,), (1,)), ((), ())),
                               preferred_element_type=f32)
        qkvT = qkvT + m32(f"qkv_bT{d}", 3 * EMBED, 1)        # bias as a column vector

        o_t = []
        for hh in range(NUM_HEADS):
            r0 = hh * HEAD_DIM
            qT = qkvT[r0:r0 + HEAD_DIM, :]                              # (Dh, S)
            kT = qkvT[EMBED + r0:EMBED + r0 + HEAD_DIM, :]              # (Dh, S)
            vT = qkvT[2 * EMBED + r0:2 * EMBED + r0 + HEAD_DIM, :]      # (Dh, S)
            # s[i, j] = sum_d q[i, d] * k[j, d]   (scale already folded into q weights)
            s = lax.dot_general(qT, kT, (((0,), (0,)), ((), ())),
                                preferred_element_type=f32)             # (S, S)
            s = jnp.where(same_batch, s, neg_inf)
            s = s - jnp.max(s, axis=-1, keepdims=True)
            p = jnp.exp(s)
            p = p * pl.reciprocal(jnp.sum(p, axis=-1, keepdims=True), approx=True)
            # oT_h[d, i] = sum_j v[j, d] * p[i, j]
            o_t.append(lax.dot_general(vT, p, (((1,), (1,)), ((), ())),
                                       preferred_element_type=f32))     # (Dh, S)
        oT = jnp.concatenate(o_t, axis=0)                    # (E, S), tile-aligned concat
        # single projection matmul per layer: attn[i, e] = sum_f o[i, f] * Wproj[f, e]
        attn = lax.dot_general(oT, m32(f"proj_w{d}", EMBED),
                               (((0,), (0,)), ((), ())),
                               preferred_element_type=f32)              # (S, E)
        seq = seq + attn + vec(f"proj_b{d}")

        # ----- MLP sub-block -----
        h = _layer_norm(seq, vec(f"ln2_g{d}"), vec(f"ln2_b{d}"), 1e-6)
        h = _gelu(jnp.dot(h, mwide(f"fc1_w{d}", EMBED, MLP_HIDDEN),
                          preferred_element_type=f32) + vec(f"fc1_b{d}", MLP_HIDDEN))
        h = jnp.dot(h, m32(f"fc2_w{d}", MLP_HIDDEN),
                    preferred_element_type=f32) + vec(f"fc2_b{d}")
        seq = seq + h

    # --- keypoint-token slice (tile-aligned sublane slice), final LayerNorm ---
    toks = seq[B * NUM_PATCHES:B * NUM_PATCHES + B * NUM_JOINTS, :]      # (B*J, E)
    toks = _layer_norm(toks, vec("lnf_g"), vec("lnf_b"), 1e-6)

    # --- mlp_head (nn.LayerNorm default eps=1e-5) ---
    if TWO_LAYER_HEAD:
        hm = _layer_norm(toks, vec("hln1_g"), vec("hln1_b"), 1e-5)
        hm = jnp.dot(hm, m32("head_w1", EMBED, HIDDEN_HEATMAP_DIM),
                     preferred_element_type=f32) + vec("hb1", HIDDEN_HEATMAP_DIM)
        hm = _layer_norm(hm, vec("hln2_g", HIDDEN_HEATMAP_DIM),
                         vec("hln2_b", HIDDEN_HEATMAP_DIM), 1e-5)
        hm = jnp.dot(hm, mwide("head_w2", HIDDEN_HEATMAP_DIM, HEATMAP_DIM),
                     preferred_element_type=f32) + vec("hb2", HEATMAP_DIM)
    else:
        hm = _layer_norm(toks, vec("hln_g"), vec("hln_b"), 1e-5)
        hm = jnp.dot(hm, mwide("head_w", EMBED, HEATMAP_DIM),
                     preferred_element_type=f32) + vec("hb", HEATMAP_DIM)

    out_ref[...] = hm.astype(out_ref.dtype)                  # (B*J, HEATMAP_DIM)


# ------------------------------ parameters -----------------------------------
def init_params(key):
    ks = iter(jax.random.split(key, 64))

    def dense(fan_in, fan_out):
        w = jax.random.normal(next(ks), (fan_in, fan_out), jnp.float32) * 0.02
        b = jnp.zeros((1, fan_out), jnp.float32)
        return w, b

    def ln(dim):
        return jnp.ones((1, dim), jnp.float32), jnp.zeros((1, dim), jnp.float32)

    p = {}
    p["patch_w"], p["patch_b"] = dense(PATCH_DIM, EMBED)
    p["pos_emb"] = jax.random.normal(next(ks), (NUM_PATCHES, EMBED), jnp.float32) * 0.02
    p["kp_tokens"] = jax.random.normal(next(ks), (NUM_JOINTS, EMBED), jnp.float32) * 0.02

    # token-embedding parameters (get_token_embedding shapes); unused on the default
    # keypoint_vector=None / thickness_vector=None forward path.
    # TODO(synk): x_additional / token_embedding path not implemented (VisionTransformer
    # source not provided; only the default None path is exercised).
    half = int(round(EMBED * 0.5))
    p["tok_emb_kp_w"], p["tok_emb_kp_b"] = dense(NUM_ORIGINAL_JOINTS, half)
    p["tok_emb_th_w"], p["tok_emb_th_b"] = dense(3, EMBED - half)

    def stacked(make):
        pairs = [make() for _ in range(DEPTH)]
        return (jnp.stack([w for w, _ in pairs]), jnp.stack([b for _, b in pairs]))

    p["ln1_g"], p["ln1_b"] = stacked(lambda: ln(EMBED))
    p["qkv_w"], p["qkv_b"] = stacked(lambda: dense(EMBED, 3 * EMBED))
    p["proj_w"], p["proj_b"] = stacked(lambda: dense(EMBED, EMBED))
    p["ln2_g"], p["ln2_b"] = stacked(lambda: ln(EMBED))
    p["fc1_w"], p["fc1_b"] = stacked(lambda: dense(EMBED, MLP_HIDDEN))
    p["fc2_w"], p["fc2_b"] = stacked(lambda: dense(MLP_HIDDEN, EMBED))

    p["lnf_g"], p["lnf_b"] = ln(EMBED)

    if TWO_LAYER_HEAD:
        p["head_ln1_g"], p["head_ln1_b"] = ln(EMBED)
        p["head_w1"], p["head_b1"] = dense(EMBED, HIDDEN_HEATMAP_DIM)
        p["head_ln2_g"], p["head_ln2_b"] = ln(HIDDEN_HEATMAP_DIM)
        p["head_w2"], p["head_b2"] = dense(HIDDEN_HEATMAP_DIM, HEATMAP_DIM)
    else:
        p["head_ln_g"], p["head_ln_b"] = ln(EMBED)
        p["head_w"], p["head_b"] = dense(EMBED, HEATMAP_DIM)
    return p


def pack_params(p):
    """One-time packing of all weights into two row-stacked f32 slabs."""
    w32 = jnp.zeros((W32_ROWS, W32_W), jnp.float32)
    wide = jnp.zeros((WIDE_ROWS, WIDE_W), jnp.float32)

    def put(buf, off_map, name, arr):
        arr = jnp.asarray(arr, jnp.float32)
        if arr.ndim == 1:
            arr = arr.reshape(1, -1)
        r = off_map[name]
        return buf.at[r:r + arr.shape[0], 0:arr.shape[1]].set(arr)

    w32 = put(w32, W32_OFF, "patch_w", p["patch_w"])
    w32 = put(w32, W32_OFF, "pos", jnp.tile(p["pos_emb"], (B, 1)))
    w32 = put(w32, W32_OFF, "tok", jnp.tile(p["kp_tokens"], (B, 1)))

    # scale_head=True: fold head_dim**-0.5 into the q part of qkv (one-time transform).
    col_scale = jnp.concatenate([jnp.full((EMBED,), HEAD_DIM ** -0.5, jnp.float32),
                                 jnp.ones((2 * EMBED,), jnp.float32)])
    for d in range(DEPTH):
        qkv_w = p["qkv_w"][d] * col_scale[None, :]             # (E, 3E)
        qkv_b = p["qkv_b"][d].reshape(-1) * col_scale          # (3E,)
        w32 = put(w32, W32_OFF, f"qkv_wT{d}", qkv_w.T)         # feature-major
        w32 = put(w32, W32_OFF, f"qkv_bT{d}", qkv_b.reshape(-1, 1))
        w32 = put(w32, W32_OFF, f"proj_w{d}", p["proj_w"][d])
        w32 = put(w32, W32_OFF, f"fc2_w{d}", p["fc2_w"][d])
        wide = put(wide, WIDE_OFF, f"fc1_w{d}", p["fc1_w"][d])
        wide = put(wide, VEC_ROW, f"ln1_g{d}", p["ln1_g"][d])
        wide = put(wide, VEC_ROW, f"ln1_b{d}", p["ln1_b"][d])
        wide = put(wide, VEC_ROW, f"proj_b{d}", p["proj_b"][d])
        wide = put(wide, VEC_ROW, f"ln2_g{d}", p["ln2_g"][d])
        wide = put(wide, VEC_ROW, f"ln2_b{d}", p["ln2_b"][d])
        wide = put(wide, VEC_ROW, f"fc1_b{d}", p["fc1_b"][d])
        wide = put(wide, VEC_ROW, f"fc2_b{d}", p["fc2_b"][d])

    wide = put(wide, VEC_ROW, "patch_b", p["patch_b"])
    wide = put(wide, VEC_ROW, "lnf_g", p["lnf_g"])
    wide = put(wide, VEC_ROW, "lnf_b", p["lnf_b"])
    if TWO_LAYER_HEAD:
        w32 = put(w32, W32_OFF, "head_w1", p["head_w1"])
        wide = put(wide, WIDE_OFF, "head_w2", p["head_w2"])
        wide = put(wide, VEC_ROW, "hln1_g", p["head_ln1_g"])
        wide = put(wide, VEC_ROW, "hln1_b", p["head_ln1_b"])
        wide = put(wide, VEC_ROW, "hb1", p["head_b1"])
        wide = put(wide, VEC_ROW, "hln2_g", p["head_ln2_g"])
        wide = put(wide, VEC_ROW, "hln2_b", p["head_ln2_b"])
        wide = put(wide, VEC_ROW, "hb2", p["head_b2"])
    else:
        wide = put(wide, WIDE_OFF, "head_w", p["head_w"])
        wide = put(wide, VEC_ROW, "hln_g", p["head_ln_g"])
        wide = put(wide, VEC_ROW, "hln_b", p["head_ln_b"])
        wide = put(wide, VEC_ROW, "hb", p["head_b"])
    return w32, wide


# ------------------------------ forward pass ----------------------------------
def token_pose_forward(w32, wide, x):
    """x: (B, C, H, W) NCHW feature map (cnn is nn.Identity)."""
    b, c, hgt, wdt = x.shape
    assert (b, c, hgt, wdt) == (B, FEAT_C, FEAT_H, FEAT_W), x.shape
    p1, p2 = PATCH

    # self.cnn == nn.Identity()
    # einops 'b c (h p1) (w p2) -> b (h w) (p1 p2 c)' done once, wrapper-side; the
    # batch is folded onto the sublane axis (batch-major patch rows).
    xp = x.reshape(b, c, GRID_H, p1, GRID_W, p2)
    xp = jnp.transpose(xp, (0, 2, 4, 3, 5, 1))
    xp = xp.reshape(b * NUM_PATCHES, PATCH_DIM).astype(jnp.float32)

    hm = pl.pallas_call(
        _fused_kernel,
        out_shape=jax.ShapeDtypeStruct((B * NUM_JOINTS, HEATMAP_DIM), jnp.float32),
        # grid-less, spec-less call: every operand is whole-array VMEM resident for the
        # single invocation (one DMA per input, no double buffering / pipeline logic).
    )(xp, w32, wide)

    # einops: 'b c (p1 p2) -> b c p1 p2'
    return hm.reshape(b, NUM_JOINTS, HEATMAP[0], HEATMAP[1])


# ---------------------------------- main --------------------------------------
if __name__ == "__main__":
    # cnn is Identity and the ViT expects (H//4, W//4, 32) features -> NCHW (B, 32, 8, 6)
    x = jax.random.normal(jax.random.PRNGKey(0), (B, FEAT_C, FEAT_H, FEAT_W), jnp.float32)

    params = init_params(jax.random.PRNGKey(1))
    w32_slab, wide_slab = pack_params(params)     # one-time weight packing (outside jit)

    fwd = jax.jit(token_pose_forward)
    out = fwd(w32_slab, wide_slab, x)
    out = jax.block_until_ready(out)

    assert out.shape == (B, NUM_JOINTS, HEATMAP[0], HEATMAP[1]), out.shape
    assert out.dtype == jnp.float32
    assert bool(jnp.all(jnp.isfinite(out)))
    print("KERNEL_OK")
</pallas_src>

<mosaic_0001>
module attributes {stable_mosaic.version = 11 : i64} {
  func.func @_fused_kernel(%arg0: memref<8x384xf32, #tpu.memory_space<vmem>>, %arg1: memref<1048x32xf32, #tpu.memory_space<vmem>>, %arg2: memref<120x192xf32, #tpu.memory_space<vmem>>, %arg3: memref<16x192xf32, #tpu.memory_space<vmem>>) attributes {dimension_semantics = [], scalar_prefetch = 0 : i64, scratch_operands = 0 : i64, tpu.core_type = #tpu.core_type<tc>} {
    %c0 = arith.constant 0 : index
    %c0_0 = arith.constant 0 : index
    %0 = vector.load %arg0[%c0, %c0_0] : memref<8x384xf32, #tpu.memory_space<vmem>>, vector<8x384xf32>
    %c0_1 = arith.constant 0 : index
    %c0_2 = arith.constant 0 : index
    %1 = vector.load %arg1[%c0_1, %c0_2] : memref<1048x32xf32, #tpu.memory_space<vmem>>, vector<384x32xf32>
    %cst = arith.constant dense<0.000000e+00> : vector<8x32xf32>
    %2 = tpu.matmul %0, %1, %cst {dimension_numbers = #tpu.dot_dimension_numbers<[1], [0], [0], [1], [0, 0, 1, 1], [], []>} : vector<8x384xf32>, vector<384x32xf32>, vector<8x32xf32> -> vector<8x32xf32>
    %c96 = arith.constant 96 : index
    %c0_3 = arith.constant 0 : index
    %3 = vector.load %arg2[%c96, %c0_3] : memref<120x192xf32, #tpu.memory_space<vmem>>, vector<1x32xf32>
    %4 = vector.broadcast %3 : vector<1x32xf32> to vector<8x32xf32>
    %5 = arith.addf %2, %4 : vector<8x32xf32>
    %c384 = arith.constant 384 : index
    %c0_4 = arith.constant 0 : index
    %6 = vector.load %arg1[%c384, %c0_4] : memref<1048x32xf32, #tpu.memory_space<vmem>>, vector<8x32xf32>
    %7 = arith.addf %5, %6 : vector<8x32xf32>
    %c392 = arith.constant 392 : index
    %c0_5 = arith.constant 0 : index
    %8 = vector.load %arg1[%c392, %c0_5] : memref<1048x32xf32, #tpu.memory_space<vmem>>, vector<16x32xf32>
    %9 = tpu.concatenate %7, %8 in 0 : vector<8x32xf32>, vector<16x32xf32> -> vector<24x32xf32>
    %10 = tpu.iota {dimensions = array<i32: 0>} : vector<24x24xi32>
    %11 = tpu.iota {dimensions = array<i32: 1>} : vector<24x24xi32>
    %c0_i32 = arith.constant 0 : i32
    %12 = vector.broadcast %c0_i32 : i32 to vector<24x24xi32>
    %c0_i32_6 = arith.constant 0 : i32
    %13 = vector.broadcast %c0_i32_6 : i32 to vector<24x24xi32>
    %c4_i32 = arith.constant 4 : i32
    %14 = vector.broadcast %c4_i32 : i32 to vector<24x24xi32>
    %15 = arith.cmpi sge, %10, %14 : vector<24x24xi32>
    %16 = arith.extui %15 : vector<24x24xi1> to vector<24x24xi32>
    %17 = arith.addi %12, %16 : vector<24x24xi32>
    %c16_i32 = arith.constant 16 : i32
    %18 = vector.broadcast %c16_i32 : i32 to vector<24x24xi32>
    %19 = arith.cmpi sge, %10, %18 : vector<24x24xi32>
    %20 = arith.extui %19 : vector<24x24xi1> to vector<24x24xi32>
    %21 = arith.addi %13, %20 : vector<24x24xi32>
    %c8_i32 = arith.constant 8 : i32
    %22 = vector.broadcast %c8_i32 : i32 to vector<24x24xi32>
    %23 = arith.cmpi slt, %10, %22 : vector<24x24xi32>
    %24 = arith.select %23, %17, %21 : vector<24x24xi1>, vector<24x24xi32>
    %c0_i32_7 = arith.constant 0 : i32
    %25 = vector.broadcast %c0_i32_7 : i32 to vector<24x24xi32>
    %c0_i32_8 = arith.constant 0 : i32
    %26 = vector.broadcast %c0_i32_8 : i32 to vector<24x24xi32>
    %c4_i32_9 = arith.constant 4 : i32
    %27 = vector.broadcast %c4_i32_9 : i32 to vector<24x24xi32>
    %28 = arith.cmpi sge, %11, %27 : vector<24x24xi32>
    %29 = arith.extui %28 : vector<24x24xi1> to vector<24x24xi32>
    %30 = arith.addi %25, %29 : vector<24x24xi32>
    %c16_i32_10 = arith.constant 16 : i32
    %31 = vector.broadcast %c16_i32_10 : i32 to vector<24x24xi32>
    %32 = arith.cmpi sge, %11, %31 : vector<24x24xi32>
    %33 = arith.extui %32 : vector<24x24xi1> to vector<24x24xi32>
    %34 = arith.addi %26, %33 : vector<24x24xi32>
    %c8_i32_11 = arith.constant 8 : i32
    %35 = vector.broadcast %c8_i32_11 : i32 to vector<24x24xi32>
    %36 = arith.cmpi slt, %11, %35 : vector<24x24xi32>
    %37 = arith.select %36, %30, %34 : vector<24x24xi1>, vector<24x24xi32>
    %38 = arith.cmpi eq, %24, %37 : vector<24x24xi32>
    %c97 = arith.constant 97 : index
    %c0_12 = arith.constant 0 : index
    %39 = vector.load %arg2[%c97, %c0_12] : memref<120x192xf32, #tpu.memory_space<vmem>>, vector<1x32xf32>
    %c98 = arith.constant 98 : index
    %c0_13 = arith.constant 0 : index
    %40 = vector.load %arg2[%c98, %c0_13] : memref<120x192xf32, #tpu.memory_space<vmem>>, vector<1x32xf32>
    %cst_14 = arith.constant dense<0.000000e+00> : vector<24xf32>
    %41 = vector.multi_reduction <add>, %9, %cst_14 [1] : vector<24x32xf32> to vector<24xf32>
    %42 = vector.shape_cast %41 : vector<24xf32> to vector<24x1xf32>
    %cst_15 = arith.constant 3.200000e+01 : f32
    %43 = vector.broadcast %cst_15 : f32 to vector<24x1xf32>
    %44 = arith.divf %42, %43 : vector<24x1xf32>
    %45 = vector.broadcast %44 : vector<24x1xf32> to vector<24x32xf32>
    %46 = arith.subf %9, %45 : vector<24x32xf32>
    %47 = arith.mulf %46, %46 : vector<24x32xf32>
    %cst_16 = arith.constant dense<0.000000e+00> : vector<24xf32>
    %48 = vector.multi_reduction <add>, %47, %cst_16 [1] : vector<24x32xf32> to vector<24xf32>
    %49 = vector.shape_cast %48 : vector<24xf32> to vector<24x1xf32>
    %cst_17 = arith.constant 3.200000e+01 : f32
    %50 = vector.broadcast %cst_17 : f32 to vector<24x1xf32>
    %51 = arith.divf %49, %50 : vector<24x1xf32>
    %cst_18 = arith.constant 9.99999997E-7 : f32
    %52 = vector.broadcast %cst_18 : f32 to vector<24x1xf32>
    %53 = arith.addf %51, %52 : vector<24x1xf32>
    %54 = math.rsqrt %53 : vector<24x1xf32>
    %55 = vector.broadcast %54 : vector<24x1xf32> to vector<24x32xf32>
    %56 = arith.mulf %46, %55 : vector<24x32xf32>
    %57 = vector.broadcast %39 : vector<1x32xf32> to vector<24x32xf32>
    %58 = arith.mulf %56, %57 : vector<24x32xf32>
    %59 = vector.broadcast %40 : vector<1x32xf32> to vector<24x32xf32>
    %60 = arith.addf %58, %59 : vector<24x32xf32>
    %c408 = arith.constant 408 : index
    %c0_19 = arith.constant 0 : index
    %61 = vector.load %arg1[%c408, %c0_19] : memref<1048x32xf32, #tpu.memory_space<vmem>>, vector<96x32xf32>
    %cst_20 = arith.constant dense<0.000000e+00> : vector<96x24xf32>
    %62 = tpu.matmul %61, %60, %cst_20 {dimension_numbers = #tpu.dot_dimension_numbers<[1], [1], [0], [0], [0, 0, 1, 0], [], []>} : vector<96x32xf32>, vector<24x32xf32>, vector<96x24xf32> -> vector<96x24xf32>
    %c504 = arith.constant 504 : index
    %c0_21 = arith.constant 0 : index
    %63 = vector.load %arg1[%c504, %c0_21] : memref<1048x32xf32, #tpu.memory_space<vmem>>, vector<96x1xf32>
    %64 = vector.broadcast %63 : vector<96x1xf32> to vector<96x24xf32>
    %65 = arith.addf %62, %64 : vector<96x24xf32>
    %66 = vector.extract_strided_slice %65 {offsets = [0, 0], sizes = [8, 24], strides = [1, 1]} : vector<96x24xf32> to vector<8x24xf32>
    %67 = vector.extract_strided_slice %65 {offsets = [32, 0], sizes = [8, 24], strides = [1, 1]} : vector<96x24xf32> to vector<8x24xf32>
    %68 = vector.extract_strided_slice %65 {offsets = [64, 0], sizes = [8, 24], strides = [1, 1]} : vector<96x24xf32> to vector<8x24xf32>
    %cst_22 = arith.constant dense<0.000000e+00> : vector<24x24xf32>
    %69 = tpu.matmul %66, %67, %cst_22 {dimension_numbers = #tpu.dot_dimension_numbers<[0], [0], [1], [1], [0, 1, 1, 1], [], []>} : vector<8x24xf32>, vector<8x24xf32>, vector<24x24xf32> -> vector<24x24xf32>
    %cst_23 = arith.constant -1.000000e+30 : f32
    %70 = vector.broadcast %cst_23 : f32 to vector<24x24xf32>
    %71 = arith.select %38, %69, %70 : vector<24x24xi1>, vector<24x24xf32>
    %cst_24 = arith.constant dense<0xFF800000> : vector<24xf32>
    %72 = vector.multi_reduction <maximumf>, %71, %cst_24 [1] : vector<24x24xf32> to vector<24xf32>
    %73 = vector.shape_cast %72 : vector<24xf32> to vector<24x1xf32>
    %74 = vector.broadcast %73 : vector<24x1xf32> to vector<24x24xf32>
    %75 = arith.subf %71, %74 : vector<24x24xf32>
    %76 = math.exp %75 : vector<24x24xf32>
    %cst_25 = arith.constant dense<0.000000e+00> : vector<24xf32>
    %77 = vector.multi_reduction <add>, %76, %cst_25 [1] : vector<24x24xf32> to vector<24xf32>
    %78 = vector.shape_cast %77 : vector<24xf32> to vector<24x1xf32>
    %79 = tpu.reciprocal %78 {approx = true} : vector<24x1xf32> -> vector<24x1xf32>
    %80 = vector.broadcast %79 : vector<24x1xf32> to vector<24x24xf32>
    %81 = arith.mulf %76, %80 : vector<24x24xf32>
    %cst_26 = arith.constant dense<0.000000e+00> : vector<8x24xf32>
    %82 = tpu.matmul %68, %81, %cst_26 {dimension_numbers = #tpu.dot_dimension_numbers<[1], [1], [0], [0], [0, 0, 1, 0], [], []>} : vector<8x24xf32>, vector<24x24xf32>, vector<8x24xf32> -> vector<8x24xf32>
    %83 = vector.extract_strided_slice %65 {offsets = [8, 0], sizes = [8, 24], strides = [1, 1]} : vector<96x24xf32> to vector<8x24xf32>
    %84 = vector.extract_strided_slice %65 {offsets = [40, 0], sizes = [8, 24], strides = [1, 1]} : vector<96x24xf32> to vector<8x24xf32>
    %85 = vector.extract_strided_slice %65 {offsets = [72, 0], sizes = [8, 24], strides = [1, 1]} : vector<96x24xf32> to vector<8x24xf32>
    %cst_27 = arith.constant dense<0.000000e+00> : vector<24x24xf32>
    %86 = tpu.matmul %83, %84, %cst_27 {dimension_numbers = #tpu.dot_dimension_numbers<[0], [0], [1], [1], [0, 1, 1, 1], [], []>} : vector<8x24xf32>, vector<8x24xf32>, vector<24x24xf32> -> vector<24x24xf32>
    %cst_28 = arith.constant -1.000000e+30 : f32
    %87 = vector.broadcast %cst_28 : f32 to vector<24x24xf32>
    %88 = arith.select %38, %86, %87 : vector<24x24xi1>, vector<24x24xf32>
    %cst_29 = arith.constant dense<0xFF800000> : vector<24xf32>
    %89 = vector.multi_reduction <maximumf>, %88, %cst_29 [1] : vector<24x24xf32> to vector<24xf32>
    %90 = vector.shape_cast %89 : vector<24xf32> to vector<24x1xf32>
    %91 = vector.broadcast %90 : vector<24x1xf32> to vector<24x24xf32>
    %92 = arith.subf %88, %91 : vector<24x24xf32>
    %93 = math.exp %92 : vector<24x24xf32>
    %cst_30 = arith.constant dense<0.000000e+00> : vector<24xf32>
    %94 = vector.multi_reduction <add>, %93, %cst_30 [1] : vector<24x24xf32> to vector<24xf32>
    %95 = vector.shape_cast %94 : vector<24xf32> to vector<24x1xf32>
    %96 = tpu.reciprocal %95 {approx = true} : vector<24x1xf32> -> vector<24x1xf32>
    %97 = vector.broadcast %96 : vector<24x1xf32> to vector<24x24xf32>
    %98 = arith.mulf %93, %97 : vector<24x24xf32>
    %cst_31 = arith.constant dense<0.000000e+00> : vector<8x24xf32>
    %99 = tpu.matmul %85, %98, %cst_31 {dimension_numbers = #tpu.dot_dimension_numbers<[1], [1], [0], [0], [0, 0, 1, 0], [], []>} : vector<8x24xf32>, vector<24x24xf32>, vector<8x24xf32> -> vector<8x24xf32>
    %100 = vector.extract_strided_slice %65 {offsets = [16, 0], sizes = [8, 24], strides = [1, 1]} : vector<96x24xf32> to vector<8x24xf32>
    %101 = vector.extract_strided_slice %65 {offsets = [48, 0], sizes = [8, 24], strides = [1, 1]} : vector<96x24xf32> to vector<8x24xf32>
    %102 = vector.extract_strided_slice %65 {offsets = [80, 0], sizes = [8, 24], strides = [1, 1]} : vector<96x24xf32> to vector<8x24xf32>
    %cst_32 = arith.constant dense<0.000000e+00> : vector<24x24xf32>
    %103 = tpu.matmul %100, %101, %cst_32 {dimension_numbers = #tpu.dot_dimension_numbers<[0], [0], [1], [1], [0, 1, 1, 1], [], []>} : vector<8x24xf32>, vector<8x24xf32>, vector<24x24xf32> -> vector<24x24xf32>
    %cst_33 = arith.constant -1.000000e+30 : f32
    %104 = vector.broadcast %cst_33 : f32 to vector<24x24xf32>
    %105 = arith.select %38, %103, %104 : vector<24x24xi1>, vector<24x24xf32>
    %cst_34 = arith.constant dense<0xFF800000> : vector<24xf32>
    %106 = vector.multi_reduction <maximumf>, %105, %cst_34 [1] : vector<24x24xf32> to vector<24xf32>
    %107 = vector.shape_cast %106 : vector<24xf32> to vector<24x1xf32>
    %108 = vector.broadcast %107 : vector<24x1xf32> to vector<24x24xf32>
    %109 = arith.subf %105, %108 : vector<24x24xf32>
    %110 = math.exp %109 : vector<24x24xf32>
    %cst_35 = arith.constant dense<0.000000e+00> : vector<24xf32>
    %111 = vector.multi_reduction <add>, %110, %cst_35 [1] : vector<24x24xf32> to vector<24xf32>
    %112 = vector.shape_cast %111 : vector<24xf32> to vector<24x1xf32>
    %113 = tpu.reciprocal %112 {approx = true} : vector<24x1xf32> -> vector<24x1xf32>
    %114 = vector.broadcast %113 : vector<24x1xf32> to vector<24x24xf32>
    %115 = arith.mulf %110, %114 : vector<24x24xf32>
    %cst_36 = arith.constant dense<0.000000e+00> : vector<8x24xf32>
    %116 = tpu.matmul %102, %115, %cst_36 {dimension_numbers = #tpu.dot_dimension_numbers<[1], [1], [0], [0], [0, 0, 1, 0], [], []>} : vector<8x24xf32>, vector<24x24xf32>, vector<8x24xf32> -> vector<8x24xf32>
    %117 = vector.extract_strided_slice %65 {offsets = [24, 0], sizes = [8, 24], strides = [1, 1]} : vector<96x24xf32> to vector<8x24xf32>
    %118 = vector.extract_strided_slice %65 {offsets = [56, 0], sizes = [8, 24], strides = [1, 1]} : vector<96x24xf32> to vector<8x24xf32>
    %119 = vector.extract_strided_slice %65 {offsets = [88, 0], sizes = [8, 24], strides = [1, 1]} : vector<96x24xf32> to vector<8x24xf32>
    %cst_37 = arith.constant dense<0.000000e+00> : vector<24x24xf32>
    %120 = tpu.matmul %117, %118, %cst_37 {dimension_numbers = #tpu.dot_dimension_numbers<[0], [0], [1], [1], [0, 1, 1, 1], [], []>} : vector<8x24xf32>, vector<8x24xf32>, vector<24x24xf32> -> vector<24x24xf32>
    %cst_38 = arith.constant -1.000000e+30 : f32
    %121 = vector.broadcast %cst_38 : f32 to vector<24x24xf32>
    %122 = arith.select %38, %120, %121 : vector<24x24xi1>, vector<24x24xf32>
    %cst_39 = arith.constant dense<0xFF800000> : vector<24xf32>
    %123 = vector.multi_reduction <maximumf>, %122, %cst_39 [1] : vector<24x24xf32> to vector<24xf32>
    %124 = vector.shape_cast %123 : vector<24xf32> to vector<24x1xf32>
    %125 = vector.broadcast %124 : vector<24x1xf32> to vector<24x24xf32>
    %126 = arith.subf %122, %125 : vector<24x24xf32>
    %127 = math.exp %126 : vector<24x24xf32>
    %cst_40 = arith.constant dense<0.000000e+00> : vector<24xf32>
    %128 = vector.multi_reduction <add>, %127, %cst_40 [1] : vector<24x24xf32> to vector<24xf32>
    %129 = vector.shape_cast %128 : vector<24xf32> to vector<24x1xf32>
    %130 = tpu.reciprocal %129 {approx = true} : vector<24x1xf32> -> vector<24x1xf32>
    %131 = vector.broadcast %130 : vector<24x1xf32> to vector<24x24xf32>
    %132 = arith.mulf %127, %131 : vector<24x24xf32>
    %cst_41 = arith.constant dense<0.000000e+00> : vector<8x24xf32>
    %133 = tpu.matmul %119, %132, %cst_41 {dimension_numbers = #tpu.dot_dimension_numbers<[1], [1], [0], [0], [0, 0, 1, 0], [], []>} : vector<8x24xf32>, vector<24x24xf32>, vector<8x24xf32> -> vector<8x24xf32>
    %134 = tpu.concatenate %82, %99, %116, %133 in 0 : vector<8x24xf32>, vector<8x24xf32>, vector<8x24xf32>, vector<8x24xf32> -> vector<32x24xf32>
    %c600 = arith.constant 600 : index
    %c0_42 = arith.constant 0 : index
    %135 = vector.load %arg1[%c600, %c0_42] : memref<1048x32xf32, #tpu.memory_space<vmem>>, vector<32x32xf32>
    %cst_43 = arith.constant dense<0.000000e+00> : vector<24x32xf32>
    %136 = tpu.matmul %134, %135, %cst_43 {dimension_numbers = #tpu.dot_dimension_numbers<[0], [0], [1], [1], [0, 1, 1, 1], [], []>} : vector<32x24xf32>, vector<32x32xf32>, vector<24x32xf32> -> vector<24x32xf32>
    %137 = arith.addf %9, %136 : vector<24x32xf32>
    %c99 = arith.constant 99 : index
    %c0_44 = arith.constant 0 : index
    %138 = vector.load %arg2[%c99, %c0_44] : memref<120x192xf32, #tpu.memory_space<vmem>>, vector<1x32xf32>
    %139 = vector.broadcast %138 : vector<1x32xf32> to vector<24x32xf32>
    %140 = arith.addf %137, %139 : vector<24x32xf32>
    %c100 = arith.constant 100 : index
    %c0_45 = arith.constant 0 : index
    %141 = vector.load %arg2[%c100, %c0_45] : memref<120x192xf32, #tpu.memory_space<vmem>>, vector<1x32xf32>
    %c101 = arith.constant 101 : index
    %c0_46 = arith.constant 0 : index
    %142 = vector.load %arg2[%c101, %c0_46] : memref<120x192xf32, #tpu.memory_space<vmem>>, vector<1x32xf32>
    %cst_47 = arith.constant dense<0.000000e+00> : vector<24xf32>
    %143 = vector.multi_reduction <add>, %140, %cst_47 [1] : vector<24x32xf32> to vector<24xf32>
    %144 = vector.shape_cast %143 : vector<24xf32> to vector<24x1xf32>
    %cst_48 = arith.constant 3.200000e+01 : f32
    %145 = vector.broadcast %cst_48 : f32 to vector<24x1xf32>
    %146 = arith.divf %144, %145 : vector<24x1xf32>
    %147 = vector.broadcast %146 : vector<24x1xf32> to vector<24x32xf32>
    %148 = arith.subf %140, %147 : vector<24x32xf32>
    %149 = arith.mulf %148, %148 : vector<24x32xf32>
    %cst_49 = arith.constant dense<0.000000e+00> : vector<24xf32>
    %150 = vector.multi_reduction <add>, %149, %cst_49 [1] : vector<24x32xf32> to vector<24xf32>
    %151 = vector.shape_cast %150 : vector<24xf32> to vector<24x1xf32>
    %cst_50 = arith.constant 3.200000e+01 : f32
    %152 = vector.broadcast %cst_50 : f32 to vector<24x1xf32>
    %153 = arith.divf %151, %152 : vector<24x1xf32>
    %cst_51 = arith.constant 9.99999997E-7 : f32
    %154 = vector.broadcast %cst_51 : f32 to vector<24x1xf32>
    %155 = arith.addf %153, %154 : vector<24x1xf32>
    %156 = math.rsqrt %155 : vector<24x1xf32>
    %157 = vector.broadcast %156 : vector<24x1xf32> to vector<24x32xf32>
    %158 = arith.mulf %148, %157 : vector<24x32xf32>
    %159 = vector.broadcast %141 : vector<1x32xf32> to vector<24x32xf32>
    %160 = arith.mulf %158, %159 : vector<24x32xf32>
    %161 = vector.broadcast %142 : vector<1x32xf32> to vector<24x32xf32>
    %162 = arith.addf %160, %161 : vector<24x32xf32>
    %c0_52 = arith.constant 0 : index
    %c0_53 = arith.constant 0 : index
    %163 = vector.load %arg2[%c0_52, %c0_53] : memref<120x192xf32, #tpu.memory_space<vmem>>, vector<32x96xf32>
    %cst_54 = arith.constant dense<0.000000e+00> : vector<24x96xf32>
    %164 = tpu.matmul %162, %163, %cst_54 {dimension_numbers = #tpu.dot_dimension_numbers<[1], [0], [0], [1], [0, 0, 1, 1], [], []>} : vector<24x32xf32>, vector<32x96xf32>, vector<24x96xf32> -> vector<24x96xf32>
    %c102 = arith.constant 102 : index
    %c0_55 = arith.constant 0 : index
    %165 = vector.load %arg2[%c102, %c0_55] : memref<120x192xf32, #tpu.memory_space<vmem>>, vector<1x96xf32>
    %166 = vector.broadcast %165 : vector<1x96xf32> to vector<24x96xf32>
    %167 = arith.addf %164, %166 : vector<24x96xf32>
    %cst_56 = arith.constant 5.000000e-01 : f32
    %168 = vector.broadcast %cst_56 : f32 to vector<24x96xf32>
    %169 = arith.mulf %168, %167 : vector<24x96xf32>
    %cst_57 = arith.constant 4.471500e-02 : f32
    %170 = vector.broadcast %cst_57 : f32 to vector<24x96xf32>
    %171 = arith.mulf %170, %167 : vector<24x96xf32>
    %172 = arith.mulf %171, %167 : vector<24x96xf32>
    %173 = arith.mulf %172, %167 : vector<24x96xf32>
    %174 = arith.addf %167, %173 : vector<24x96xf32>
    %cst_58 = arith.constant 0.797884583 : f32
    %175 = vector.broadcast %cst_58 : f32 to vector<24x96xf32>
    %176 = arith.mulf %175, %174 : vector<24x96xf32>
    %177 = math.tanh %176 : vector<24x96xf32>
    %cst_59 = arith.constant 1.000000e+00 : f32
    %178 = vector.broadcast %cst_59 : f32 to vector<24x96xf32>
    %179 = arith.addf %178, %177 : vector<24x96xf32>
    %180 = arith.mulf %169, %179 : vector<24x96xf32>
    %c632 = arith.constant 632 : index
    %c0_60 = arith.constant 0 : index
    %181 = vector.load %arg1[%c632, %c0_60] : memref<1048x32xf32, #tpu.memory_space<vmem>>, vector<96x32xf32>
    %cst_61 = arith.constant dense<0.000000e+00> : vector<24x32xf32>
    %182 = tpu.matmul %180, %181, %cst_61 {dimension_numbers = #tpu.dot_dimension_numbers<[1], [0], [0], [1], [0, 0, 1, 1], [], []>} : vector<24x96xf32>, vector<96x32xf32>, vector<24x32xf32> -> vector<24x32xf32>
    %c103 = arith.constant 103 : index
    %c0_62 = arith.constant 0 : index
    %183 = vector.load %arg2[%c103, %c0_62] : memref<120x192xf32, #tpu.memory_space<vmem>>, vector<1x32xf32>
    %184 = vector.broadcast %183 : vector<1x32xf32> to vector<24x32xf32>
    %185 = arith.addf %182, %184 : vector<24x32xf32>
    %186 = arith.addf %140, %185 : vector<24x32xf32>
    %c104 = arith.constant 104 : index
    %c0_63 = arith.constant 0 : index
    %187 = vector.load %arg2[%c104, %c0_63] : memref<120x192xf32, #tpu.memory_space<vmem>>, vector<1x32xf32>
    %c105 = arith.constant 105 : index
    %c0_64 = arith.constant 0 : index
    %188 = vector.load %arg2[%c105, %c0_64] : memref<120x192xf32, #tpu.memory_space<vmem>>, vector<1x32xf32>
    %cst_65 = arith.constant dense<0.000000e+00> : vector<24xf32>
    %189 = vector.multi_reduction <add>, %186, %cst_65 [1] : vector<24x32xf32> to vector<24xf32>
    %190 = vector.shape_cast %189 : vector<24xf32> to vector<24x1xf32>
    %cst_66 = arith.constant 3.200000e+01 : f32
    %191 = vector.broadcast %cst_66 : f32 to vector<24x1xf32>
    %192 = arith.divf %190, %191 : vector<24x1xf32>
    %193 = vector.broadcast %192 : vector<24x1xf32> to vector<24x32xf32>
    %194 = arith.subf %186, %193 : vector<24x32xf32>
    %195 = arith.mulf %194, %194 : vector<24x32xf32>
    %cst_67 = arith.constant dense<0.000000e+00> : vector<24xf32>
    %196 = vector.multi_reduction <add>, %195, %cst_67 [1] : vector<24x32xf32> to vector<24xf32>
    %197 = vector.shape_cast %196 : vector<24xf32> to vector<24x1xf32>
    %cst_68 = arith.constant 3.200000e+01 : f32
    %198 = vector.broadcast %cst_68 : f32 to vector<24x1xf32>
    %199 = arith.divf %197, %198 : vector<24x1xf32>
    %cst_69 = arith.constant 9.99999997E-7 : f32
    %200 = vector.broadcast %cst_69 : f32 to vector<24x1xf32>
    %201 = arith.addf %199, %200 : vector<24x1xf32>
    %202 = math.rsqrt %201 : vector<24x1xf32>
    %203 = vector.broadcast %202 : vector<24x1xf32> to vector<24x32xf32>
    %204 = arith.mulf %194, %203 : vector<24x32xf32>
    %205 = vector.broadcast %187 : vector<1x32xf32> to vector<24x32xf32>
    %206 = arith.mulf %204, %205 : vector<24x32xf32>
    %207 = vector.broadcast %188 : vector<1x32xf32> to vector<24x32xf32>
    %208 = arith.addf %206, %207 : vector<24x32xf32>
    %c728 = arith.constant 728 : index
    %c0_70 = arith.constant 0 : index
    %209 = vector.load %arg1[%c728, %c0_70] : memref<1048x32xf32, #tpu.memory_space<vmem>>, vector<96x32xf32>
    %cst_71 = arith.constant dense<0.000000e+00> : vector<96x24xf32>
    %210 = tpu.matmul %209, %208, %cst_71 {dimension_numbers = #tpu.dot_dimension_numbers<[1], [1], [0], [0], [0, 0, 1, 0], [], []>} : vector<96x32xf32>, vector<24x32xf32>, vector<96x24xf32> -> vector<96x24xf32>
    %c824 = arith.constant 824 : index
    %c0_72 = arith.constant 0 : index
    %211 = vector.load %arg1[%c824, %c0_72] : memref<1048x32xf32, #tpu.memory_space<vmem>>, vector<96x1xf32>
    %212 = vector.broadcast %211 : vector<96x1xf32> to vector<96x24xf32>
    %213 = arith.addf %210, %212 : vector<96x24xf32>
    %214 = vector.extract_strided_slice %213 {offsets = [0, 0], sizes = [8, 24], strides = [1, 1]} : vector<96x24xf32> to vector<8x24xf32>
    %215 = vector.extract_strided_slice %213 {offsets = [32, 0], sizes = [8, 24], strides = [1, 1]} : vector<96x24xf32> to vector<8x24xf32>
    %216 = vector.extract_strided_slice %213 {offsets = [64, 0], sizes = [8, 24], strides = [1, 1]} : vector<96x24xf32> to vector<8x24xf32>
    %cst_73 = arith.constant dense<0.000000e+00> : vector<24x24xf32>
    %217 = tpu.matmul %214, %215, %cst_73 {dimension_numbers = #tpu.dot_dimension_numbers<[0], [0], [1], [1], [0, 1, 1, 1], [], []>} : vector<8x24xf32>, vector<8x24xf32>, vector<24x24xf32> -> vector<24x24xf32>
    %cst_74 = arith.constant -1.000000e+30 : f32
    %218 = vector.broadcast %cst_74 : f32 to vector<24x24xf32>
    %219 = arith.select %38, %217, %218 : vector<24x24xi1>, vector<24x24xf32>
    %cst_75 = arith.constant dense<0xFF800000> : vector<24xf32>
    %220 = vector.multi_reduction <maximumf>, %219, %cst_75 [1] : vector<24x24xf32> to vector<24xf32>
    %221 = vector.shape_cast %220 : vector<24xf32> to vector<24x1xf32>
    %222 = vector.broadcast %221 : vector<24x1xf32> to vector<24x24xf32>
    %223 = arith.subf %219, %222 : vector<24x24xf32>
    %224 = math.exp %223 : vector<24x24xf32>
    %cst_76 = arith.constant dense<0.000000e+00> : vector<24xf32>
    %225 = vector.multi_reduction <add>, %224, %cst_76 [1] : vector<24x24xf32> to vector<24xf32>
    %226 = vector.shape_cast %225 : vector<24xf32> to vector<24x1xf32>
    %227 = tpu.reciprocal %226 {approx = true} : vector<24x1xf32> -> vector<24x1xf32>
    %228 = vector.broadcast %227 : vector<24x1xf32> to vector<24x24xf32>
    %229 = arith.mulf %224, %228 : vector<24x24xf32>
    %cst_77 = arith.constant dense<0.000000e+00> : vector<8x24xf32>
    %230 = tpu.matmul %216, %229, %cst_77 {dimension_numbers = #tpu.dot_dimension_numbers<[1], [1], [0], [0], [0, 0, 1, 0], [], []>} : vector<8x24xf32>, vector<24x24xf32>, vector<8x24xf32> -> vector<8x24xf32>
    %231 = vector.extract_strided_slice %213 {offsets = [8, 0], sizes = [8, 24], strides = [1, 1]} : vector<96x24xf32> to vector<8x24xf32>
    %232 = vector.extract_strided_slice %213 {offsets = [40, 0], sizes = [8, 24], strides = [1, 1]} : vector<96x24xf32> to vector<8x24xf32>
    %233 = vector.extract_strided_slice %213 {offsets = [72, 0], sizes = [8, 24], strides = [1, 1]} : vector<96x24xf32> to vector<8x24xf32>
    %cst_78 = arith.constant dense<0.000000e+00> : vector<24x24xf32>
    %234 = tpu.matmul %231, %232, %cst_78 {dimension_numbers = #tpu.dot_dimension_numbers<[0], [0], [1], [1], [0, 1, 1, 1], [], []>} : vector<8x24xf32>, vector<8x24xf32>, vector<24x24xf32> -> vector<24x24xf32>
    %cst_79 = arith.constant -1.000000e+30 : f32
    %235 = vector.broadcast %cst_79 : f32 to vector<24x24xf32>
    %236 = arith.select %38, %234, %235 : vector<24x24xi1>, vector<24x24xf32>
    %cst_80 = arith.constant dense<0xFF800000> : vector<24xf32>
    %237 = vector.multi_reduction <maximumf>, %236, %cst_80 [1] : vector<24x24xf32> to vector<24xf32>
    %238 = vector.shape_cast %237 : vector<24xf32> to vector<24x1xf32>
    %239 = vector.broadcast %238 : vector<24x1xf32> to vector<24x24xf32>
    %240 = arith.subf %236, %239 : vector<24x24xf32>
    %241 = math.exp %240 : vector<24x24xf32>
    %cst_81 = arith.constant dense<0.000000e+00> : vector<24xf32>
    %242 = vector.multi_reduction <add>, %241, %cst_81 [1] : vector<24x24xf32> to vector<24xf32>
    %243 = vector.shape_cast %242 : vector<24xf32> to vector<24x1xf32>
    %244 = tpu.reciprocal %243 {approx = true} : vector<24x1xf32> -> vector<24x1xf32>
    %245 = vector.broadcast %244 : vector<24x1xf32> to vector<24x24xf32>
    %246 = arith.mulf %241, %245 : vector<24x24xf32>
    %cst_82 = arith.constant dense<0.000000e+00> : vector<8x24xf32>
    %247 = tpu.matmul %233, %246, %cst_82 {dimension_numbers = #tpu.dot_dimension_numbers<[1], [1], [0], [0], [0, 0, 1, 0], [], []>} : vector<8x24xf32>, vector<24x24xf32>, vector<8x24xf32> -> vector<8x24xf32>
    %248 = vector.extract_strided_slice %213 {offsets = [16, 0], sizes = [8, 24], strides = [1, 1]} : vector<96x24xf32> to vector<8x24xf32>
    %249 = vector.extract_strided_slice %213 {offsets = [48, 0], sizes = [8, 24], strides = [1, 1]} : vector<96x24xf32> to vector<8x24xf32>
    %250 = vector.extract_strided_slice %213 {offsets = [80, 0], sizes = [8, 24], strides = [1, 1]} : vector<96x24xf32> to vector<8x24xf32>
    %cst_83 = arith.constant dense<0.000000e+00> : vector<24x24xf32>
    %251 = tpu.matmul %248, %249, %cst_83 {dimension_numbers = #tpu.dot_dimension_numbers<[0], [0], [1], [1], [0, 1, 1, 1], [], []>} : vector<8x24xf32>, vector<8x24xf32>, vector<24x24xf32> -> vector<24x24xf32>
    %cst_84 = arith.constant -1.000000e+30 : f32
    %252 = vector.broadcast %cst_84 : f32 to vector<24x24xf32>
    %253 = arith.select %38, %251, %252 : vector<24x24xi1>, vector<24x24xf32>
    %cst_85 = arith.constant dense<0xFF800000> : vector<24xf32>
    %254 = vector.multi_reduction <maximumf>, %253, %cst_85 [1] : vector<24x24xf32> to vector<24xf32>
    %255 = vector.shape_cast %254 : vector<24xf32> to vector<24x1xf32>
    %256 = vector.broadcast %255 : vector<24x1xf32> to vector<24x24xf32>
    %257 = arith.subf %253, %256 : vector<24x24xf32>
    %258 = math.exp %257 : vector<24x24xf32>
    %cst_86 = arith.constant dense<0.000000e+00> : vector<24xf32>
    %259 = vector.multi_reduction <add>, %258, %cst_86 [1] : vector<24x24xf32> to vector<24xf32>
    %260 = vector.shape_cast %259 : vector<24xf32> to vector<24x1xf32>
    %261 = tpu.reciprocal %260 {approx = true} : vector<24x1xf32> -> vector<24x1xf32>
    %262 = vector.broadcast %261 : vector<24x1xf32> to vector<24x24xf32>
    %263 = arith.mulf %258, %262 : vector<24x24xf32>
    %cst_87 = arith.constant dense<0.000000e+00> : vector<8x24xf32>
    %264 = tpu.matmul %250, %263, %cst_87 {dimension_numbers = #tpu.dot_dimension_numbers<[1], [1], [0], [0], [0, 0, 1, 0], [], []>} : vector<8x24xf32>, vector<24x24xf32>, vector<8x24xf32> -> vector<8x24xf32>
    %265 = vector.extract_strided_slice %213 {offsets = [24, 0], sizes = [8, 24], strides = [1, 1]} : vector<96x24xf32> to vector<8x24xf32>
    %266 = vector.extract_strided_slice %213 {offsets = [56, 0], sizes = [8, 24], strides = [1, 1]} : vector<96x24xf32> to vector<8x24xf32>
    %267 = vector.extract_strided_slice %213 {offsets = [88, 0], sizes = [8, 24], strides = [1, 1]} : vector<96x24xf32> to vector<8x24xf32>
    %cst_88 = arith.constant dense<0.000000e+00> : vector<24x24xf32>
    %268 = tpu.matmul %265, %266, %cst_88 {dimension_numbers = #tpu.dot_dimension_numbers<[0], [0], [1], [1], [0, 1, 1, 1], [], []>} : vector<8x24xf32>, vector<8x24xf32>, vector<24x24xf32> -> vector<24x24xf32>
    %cst_89 = arith.constant -1.000000e+30 : f32
    %269 = vector.broadcast %cst_89 : f32 to vector<24x24xf32>
    %270 = arith.select %38, %268, %269 : vector<24x24xi1>, vector<24x24xf32>
    %cst_90 = arith.constant dense<0xFF800000> : vector<24xf32>
    %271 = vector.multi_reduction <maximumf>, %270, %cst_90 [1] : vector<24x24xf32> to vector<24xf32>
    %272 = vector.shape_cast %271 : vector<24xf32> to vector<24x1xf32>
    %273 = vector.broadcast %272 : vector<24x1xf32> to vector<24x24xf32>
    %274 = arith.subf %270, %273 : vector<24x24xf32>
    %275 = math.exp %274 : vector<24x24xf32>
    %cst_91 = arith.constant dense<0.000000e+00> : vector<24xf32>
    %276 = vector.multi_reduction <add>, %275, %cst_91 [1] : vector<24x24xf32> to vector<24xf32>
    %277 = vector.shape_cast %276 : vector<24xf32> to vector<24x1xf32>
    %278 = tpu.reciprocal %277 {approx = true} : vector<24x1xf32> -> vector<24x1xf32>
    %279 = vector.broadcast %278 : vector<24x1xf32> to vector<24x24xf32>
    %280 = arith.mulf %275, %279 : vector<24x24xf32>
    %cst_92 = arith.constant dense<0.000000e+00> : vector<8x24xf32>
    %281 = tpu.matmul %267, %280, %cst_92 {dimension_numbers = #tpu.dot_dimension_numbers<[1], [1], [0], [0], [0, 0, 1, 0], [], []>} : vector<8x24xf32>, vector<24x24xf32>, vector<8x24xf32> -> vector<8x24xf32>
    %282 = tpu.concatenate %230, %247, %264, %281 in 0 : vector<8x24xf32>, vector<8x24xf32>, vector<8x24xf32>, vector<8x24xf32> -> vector<32x24xf32>
    %c920 = arith.constant 920 : index
    %c0_93 = arith.constant 0 : index
    %283 = vector.load %arg1[%c920, %c0_93] : memref<1048x32xf32, #tpu.memory_space<vmem>>, vector<32x32xf32>
    %cst_94 = arith.constant dense<0.000000e+00> : vector<24x32xf32>
    %284 = tpu.matmul %282, %283, %cst_94 {dimension_numbers = #tpu.dot_dimension_numbers<[0], [0], [1], [1], [0, 1, 1, 1], [], []>} : vector<32x24xf32>, vector<32x32xf32>, vector<24x32xf32> -> vector<24x32xf32>
    %285 = arith.addf %186, %284 : vector<24x32xf32>
    %c106 = arith.constant 106 : index
    %c0_95 = arith.constant 0 : index
    %286 = vector.load %arg2[%c106, %c0_95] : memref<120x192xf32, #tpu.memory_space<vmem>>, vector<1x32xf32>
    %287 = vector.broadcast %286 : vector<1x32xf32> to vector<24x32xf32>
    %288 = arith.addf %285, %287 : vector<24x32xf32>
    %c107 = arith.constant 107 : index
    %c0_96 = arith.constant 0 : index
    %289 = vector.load %arg2[%c107, %c0_96] : memref<120x192xf32, #tpu.memory_space<vmem>>, vector<1x32xf32>
    %c108 = arith.constant 108 : index
    %c0_97 = arith.constant 0 : index
    %290 = vector.load %arg2[%c108, %c0_97] : memref<120x192xf32, #tpu.memory_space<vmem>>, vector<1x32xf32>
    %cst_98 = arith.constant dense<0.000000e+00> : vector<24xf32>
    %291 = vector.multi_reduction <add>, %288, %cst_98 [1] : vector<24x32xf32> to vector<24xf32>
    %292 = vector.shape_cast %291 : vector<24xf32> to vector<24x1xf32>
    %cst_99 = arith.constant 3.200000e+01 : f32
    %293 = vector.broadcast %cst_99 : f32 to vector<24x1xf32>
    %294 = arith.divf %292, %293 : vector<24x1xf32>
    %295 = vector.broadcast %294 : vector<24x1xf32> to vector<24x32xf32>
    %296 = arith.subf %288, %295 : vector<24x32xf32>
    %297 = arith.mulf %296, %296 : vector<24x32xf32>
    %cst_100 = arith.constant dense<0.000000e+00> : vector<24xf32>
    %298 = vector.multi_reduction <add>, %297, %cst_100 [1] : vector<24x32xf32> to vector<24xf32>
    %299 = vector.shape_cast %298 : vector<24xf32> to vector<24x1xf32>
    %cst_101 = arith.constant 3.200000e+01 : f32
    %300 = vector.broadcast %cst_101 : f32 to vector<24x1xf32>
    %301 = arith.divf %299, %300 : vector<24x1xf32>
    %cst_102 = arith.constant 9.99999997E-7 : f32
    %302 = vector.broadcast %cst_102 : f32 to vector<24x1xf32>
    %303 = arith.addf %301, %302 : vector<24x1xf32>
    %304 = math.rsqrt %303 : vector<24x1xf32>
    %305 = vector.broadcast %304 : vector<24x1xf32> to vector<24x32xf32>
    %306 = arith.mulf %296, %305 : vector<24x32xf32>
    %307 = vector.broadcast %289 : vector<1x32xf32> to vector<24x32xf32>
    %308 = arith.mulf %306, %307 : vector<24x32xf32>
    %309 = vector.broadcast %290 : vector<1x32xf32> to vector<24x32xf32>
    %310 = arith.addf %308, %309 : vector<24x32xf32>
    %c32 = arith.constant 32 : index
    %c0_103 = arith.constant 0 : index
    %311 = vector.load %arg2[%c32, %c0_103] : memref<120x192xf32, #tpu.memory_space<vmem>>, vector<32x96xf32>
    %cst_104 = arith.constant dense<0.000000e+00> : vector<24x96xf32>
    %312 = tpu.matmul %310, %311, %cst_104 {dimension_numbers = #tpu.dot_dimension_numbers<[1], [0], [0], [1], [0, 0, 1, 1], [], []>} : vector<24x32xf32>, vector<32x96xf32>, vector<24x96xf32> -> vector<24x96xf32>
    %c109 = arith.constant 109 : index
    %c0_105 = arith.constant 0 : index
    %313 = vector.load %arg2[%c109, %c0_105] : memref<120x192xf32, #tpu.memory_space<vmem>>, vector<1x96xf32>
    %314 = vector.broadcast %313 : vector<1x96xf32> to vector<24x96xf32>
    %315 = arith.addf %312, %314 : vector<24x96xf32>
    %cst_106 = arith.constant 5.000000e-01 : f32
    %316 = vector.broadcast %cst_106 : f32 to vector<24x96xf32>
    %317 = arith.mulf %316, %315 : vector<24x96xf32>
    %cst_107 = arith.constant 4.471500e-02 : f32
    %318 = vector.broadcast %cst_107 : f32 to vector<24x96xf32>
    %319 = arith.mulf %318, %315 : vector<24x96xf32>
    %320 = arith.mulf %319, %315 : vector<24x96xf32>
    %321 = arith.mulf %320, %315 : vector<24x96xf32>
    %322 = arith.addf %315, %321 : vector<24x96xf32>
    %cst_108 = arith.constant 0.797884583 : f32
    %323 = vector.broadcast %cst_108 : f32 to vector<24x96xf32>
    %324 = arith.mulf %323, %322 : vector<24x96xf32>
    %325 = math.tanh %324 : vector<24x96xf32>
    %cst_109 = arith.constant 1.000000e+00 : f32
    %326 = vector.broadcast %cst_109 : f32 to vector<24x96xf32>
    %327 = arith.addf %326, %325 : vector<24x96xf32>
    %328 = arith.mulf %317, %327 : vector<24x96xf32>
    %c952 = arith.constant 952 : index
    %c0_110 = arith.constant 0 : index
    %329 = vector.load %arg1[%c952, %c0_110] : memref<1048x32xf32, #tpu.memory_space<vmem>>, vector<96x32xf32>
    %cst_111 = arith.constant dense<0.000000e+00> : vector<24x32xf32>
    %330 = tpu.matmul %328, %329, %cst_111 {dimension_numbers = #tpu.dot_dimension_numbers<[1], [0], [0], [1], [0, 0, 1, 1], [], []>} : vector<24x96xf32>, vector<96x32xf32>, vector<24x32xf32> -> vector<24x32xf32>
    %c110 = arith.constant 110 : index
    %c0_112 = arith.constant 0 : index
    %331 = vector.load %arg2[%c110, %c0_112] : memref<120x192xf32, #tpu.memory_space<vmem>>, vector<1x32xf32>
    %332 = vector.broadcast %331 : vector<1x32xf32> to vector<24x32xf32>
    %333 = arith.addf %330, %332 : vector<24x32xf32>
    %334 = arith.addf %288, %333 : vector<24x32xf32>
    %335 = vector.extract_strided_slice %334 {offsets = [8, 0], sizes = [16, 32], strides = [1, 1]} : vector<24x32xf32> to vector<16x32xf32>
    %c111 = arith.constant 111 : index
    %c0_113 = arith.constant 0 : index
    %336 = vector.load %arg2[%c111, %c0_113] : memref<120x192xf32, #tpu.memory_space<vmem>>, vector<1x32xf32>
    %c112 = arith.constant 112 : index
    %c0_114 = arith.constant 0 : index
    %337 = vector.load %arg2[%c112, %c0_114] : memref<120x192xf32, #tpu.memory_space<vmem>>, vector<1x32xf32>
    %cst_115 = arith.constant dense<0.000000e+00> : vector<16xf32>
    %338 = vector.multi_reduction <add>, %335, %cst_115 [1] : vector<16x32xf32> to vector<16xf32>
    %339 = vector.shape_cast %338 : vector<16xf32> to vector<16x1xf32>
    %cst_116 = arith.constant 3.200000e+01 : f32
    %340 = vector.broadcast %cst_116 : f32 to vector<16x1xf32>
    %341 = arith.divf %339, %340 : vector<16x1xf32>
    %342 = vector.broadcast %341 : vector<16x1xf32> to vector<16x32xf32>
    %343 = arith.subf %335, %342 : vector<16x32xf32>
    %344 = arith.mulf %343, %343 : vector<16x32xf32>
    %cst_117 = arith.constant dense<0.000000e+00> : vector<16xf32>
    %345 = vector.multi_reduction <add>, %344, %cst_117 [1] : vector<16x32xf32> to vector<16xf32>
    %346 = vector.shape_cast %345 : vector<16xf32> to vector<16x1xf32>
    %cst_118 = arith.constant 3.200000e+01 : f32
    %347 = vector.broadcast %cst_118 : f32 to vector<16x1xf32>
    %348 = arith.divf %346, %347 : vector<16x1xf32>
    %cst_119 = arith.constant 9.99999997E-7 : f32
    %349 = vector.broadcast %cst_119 : f32 to vector<16x1xf32>
    %350 = arith.addf %348, %349 : vector<16x1xf32>
    %351 = math.rsqrt %350 : vector<16x1xf32>
    %352 = vector.broadcast %351 : vector<16x1xf32> to vector<16x32xf32>
    %353 = arith.mulf %343, %352 : vector<16x32xf32>
    %354 = vector.broadcast %336 : vector<1x32xf32> to vector<16x32xf32>
    %355 = arith.mulf %353, %354 : vector<16x32xf32>
    %356 = vector.broadcast %337 : vector<1x32xf32> to vector<16x32xf32>
    %357 = arith.addf %355, %356 : vector<16x32xf32>
    %c113 = arith.constant 113 : index
    %c0_120 = arith.constant 0 : index
    %358 = vector.load %arg2[%c113, %c0_120] : memref<120x192xf32, #tpu.memory_space<vmem>>, vector<1x32xf32>
    %c114 = arith.constant 114 : index
    %c0_121 = arith.constant 0 : index
    %359 = vector.load %arg2[%c114, %c0_121] : memref<120x192xf32, #tpu.memory_space<vmem>>, vector<1x32xf32>
    %cst_122 = arith.constant dense<0.000000e+00> : vector<16xf32>
    %360 = vector.multi_reduction <add>, %357, %cst_122 [1] : vector<16x32xf32> to vector<16xf32>
    %361 = vector.shape_cast %360 : vector<16xf32> to vector<16x1xf32>
    %cst_123 = arith.constant 3.200000e+01 : f32
    %362 = vector.broadcast %cst_123 : f32 to vector<16x1xf32>
    %363 = arith.divf %361, %362 : vector<16x1xf32>
    %364 = vector.broadcast %363 : vector<16x1xf32> to vector<16x32xf32>
    %365 = arith.subf %357, %364 : vector<16x32xf32>
    %366 = arith.mulf %365, %365 : vector<16x32xf32>
    %cst_124 = arith.constant dense<0.000000e+00> : vector<16xf32>
    %367 = vector.multi_reduction <add>, %366, %cst_124 [1] : vector<16x32xf32> to vector<16xf32>
    %368 = vector.shape_cast %367 : vector<16xf32> to vector<16x1xf32>
    %cst_125 = arith.constant 3.200000e+01 : f32
    %369 = vector.broadcast %cst_125 : f32 to vector<16x1xf32>
    %370 = arith.divf %368, %369 : vector<16x1xf32>
    %cst_126 = arith.constant 9.99999974E-6 : f32
    %371 = vector.broadcast %cst_126 : f32 to vector<16x1xf32>
    %372 = arith.addf %370, %371 : vector<16x1xf32>
    %373 = math.rsqrt %372 : vector<16x1xf32>
    %374 = vector.broadcast %373 : vector<16x1xf32> to vector<16x32xf32>
    %375 = arith.mulf %365, %374 : vector<16x32xf32>
    %376 = vector.broadcast %358 : vector<1x32xf32> to vector<16x32xf32>
    %377 = arith.mulf %375, %376 : vector<16x32xf32>
    %378 = vector.broadcast %359 : vector<1x32xf32> to vector<16x32xf32>
    %379 = arith.addf %377, %378 : vector<16x32xf32>
    %c64 = arith.constant 64 : index
    %c0_127 = arith.constant 0 : index
    %380 = vector.load %arg2[%c64, %c0_127] : memref<120x192xf32, #tpu.memory_space<vmem>>, vector<32x192xf32>
    %cst_128 = arith.constant dense<0.000000e+00> : vector<16x192xf32>
    %381 = tpu.matmul %379, %380, %cst_128 {dimension_numbers = #tpu.dot_dimension_numbers<[1], [0], [0], [1], [0, 0, 1, 1], [], []>} : vector<16x32xf32>, vector<32x192xf32>, vector<16x192xf32> -> vector<16x192xf32>
    %c115 = arith.constant 115 : index
    %c0_129 = arith.constant 0 : index
    %382 = vector.load %arg2[%c115, %c0_129] : memref<120x192xf32, #tpu.memory_space<vmem>>, vector<1x192xf32>
    %383 = vector.broadcast %382 : vector<1x192xf32> to vector<16x192xf32>
    %384 = arith.addf %381, %383 : vector<16x192xf32>
    %c0_130 = arith.constant 0 : index
    %c0_131 = arith.constant 0 : index
    %385 = vector.load %arg3[%c0_130, %c0_131] : memref<16x192xf32, #tpu.memory_space<vmem>>, vector<16x192xf32>
    tpu.vector_store %arg3[%c0_130, %c0_131], %384 {strides = array<i32>} : memref<16x192xf32, #tpu.memory_space<vmem>>, vector<16x192xf32>,
    return
  }
}

</mosaic_0001>

<bundles_post_ra>
// kernel: token_pose_forward.1
= control target key start
LH: loop header
LB: loop body
LE: loop exit
PB: predicated region body
PF: predicated region fallthrough
CT: control target
= control target key end

     0   :  { %vm165_vm0 = vcmask 261120   ;;  %v2742_v55 = vmov 32.0   ;;  %vm459_vm11 = vcmask 64512   ;;  %s3686_s1 = inlined_call_operand.vmem [shape: f32[1048,32], index: 1, kind: input, shape index: {}]   ;;  %s3687_s0 = inlined_call_operand.vmem [shape: f32[8,384], index: 0, kind: input, shape index: {}]   ;;  %s3688_s2 = inlined_call_operand.vmem [shape: f32[120,192], index: 2, kind: input, shape index: {}]   ;;  %s3689_s3 = inlined_call_operand.vmem [shape: f32[16,192], index: 3, kind: output, shape index: {}]  }
   0x1   :  { %v64_v0 = vld [vmem:[%s3686_s1 + $0x178] sm:$0xff]  ;;  %v63_v2 = vld [vmem:[%s3686_s1 + $0x170] sm:$0xff]  ;;  %v62_v5 = vld [vmem:[%s3686_s1 + $0x168] sm:$0xff]  ;;  %2598 = vrcp.f32 %v2742_v55 }
   0x2   :  { %v32_v1 = vld [vmem:[%s3686_s1 + $0x78] sm:$0xff]  ;;  %106 = vmatpush.msra.mxu2 %v64_v0  ;;  %v31_v3 = vld [vmem:[%s3686_s1 + $0x70] sm:$0xff]  ;;  %v30_v6 = vld [vmem:[%s3686_s1 + $0x68] sm:$0xff] }
   0x3   :  { %66 = vmatpush.msra.mxu0 %v32_v1  ;;  %v48_v4 = vld [vmem:[%s3686_s1 + $0xf8] sm:$0xff]  ;;  %v47_v7 = vld [vmem:[%s3686_s1 + $0xf0] sm:$0xff]  ;;  %v46_v8 = vld [vmem:[%s3686_s1 + $0xe8] sm:$0xff] }
   0x4   :  { %86 = vmatpush.msra.mxu1 %v48_v4  ;;  %107 = vmatpush.msra.mxu2 %v63_v2  ;;  %v61_v9 = vld [vmem:[%s3686_s1 + $0x160] sm:$0xff]  ;;  %v2803_v12 = vld [vmem:[%s3686_s1 + $0x190] sm:$0xff]  ;;  %v60_v13 = vld [vmem:[%s3686_s1 + $0x158] sm:$0xff] }
   0x5   :  { %67 = vmatpush.msra.mxu0 %v31_v3  ;;  %v29_v10 = vld [vmem:[%s3686_s1 + $0x60] sm:$0xff]  ;;  %v28_v14 = vld [vmem:[%s3686_s1 + $0x58] sm:$0xff]  ;;  %v172_v15 = vsel %vm165_vm0, %v2803_v12, 0.0  ;;  %v59_v17 = vld [vmem:[%s3686_s1 + $0x150] sm:$0xff] }
   0x6   :  { %87 = vmatpush.msra.mxu1 %v47_v7  ;;  %108 = vmatpush.msra.mxu2 %v62_v5  ;;  %v45_v11 = vld [vmem:[%s3686_s1 + $0xe0] sm:$0xff]  ;;  %v44_v16 = vld [vmem:[%s3686_s1 + $0xd8] sm:$0xff]  ;;  %v27_v18 = vld [vmem:[%s3686_s1 + $0x50] sm:$0xff] }
   0x7   :  { %68 = vmatpush.msra.mxu0 %v30_v6  ;;  %173 = vadd.xlane.f32.xlu0 %v172_v15  ;;  %v43_v19 = vld [vmem:[%s3686_s1 + $0xd0] sm:$0xff]  ;;  %v58_v20 = vld [vmem:[%s3686_s1 + $0x148] sm:$0xff]  ;;  %v57_v24 = vld [vmem:[%s3686_s1 + $0x140] sm:$0xff]  ;;  %v2599_v56 = vpop.eup %2598 }
   0x8   :  { %88 = vmatpush.msra.mxu1 %v46_v8  ;;  %109 = vmatpush.msra.mxu2 %v61_v9  ;;  %v26_v21 = vld [vmem:[%s3686_s1 + $0x48] sm:$0xff]  ;;  %v25_v25 = vld [vmem:[%s3686_s1 + $0x40] sm:$0xff]  ;;  %v56_v28 = vld [vmem:[%s3686_s1 + $0x138] sm:$0xff]  ;;  %v176_v57 = vmul.f32 32.0, %v2599_v56  ;;  %vm180_vm1 = vweird.f32 %v2599_v56 }
   0x9   :  { %69 = vmatpush.msra.mxu0 %v29_v10  ;;  %v2834_v22 = vld [vmem:[%s3686_s1 + $0x188] sm:$0xff]  ;;  %v41_v26 = vld [vmem:[%s3686_s1 + $0xc0] sm:$0xff]  ;;  %v24_v29 = vld [vmem:[%s3686_s1 + $0x38] sm:$0xff] }
   0xa   :  { %89 = vmatpush.msra.mxu1 %v45_v11  ;;  %110 = vmatpush.msra.mxu2 %v60_v13  ;;  %v42_v23 = vld [vmem:[%s3686_s1 + $0xc8] sm:$0xff]  ;;  %v169_v27 = vsel %vm165_vm0, %v2834_v22, 0.0  ;;  %v40_v30 = vld [vmem:[%s3686_s1 + $0xb8] sm:$0xff]  ;;  %v55_v31 = vld [vmem:[%s3686_s1 + $0x130] sm:$0xff]  ;;  %v177_v58 = vsub.f32 1.0, %v176_v57 }
   0xb   :  { %70 = vmatpush.msra.mxu0 %v28_v14  ;;  %v23_v32 = vld [vmem:[%s3686_s1 + $0x30] sm:$0xff]  ;;  %v54_v34 = vld [vmem:[%s3686_s1 + $0x128] sm:$0xff]  ;;  %v53_v37 = vld [vmem:[%s3686_s1 + $0x120] sm:$0xff] }
   0xc   :  { %90 = vmatpush.msra.mxu1 %v44_v16  ;;  %111 = vmatpush.msra.mxu2 %v59_v17  ;;  %v39_v33 = vld [vmem:[%s3686_s1 + $0xb0] sm:$0xff]  ;;  %v22_v35 = vld [vmem:[%s3686_s1 + $0x28] sm:$0xff]  ;;  %v21_v38 = vld [vmem:[%s3686_s1 + $0x20] sm:$0xff]  ;;  %v178_v59 = vmul.f32 %v2599_v56, %v177_v58 }
   0xd   :  { %71 = vmatpush.msra.mxu0 %v27_v18  ;;  %v38_v36 = vld [vmem:[%s3686_s1 + $0xa8] sm:$0xff]  ;;  %v37_v39 = vld [vmem:[%s3686_s1 + $0xa0] sm:$0xff]  ;;  %v52_v40 = vld [vmem:[%s3686_s1 + $0x118] sm:$0xff] }
   0xe   :  { %91 = vmatpush.msra.mxu1 %v43_v19  ;;  %112 = vmatpush.msra.mxu2 %v58_v20  ;;  %v20_v41 = vld [vmem:[%s3686_s1 + $0x18] sm:$0xff]  ;;  %v51_v43 = vld [vmem:[%s3686_s1 + $0x110] sm:$0xff]  ;;  %v50_v46 = vld [vmem:[%s3686_s1 + $0x108] sm:$0xff]  ;;  %v179_v61 = vadd.f32 %v2599_v56, %v178_v59 }
   0xf   :  { %72 = vmatpush.msra.mxu0 %v26_v21  ;;  %170 = vadd.xlane.f32.xlu0 %v169_v27  ;;  %v36_v42 = vld [vmem:[%s3686_s1 + $0x98] sm:$0xff]  ;;  %v19_v44 = vld [vmem:[%s3686_s1 + $0x10] sm:$0xff]  ;;  %v18_v47 = vld [vmem:[%s3686_s1 + $0x8] sm:$0xff] }
  0x10   :  { %92 = vmatpush.msra.mxu1 %v42_v23  ;;  %113 = vmatpush.msra.mxu2 %v57_v24  ;;  %v35_v45 = vld [vmem:[%s3686_s1 + $0x90] sm:$0xff]  ;;  %v34_v48 = vld [vmem:[%s3686_s1 + $0x88] sm:$0xff]  ;;  %v49_v49 = vld [vmem:[%s3686_s1 + $0x100] sm:$0xff]  ;;  %v2931_v62 = vsel %vm180_vm1, %v2599_v56, %v179_v61 }
  0x11   :  { %73 = vmatpush.msra.mxu0 %v25_v25  ;;  %v17_v50 = vld [vmem:[%s3686_s1] sm:$0xff]  ;;  %v16_v51 = vld [vmem:[%s3687_s0 + $0x10] sm:$0xff]  ;;  %v15_v54 = vld [vmem:[%s3687_s0 + $0x8] sm:$0xff] }
  0x12   :  { %93 = vmatpush.msra.mxu1 %v41_v26  ;;  %114 = vmatpush.msra.mxu2 %v56_v28  ;;  %v14_v52 = vld [vmem:[%s3687_s0] sm:$0xff] }
  0x13   :  { %74 = vmatpush.msra.mxu0 %v24_v29  ;;  %v33_v53 = vld [vmem:[%s3686_s1 + $0x80] sm:$0xff] }
  0x14   :  { %94 = vmatpush.msra.mxu1 %v40_v30  ;;  %115 = vmatpush.msra.mxu2 %v55_v31  ;;  %v65_v4 = vld [vmem:[%s3688_s2 + $0xc0] ss:$0 sm:$0xff] }
  0x15   :  { %75 = vmatpush.msra.mxu0 %v23_v32  ;;  %v126_v11 = vld [vmem:[%s3686_s1 + $0x180] sm:$0xff] }
  0x16   :  { %95 = vmatpush.msra.mxu1 %v39_v33  ;;  %116 = vmatpush.msra.mxu2 %v54_v34 }
  0x17   :  { %76 = vmatpush.msra.mxu0 %v22_v35 }
  0x18   :  { %96 = vmatpush.msra.mxu1 %v38_v36  ;;  %117 = vmatpush.msra.mxu2 %v53_v37 }
  0x19   :  { %77 = vmatpush.msra.mxu0 %v21_v38 }
  0x1a   :  { %97 = vmatpush.msra.mxu1 %v37_v39  ;;  %118 = vmatpush.msra.mxu2 %v52_v40 }
  0x1b   :  { %78 = vmatpush.msra.mxu0 %v20_v41 }
  0x1c   :  { %98 = vmatpush.msra.mxu1 %v36_v42  ;;  %119 = vmatpush.msra.mxu2 %v51_v43 }
  0x1d   :  { %79 = vmatpush.msra.mxu0 %v19_v44 }
  0x1e   :  { %99 = vmatpush.msra.mxu1 %v35_v45  ;;  %120 = vmatpush.msra.mxu2 %v50_v46  ;;  %v163_v45 = vld [vmem:[%s3688_s2 + $0xc1] ss:$0 sm:$0xff] }
  0x1f   :  { %80 = vmatpush.msra.mxu0 %v18_v47  ;;  %v164_v47 = vld [vmem:[%s3688_s2 + $0xc2] ss:$0 sm:$0xff] }
  0x20   :  { %100 = vmatpush.msra.mxu1 %v34_v48  ;;  %121 = vmatpush.msra.mxu2 %v49_v49 }
  0x21   :  { %81 = vmatpush.msra.mxu0 %v17_v50  ;;  %122 = vmatmul.f32.vlgmr.msra.gmra.mxu2 %v16_v51 }
  0x22   :  { %82 = vmatmul.f32.vlgmr.msra.gmra.mxu0 %v14_v52  ;;  %101 = vmatpush.msra.mxu1 %v33_v53  ;;  %v257_v52 = vld [vmem:[%s3686_s1 + $0x1f8] sm:$0xff] }
  0x23   :  { %102 = vmatmul.f32.vlgmr.msra.gmra.mxu1 %v15_v54  ;;  %v2743_v54 = vmov 0  }
  0x24   :  { %2595 = vset.pattern.permute.xlu0 %v2743_v54  ;;  %2596 = vset.pattern.permute.xlu1 %v2743_v54 }
  0x25   :  { %271 = vperm.xlu0 %2595, %v257_v52  }
  0x7a   :  { %v174_v60 = vpop.xlane.xlu0 %173 }
  0x7b   :  { %v184_v9 = vmul.f32 %v2931_v62, %v174_v60 }
  0x7d   :  { %v187_v14 = vsub.f32 %v2803_v12, %v184_v9 }
  0x7f   :  { %v190_v17 = vmul.f32 %v187_v14, %v187_v14 }
  0x81   :  { %v197_v18 = vsel %vm165_vm0, %v190_v17, 0.0 }
  0x82   :  { %v171_v63 = vpop.xlane.xlu0 %170 }
  0x83   :  { %v183_v0 = vmul.f32 %v2931_v62, %v171_v63 }
  0x85   :  { %v186_v1 = vsub.f32 %v2834_v22, %v183_v0 }
  0x87   :  { %v189_v2 = vmul.f32 %v186_v1, %v186_v1 }
  0x89   :  { %v194_v3 = vsel %vm165_vm0, %v189_v2, 0.0 }
  0x8a   :  { %195 = vadd.xlane.f32.xlu2 %v194_v3  ;;  %v245_v3 = vld [vmem:[%s3686_s1 + $0x198] sm:$0xff] }
  0x97   :  { %v272_v9 = vpop.permute.xlu0 %271 }
  0x9f   :  { %v83_v5 = vpop.f32.mrf.mxu0 }
  0xa0   :  { %v84_v6 = vadd.f32 %v83_v5, %v65_v4  ;;  %v103_v7 = vpop.f32.mrf.mxu1  ;;  %v246_v4 = vld [vmem:[%s3686_s1 + $0x1a0] sm:$0xff]  ;;  %v247_v5 = vld [vmem:[%s3686_s1 + $0x1a8] sm:$0xff] }
  0xa2   :  { %v104_v8 = vadd.f32 %v103_v7, %v84_v6  ;;  %v261_v6 = vld [vmem:[%s3686_s1 + $0x218] sm:$0xff]  ;;  %v248_v7 = vld [vmem:[%s3686_s1 + $0x1b0] sm:$0xff] }
  0xa4   :  { %v123_v10 = vpop.f32.mrf.mxu2 }
  0xa5   :  { %v124_v13 = vadd.f32 %v123_v10, %v104_v8  ;;  %v249_v8 = vld [vmem:[%s3686_s1 + $0x1b8] sm:$0xff] }
  0xa7   :  { %v2944_v15 = vadd.f32 %v126_v11, %v124_v13 }
  0xa9   :  { %v166_v16 = vsel %vm165_vm0, %v2944_v15, 0.0 }
  0xaa   :  { %167 = vadd.xlane.f32.xlu1 %v166_v16 }
  0xb2   :  { %198 = vadd.xlane.f32.xlu1 %v197_v18 }
  0xcb   :  { %291 = vperm.xlu1 %2596, %v261_v6  }
  0xfd   :  { %v196_v19 = vpop.xlane.xlu2 %195 }
  0xfe   :  { %v201_v20 = vmul.f32 %v196_v19, %v2931_v62 }
 0x100   :  { %v204_v21 = vadd.f32 1e-06, %v201_v20 }
 0x102   :  { %2600 = vrsqrt.f32 %v204_v21  ;;  %vm222_vm2 = vweird.f32 %v204_v21 }
 0x108   :  { %v2601_v24 = vpop.eup %2600 }
 0x109   :  { %v217_v27 = vmul.f32 %v2601_v24, %v204_v21  ;;  %vm223_vm3 = vweird.f32 %v2601_v24 }
 0x10a   :  { %vm224_vm6 = vmor %vm222_vm2, %vm223_vm3  ;;  %vm498_vm2 = vcmask 195584  }
 0x10b   :  { %v218_v31 = vmul.f32 %v2601_v24, %v217_v27 }
 0x10d   :  { %v219_v32 = vmul.f32 0.5, %v218_v31 }
 0x10f   :  { %v220_v34 = vsub.f32 1.5, %v219_v32 }
 0x111   :  { %v221_v37 = vmul.f32 %v2601_v24, %v220_v34 }
 0x113   :  { %v225_v40 = vsel %vm224_vm6, %v2601_v24, %v221_v37 }
 0x114   :  { %v237_v44 = vmul.f32 %v225_v40, %v186_v1  ;;  %v262_v40 = vld [vmem:[%s3686_s1 + $0x220] sm:$0xff] }
 0x116   :  { %v240_v49 = vmul.f32 %v237_v44, %v163_v45  ;;  %v253_v44 = vld [vmem:[%s3686_s1 + $0x1d8] sm:$0xff] }
 0x118   :  { %v243_v50 = vadd.f32 %v240_v49, %v164_v47 }
 0x11d   :  { %v168_v22 = vpop.xlane.xlu1 %167 }
 0x11e   :  { %v182_v23 = vmul.f32 %v2931_v62, %v168_v22 }
 0x120   :  { %v185_v12 = vsub.f32 %v2944_v15, %v182_v23  ;;  %v250_v23 = vld [vmem:[%s3686_s1 + $0x1c0] sm:$0xff] }
 0x122   :  { %v188_v25 = vmul.f32 %v185_v12, %v185_v12 }
 0x124   :  { %v191_v26 = vsel %vm165_vm0, %v188_v25, 0.0 }
 0x125   :  { %192 = vadd.xlane.f32.xlu2 %v191_v26  ;;  %v199_v28 = vpop.xlane.xlu1 %198 }
 0x126   :  { %v202_v29 = vmul.f32 %v199_v28, %v2931_v62 }
 0x128   :  { %v205_v30 = vadd.f32 1e-06, %v202_v29 }
 0x12a   :  { %2602 = vrsqrt.f32 %v205_v30  ;;  %vm232_vm4 = vweird.f32 %v205_v30 }
 0x130   :  { %v2603_v33 = vpop.eup %2602 }
 0x131   :  { %v227_v35 = vmul.f32 %v2603_v33, %v205_v30  ;;  %vm233_vm5 = vweird.f32 %v2603_v33 }
 0x132   :  { %vm234_vm7 = vmor %vm232_vm4, %vm233_vm5 }
 0x133   :  { %v228_v36 = vmul.f32 %v2603_v33, %v227_v35 }
 0x135   :  { %v229_v38 = vmul.f32 0.5, %v228_v36 }
 0x137   :  { %v230_v39 = vsub.f32 1.5, %v229_v38 }
 0x139   :  { %v231_v41 = vmul.f32 %v2603_v33, %v230_v39 }
 0x13b   :  { %v235_v42 = vsel %vm234_vm7, %v2603_v33, %v231_v41  ;;  %v258_v41 = vld [vmem:[%s3686_s1 + $0x200] sm:$0xff] }
 0x13c   :  { %v238_v43 = vmul.f32 %v235_v42, %v187_v14  ;;  %v251_v42 = vld [vmem:[%s3686_s1 + $0x1c8] sm:$0xff] }
 0x13d   :  { %v292_v17 = vpop.permute.xlu1 %291 }
 0x13e   :  { %v241_v46 = vmul.f32 %v238_v43, %v163_v45  ;;  %v252_v43 = vld [vmem:[%s3686_s1 + $0x1d0] sm:$0xff] }
 0x140   :  { %v244_v48 = vadd.f32 %v241_v46, %v164_v47 }
 0x142   :  { %2482 = vmatpush.xpose.msk.msra.mxu3 %vm165_vm0, %v244_v48 }
 0x146   :  { %2483 = vmatpush.xpose.msk.msra.mxu3 %vm165_vm0, %v243_v50 }
 0x198   :  { %v193_v51 = vpop.xlane.xlu2 %192 }
 0x199   :  { %v200_v53 = vmul.f32 %v193_v51, %v2931_v62 }
 0x19b   :  { %v203_v55 = vadd.f32 1e-06, %v200_v53 }
 0x19d   :  { %2604 = vrsqrt.f32 %v203_v55  ;;  %vm212_vm9 = vweird.f32 %v203_v55 }
 0x1a3   :  { %v2605_v56 = vpop.eup %2604 }
 0x1a4   :  { %v207_v57 = vmul.f32 %v2605_v56, %v203_v55  ;;  %vm213_vm8 = vweird.f32 %v2605_v56 }
 0x1a5   :  { %vm214_vm10 = vmor %vm212_vm9, %vm213_vm8 }
 0x1a6   :  { %v208_v58 = vmul.f32 %v2605_v56, %v207_v57 }
 0x1a8   :  { %v209_v59 = vmul.f32 0.5, %v208_v58 }
 0x1aa   :  { %v210_v60 = vsub.f32 1.5, %v209_v59 }
 0x1ac   :  { %v211_v61 = vmul.f32 %v2605_v56, %v210_v60 }
 0x1ae   :  { %v215_v63 = vsel %vm214_vm10, %v2605_v56, %v211_v61 }
 0x1af   :  { %v236_v0 = vmul.f32 %v215_v63, %v185_v12  ;;  %v130_v12 = vlaneseq }
 0x1b1   :  { %v239_v1 = vmul.f32 %v236_v0, %v163_v45  ;;  %v135_v24 = vand.u32 127, %v130_v12  ;;  %v131_v25 = vshrl.u32 %v130_v12, 7  ;;  %v265_v0 = vld [vmem:[%s3686_s1 + $0x238] sm:$0xff] }
 0x1b3   :  { %v242_v2 = vadd.f32 %v239_v1, %v164_v47  ;;  %vm154_vm12 = vcmp.ge.s32.totalorder %v135_v24, 4  ;;  %vm156_vm13 = vcmp.ge.s32.totalorder %v135_v24, 16  ;;  %vm136_vm14 = vcmp.ge.s32.totalorder %v131_v25, 4 }
 0x1b4   :  { %v155_v26 = vsel %vm154_vm12, 1, %v2743_v54  ;;  %v157_v27 = vsel %vm156_vm13, 1, %v2743_v54  ;;  %vm158_vm15 = vcmp.lt.s32.totalorder %v135_v24, 8  ;;  %v139_v28 = vsel %vm136_vm14, 1, %v2743_v54 }
 0x1b5   :  { %2484 = vmatpush.xpose.msk.msra.mxu3 %vm165_vm0, %v242_v2  ;;  %v3003_v29 = vsel %vm158_vm15, %v155_v26, %v157_v27  ;;  %vm1201_vm15 = vcmask 785408  }
 0x1b6   :  { %vm3006_vm1 = vcmp.eq.s32.totalorder %v139_v28, %v3003_v29  ;;  %vm2480_vm3 = vcmp.eq.s32.totalorder %v3003_v29, 0  ;;  %vm2481_vm4 = vcmp.eq.s32.totalorder %v3003_v29, 1 }
 0x1b8   :  { %2485 = vmatmul.msk.f32.vlgmr.msra.gmra.mxu3 %vm165_vm0, %v245_v3 }
 0x1c0   :  { %2486 = vmatmul.msk.f32.gmra.mxu3 %vm165_vm0, %v246_v4 }
 0x1c8   :  { %2487 = vmatmul.msk.f32.gmra.mxu3 %vm165_vm0, %v247_v5 }
 0x1d0   :  { %2488 = vmatmul.msk.f32.gmra.mxu3 %vm165_vm0, %v248_v7 }
 0x1d8   :  { %2489 = vmatmul.msk.f32.gmra.mxu3 %vm165_vm0, %v249_v8 }
 0x1e0   :  { %2490 = vmatmul.msk.f32.gmra.mxu3 %vm165_vm0, %v250_v23 }
 0x1e8   :  { %2491 = vmatmul.msk.f32.gmra.mxu3 %vm165_vm0, %v251_v42 }
 0x1f0   :  { %2492 = vmatmul.msk.f32.gmra.mxu3 %vm165_vm0, %v252_v43 }
 0x1f8   :  { %2493 = vmatmul.msk.f32.gmra.mxu3 %vm165_vm0, %v253_v44 }
 0x23b   :  { %v391_v10 = vpop.f32.mrf.mxu3 }
 0x23c   :  { %v392_v11 = vadd.f32 %v391_v10, %v272_v9 }
 0x23e   :  { %427 = vxpose.xlu2.b32.start.end [1/1] (short) (narrow) %v392_v11, 24 }
 0x243   :  { %v2990_v13 = vpop.f32.mrf.mxu3 }
 0x24b   :  { %v2992_v14 = vpop.f32.mrf.mxu3 }
 0x253   :  { %v2994_v16 = vpop.f32.mrf.mxu3 }
 0x25b   :  { %v403_v18 = vpop.f32.mrf.mxu3 }
 0x25c   :  { %v404_v19 = vadd.f32 %v403_v18, %v292_v17 }
 0x25e   :  { %484 = vmatpush.msrb.mxu0 %v404_v19 }
 0x263   :  { %v406_v58 = vpop.f32.mrf.mxu3 }
 0x26b   :  { %v409_v4 = vpop.f32.mrf.mxu3 }
 0x273   :  { %v3046_v7 = vpop.f32.mrf.mxu3 }
 0x2a0   :  { %2597 = vset.pattern.permute.xlu2 %v2743_v54 }
 0x2d7   :  { %v443_v20 = vpop.trf.xlu2 }
 0x2d8   :  { %2497 = vmatmul.msk.f32.vlgmr.msrb.gmra.mxu0 %vm459_vm11, %v443_v20 }
 0x2df   :  { %v444_v21 = vpop.trf.xlu2 }
 0x2e0   :  { %2498 = vmatmul.msk.f32.gmra.mxu0 %vm459_vm11, %v444_v21  ;;  %v259_v21 = vld [vmem:[%s3686_s1 + $0x208] sm:$0xff] }
 0x2e7   :  { %v445_v22 = vpop.trf.xlu2 }
 0x2e8   :  { %2499 = vmatmul.msk.f32.gmra.mxu0 %vm459_vm11, %v445_v22 }
 0x355   :  { %v486_v31 = vpop.f32.mrf.mxu0 }
 0x356   :  { %v495_v32 = vsel %vm3006_vm1, %v486_v31, -1e+30 }
 0x357   :  { %v499_v33 = vsel %vm498_vm2, %v495_v32, -inf }
 0x358   :  { %500 = vmax.xlane.f32.xlu2 %v499_v33  ;;  %v264_v33 = vld [vmem:[%s3686_s1 + $0x230] sm:$0xff] }
 0x35d   :  { %v489_v34 = vpop.f32.mrf.mxu0 }
 0x35e   :  { %v496_v35 = vsel %vm2480_vm3, %v489_v34, -1e+30 }
 0x35f   :  { %v502_v36 = vsel %vm498_vm2, %v496_v35, -inf }
 0x360   :  { %503 = vmax.xlane.f32.xlu0 %v502_v36 }
 0x365   :  { %v492_v37 = vpop.f32.mrf.mxu0 }
 0x366   :  { %v497_v38 = vsel %vm2481_vm4, %v492_v37, -1e+30 }
 0x367   :  { %v505_v39 = vsel %vm498_vm2, %v497_v38, -inf }
 0x368   :  { %506 = vmax.xlane.f32.xlu1 %v505_v39 }
 0x374   :  { %296 = vperm.xlu0 %2595, %v262_v40  }
 0x381   :  { %276 = vperm.xlu1 %2596, %v258_v41  }
 0x3cb   :  { %v501_v45 = vpop.xlane.xlu2 %500 }
 0x3cc   :  { %v508_v46 = vsub.f32 %v495_v32, %v501_v45  ;;  %v263_v32 = vld [vmem:[%s3686_s1 + $0x228] sm:$0xff] }
 0x3ce   :  { %v511_v47 = vmul.f32 1.442695, %v508_v46 }
 0x3d0   :  { %2606 = vpow2.f32 %v511_v47 }
 0x3d3   :  { %v504_v48 = vpop.xlane.xlu0 %503 }
 0x3d4   :  { %v509_v49 = vsub.f32 %v496_v35, %v504_v48 }
 0x3d6   :  { %v2607_v50 = vpop.eup %2606  ;;  %v513_v51 = vmul.f32 1.442695, %v509_v49 }
 0x3d7   :  { %v517_v52 = vsel %vm498_vm2, %v2607_v50, 0.0 }
 0x3d8   :  { %2608 = vpow2.f32 %v513_v51  ;;  %518 = vadd.xlane.f32.xlu0 %v517_v52  ;;  %v260_v51 = vld [vmem:[%s3686_s1 + $0x210] sm:$0xff]  ;;  %v266_v52 = vld [vmem:[%s3686_s1 + $0x240] sm:$0xff] }
 0x3db   :  { %v507_v53 = vpop.xlane.xlu1 %506 }
 0x3dc   :  { %v510_v54 = vsub.f32 %v497_v38, %v507_v53 }
 0x3de   :  { %v2609_v55 = vpop.eup %2608  ;;  %v515_v56 = vmul.f32 1.442695, %v510_v54 }
 0x3df   :  { %v520_v57 = vsel %vm498_vm2, %v2609_v55, 0.0 }
 0x3e0   :  { %2610 = vpow2.f32 %v515_v56  ;;  %521 = vadd.xlane.f32.xlu1 %v520_v57 }
 0x3e6   :  { %v2611_v59 = vpop.eup %2610  ;;  %v297_v60 = vpop.permute.xlu0 %296 }
 0x3e7   :  { %v407_v61 = vadd.f32 %v406_v58, %v297_v60  ;;  %v523_v63 = vsel %vm498_vm2, %v2611_v59, 0.0 }
 0x3e8   :  { %524 = vadd.xlane.f32.xlu0 %v523_v63 }
 0x3e9   :  { %2591 = vmatpush.msrb.mxu2 %v407_v61 }
 0x3f3   :  { %v277_v1 = vpop.permute.xlu1 %276 }
 0x3f4   :  { %v395_v2 = vadd.f32 %v2990_v13, %v277_v1  ;;  %v415_v13 = vpop.f32.mrf.mxu3 }
 0x3f9   :  { %311 = vperm.xlu1 %2596, %v265_v0  }
 0x411   :  { %564 = vxpose.xlu0.b32.start.end [1/1] (short) (narrow) %v395_v2, 24 }
 0x44b   :  { %v519_v3 = vpop.xlane.xlu0 %518 }
 0x453   :  { %v522_v5 = vpop.xlane.xlu1 %521 }
 0x45b   :  { %v525_v6 = vpop.xlane.xlu0 %524 }
 0x45c   :  { %2612 = vrcp.f32 %v525_v6 }
 0x45d   :  { %2614 = vrcp.f32 %v522_v5 }
 0x45e   :  { %2616 = vrcp.f32 %v519_v3 }
 0x462   :  { %v2613_v8 = vpop.eup %2612 }
 0x463   :  { %v531_v9 = vmul.f32 %v2613_v8, %v2611_v59  ;;  %v2615_v10 = vpop.eup %2614 }
 0x464   :  { %v530_v11 = vmul.f32 %v2615_v10, %v2609_v55  ;;  %v2617_v17 = vpop.eup %2616 }
 0x465   :  { %2500 = vmatpush.xpose.msk.msrb.mxu1 %vm498_vm2, %v531_v9  ;;  %v529_v19 = vmul.f32 %v2617_v17, %v2607_v50  ;;  %v254_v50 = vld [vmem:[%s3686_s1 + $0x1e0] sm:$0xff] }
 0x466   :  { %2494 = vmatmul.msk.f32.gmra.mxu3 %vm165_vm0, %v254_v50 }
 0x469   :  { %2501 = vmatpush.xpose.msk.msrb.mxu1 %vm498_vm2, %v530_v11 }
 0x46b   :  { %v312_v18 = vpop.permute.xlu1 %311 }
 0x46c   :  { %v416_v20 = vadd.f32 %v415_v13, %v312_v18 }
 0x46d   :  { %2502 = vmatpush.xpose.msk.msrb.mxu1 %vm498_vm2, %v529_v19 }
 0x470   :  { %2503 = vmatmul.msk.f32.vlgmr.msrb.gmra.mxu1 %vm498_vm2, %v416_v20 }
 0x471   :  { %620 = vmatpush.msra.mxu1 %v407_v61 }
 0x48f   :  { %281 = vperm.xlu0 %2595, %v259_v21  }
 0x4b5   :  { %v580_v22 = vpop.trf.xlu0 }
 0x4b6   :  { %2504 = vmatmul.msk.f32.vlgmr.msra.gmra.mxu1 %vm459_vm11, %v580_v22 }
 0x4bd   :  { %v581_v23 = vpop.trf.xlu0 }
 0x4be   :  { %2505 = vmatmul.msk.f32.vlgmr.msrb.gmra.mxu2 %vm459_vm11, %v581_v23 }
 0x4c5   :  { %v582_v12 = vpop.trf.xlu0 }
 0x4c6   :  { %2506 = vmatmul.msk.f32.gmra.mxu2 %vm459_vm11, %v582_v12 }
 0x4e9   :  { %v418_v17 = vpop.f32.mrf.mxu3 }
 0x4ed   :  { %v3070_v37 = vpop.f32.mrf.mxu1 }
 0x501   :  { %v282_v53 = vpop.permute.xlu0 %281 }
 0x502   :  { %v398_v54 = vadd.f32 %v2992_v14, %v282_v53 }
 0x533   :  { %v622_v42 = vpop.f32.mrf.mxu1 }
 0x534   :  { %v631_v44 = vsel %vm3006_vm1, %v622_v42, -1e+30 }
 0x535   :  { %v634_v45 = vsel %vm498_vm2, %v631_v44, -inf }
 0x541   :  { %v625_v24 = vpop.f32.mrf.mxu2 }
 0x542   :  { %v632_v25 = vsel %vm2480_vm3, %v625_v24, -1e+30 }
 0x543   :  { %v637_v26 = vsel %vm498_vm2, %v632_v25, -inf }
 0x544   :  { %638 = vmax.xlane.f32.xlu2 %v637_v26 }
 0x549   :  { %v628_v27 = vpop.f32.mrf.mxu2 }
 0x54a   :  { %v633_v28 = vsel %vm2481_vm4, %v628_v27, -1e+30 }
 0x54b   :  { %v640_v31 = vsel %vm498_vm2, %v633_v28, -inf }
 0x54c   :  { %641 = vmax.xlane.f32.xlu1 %v640_v31 }
 0x565   :  { %301 = vperm.xlu1 %2596, %v263_v32  }
 0x56d   :  { %306 = vperm.xlu1 %2596, %v264_v33  }
 0x5b7   :  { %v639_v38 = vpop.xlane.xlu2 %638 }
 0x5b8   :  { %v644_v40 = vsub.f32 %v632_v25, %v639_v38 }
 0x5ba   :  { %v648_v43 = vmul.f32 1.442695, %v644_v40 }
 0x5bf   :  { %v642_v34 = vpop.xlane.xlu1 %641 }
 0x5c0   :  { %v645_v35 = vsub.f32 %v633_v28, %v642_v34 }
 0x5c2   :  { %v650_v36 = vmul.f32 1.442695, %v645_v35 }
 0x5c4   :  { %2618 = vpow2.f32 %v650_v36 }
 0x5c5   :  { %2620 = vpow2.f32 %v648_v43 }
 0x5ca   :  { %v2619_v39 = vpop.eup %2618 }
 0x5cb   :  { %v658_v41 = vsel %vm498_vm2, %v2619_v39, 0.0  ;;  %v2621_v47 = vpop.eup %2620 }
 0x5cc   :  { %659 = vadd.xlane.f32.xlu2 %v658_v41  ;;  %v655_v49 = vsel %vm498_vm2, %v2621_v47, 0.0 }
 0x5d4   :  { %635 = vmax.xlane.f32.xlu2 %v634_v45 }
 0x5d7   :  { %v302_v46 = vpop.permute.xlu1 %301 }
 0x5d8   :  { %v410_v48 = vadd.f32 %v409_v4, %v302_v46 }
 0x5da   :  { %755 = vmatpush.msra.mxu0 %v410_v48 }
 0x5dc   :  { %656 = vadd.xlane.f32.xlu2 %v655_v49 }
 0x5df   :  { %v307_v6 = vpop.permute.xlu1 %306 }
 0x5e0   :  { %v413_v18 = vadd.f32 %v3046_v7, %v307_v6 }
 0x5f4   :  { %286 = vperm.xlu2 %2597, %v260_v51  }
 0x5fc   :  { %316 = vperm.xlu2 %2597, %v266_v52  }
 0x622   :  { %699 = vxpose.xlu2.b32.start.end [1/1] (short) (narrow) %v398_v54, 24 }
 0x63f   :  { %v660_v55 = vpop.xlane.xlu2 %659 }
 0x640   :  { %2622 = vrcp.f32 %v660_v55 }
 0x646   :  { %v2623_v56 = vpop.eup %2622 }
 0x647   :  { %v666_v57 = vmul.f32 %v2623_v56, %v2619_v39  ;;  %v636_v58 = vpop.xlane.xlu2 %635 }
 0x648   :  { %v643_v59 = vsub.f32 %v631_v44, %v636_v58  ;;  %v256_v58 = vld [vmem:[%s3686_s1 + $0x1f0] sm:$0xff] }
 0x649   :  { %2507 = vmatpush.xpose.msk.msrb.mxu1 %vm498_vm2, %v666_v57  ;;  %v255_v57 = vld [vmem:[%s3686_s1 + $0x1e8] sm:$0xff] }
 0x64a   :  { %v646_v60 = vmul.f32 1.442695, %v643_v59  ;;  %2495 = vmatmul.msk.f32.gmra.mxu3 %vm165_vm0, %v255_v57 }
 0x64c   :  { %2624 = vpow2.f32 %v646_v60 }
 0x64f   :  { %v657_v61 = vpop.xlane.xlu2 %656 }
 0x650   :  { %2626 = vrcp.f32 %v657_v61 }
 0x652   :  { %v2625_v63 = vpop.eup %2624  ;;  %2496 = vmatmul.msk.f32.gmra.mxu3 %vm165_vm0, %v256_v58 }
 0x653   :  { %v652_v0 = vsel %vm498_vm2, %v2625_v63, 0.0 }
 0x654   :  { %653 = vadd.xlane.f32.xlu1 %v652_v0 }
 0x656   :  { %v2627_v1 = vpop.eup %2626 }
 0x657   :  { %v665_v2 = vmul.f32 %v2627_v1, %v2621_v47  ;;  %v287_v14 = vpop.permute.xlu2 %286 }
 0x658   :  { %v401_v3 = vadd.f32 %v2994_v16, %v287_v14 }
 0x659   :  { %2508 = vmatpush.xpose.msk.msrb.mxu1 %vm498_vm2, %v665_v2 }
 0x65f   :  { %v317_v4 = vpop.permute.xlu2 %316 }
 0x660   :  { %v419_v16 = vadd.f32 %v418_v17, %v317_v4 }
 0x68e   :  { %834 = vxpose.xlu1.b32.start.end [1/1] (short) (narrow) %v401_v3, 24 }
 0x6bb   :  { %v715_v5 = vpop.trf.xlu2 }
 0x6bc   :  { %2511 = vmatmul.msk.f32.vlgmr.msra.gmra.mxu0 %vm459_vm11, %v715_v5 }
 0x6c3   :  { %v716_v8 = vpop.trf.xlu2 }
 0x6c4   :  { %2512 = vmatmul.msk.f32.gmra.mxu0 %vm459_vm11, %v716_v8 }
 0x6c7   :  { %v654_v9 = vpop.xlane.xlu1 %653 }
 0x6c8   :  { %2628 = vrcp.f32 %v654_v9 }
 0x6cb   :  { %v717_v10 = vpop.trf.xlu2 }
 0x6cc   :  { %2513 = vmatmul.msk.f32.gmra.mxu0 %vm459_vm11, %v717_v10 }
 0x6ce   :  { %v2629_v11 = vpop.eup %2628 }
 0x6cf   :  { %v664_v13 = vmul.f32 %v2629_v11, %v2625_v63 }
 0x6d1   :  { %2509 = vmatpush.xpose.msk.msrb.mxu1 %vm498_vm2, %v664_v13 }
 0x6d4   :  { %2510 = vmatmul.msk.f32.vlgmr.msrb.gmra.mxu1 %vm498_vm2, %v419_v16  ;;  %v268_v16 = vld [vmem:[%s3686_s1 + $0x250] sm:$0xff] }
 0x6d5   :  { %890 = vmatpush.msra.mxu1 %v413_v18 }
 0x732   :  { %v850_v19 = vpop.trf.xlu1 }
 0x733   :  { %2518 = vmatmul.msk.f32.vlgmr.msra.gmra.mxu1 %vm459_vm11, %v850_v19 }
 0x739   :  { %v757_v20 = vpop.f32.mrf.mxu0 }
 0x73a   :  { %v766_v21 = vsel %vm3006_vm1, %v757_v20, -1e+30  ;;  %v851_v22 = vpop.trf.xlu1 }
 0x73b   :  { %2519 = vmatmul.msk.f32.gmra.mxu1 %vm459_vm11, %v851_v22  ;;  %v769_v23 = vsel %vm498_vm2, %v766_v21, -inf  ;;  %v267_v22 = vld [vmem:[%s3686_s1 + $0x248] sm:$0xff] }
 0x73c   :  { %770 = vmax.xlane.f32.xlu0 %v769_v23 }
 0x741   :  { %v760_v7 = vpop.f32.mrf.mxu0 }
 0x742   :  { %v767_v12 = vsel %vm2480_vm3, %v760_v7, -1e+30  ;;  %v852_v24 = vpop.trf.xlu1 }
 0x743   :  { %2520 = vmatmul.msk.f32.gmra.mxu1 %vm459_vm11, %v852_v24  ;;  %v772_v25 = vsel %vm498_vm2, %v767_v12, -inf }
 0x744   :  { %773 = vmax.xlane.f32.xlu1 %v772_v25  ;;  %v421_v25 = vpop.f32.mrf.mxu3 }
 0x749   :  { %v763_v26 = vpop.f32.mrf.mxu0 }
 0x74a   :  { %v768_v27 = vsel %vm2481_vm4, %v763_v26, -1e+30 }
 0x74b   :  { %v775_v28 = vsel %vm498_vm2, %v768_v27, -inf }
 0x74c   :  { %776 = vmax.xlane.f32.xlu2 %v775_v28 }
 0x751   :  { %v3110_v31 = vpop.f32.mrf.mxu1 }
 0x7af   :  { %v771_v48 = vpop.xlane.xlu0 %770 }
 0x7b0   :  { %v892_v32 = vpop.f32.mrf.mxu1  ;;  %v778_v50 = vsub.f32 %v766_v21, %v771_v48 }
 0x7b1   :  { %v901_v44 = vsel %vm3006_vm1, %v892_v32, -1e+30 }
 0x7b2   :  { %v904_v46 = vsel %vm498_vm2, %v901_v44, -inf  ;;  %v781_v52 = vmul.f32 1.442695, %v778_v50  ;;  %v1043_v50 = vld [vmem:[%s3688_s2 + $0xc3] ss:$0 sm:$0xff] }
 0x7b7   :  { %v774_v43 = vpop.xlane.xlu1 %773 }
 0x7b8   :  { %v895_v33 = vpop.f32.mrf.mxu1  ;;  %v779_v45 = vsub.f32 %v767_v12, %v774_v43  ;;  %v969_v43 = vld [vmem:[%s3686_s1 + $0x258] sm:$0xff] }
 0x7b9   :  { %v902_v34 = vsel %vm2480_vm3, %v895_v33, -1e+30 }
 0x7ba   :  { %v907_v35 = vsel %vm498_vm2, %v902_v34, -inf  ;;  %v783_v47 = vmul.f32 1.442695, %v779_v45 }
 0x7bb   :  { %908 = vmax.xlane.f32.xlu0 %v907_v35 }
 0x7bf   :  { %v777_v36 = vpop.xlane.xlu2 %776 }
 0x7c0   :  { %v898_v38 = vpop.f32.mrf.mxu1  ;;  %v780_v39 = vsub.f32 %v768_v27, %v777_v36 }
 0x7c1   :  { %v903_v40 = vsel %vm2481_vm4, %v898_v38, -1e+30 }
 0x7c2   :  { %v910_v41 = vsel %vm498_vm2, %v903_v40, -inf  ;;  %v785_v42 = vmul.f32 1.442695, %v780_v39 }
 0x7c3   :  { %911 = vmax.xlane.f32.xlu0 %v910_v41  ;;  %v971_v41 = vld [vmem:[%s3686_s1 + $0x268] sm:$0xff] }
 0x7c4   :  { %2630 = vpow2.f32 %v785_v42  ;;  %v970_v42 = vld [vmem:[%s3686_s1 + $0x260] sm:$0xff] }
 0x7c5   :  { %2632 = vpow2.f32 %v783_v47 }
 0x7c6   :  { %2634 = vpow2.f32 %v781_v52 }
 0x7ca   :  { %v2631_v49 = vpop.eup %2630 }
 0x7cb   :  { %905 = vmax.xlane.f32.xlu0 %v904_v46  ;;  %v793_v51 = vsel %vm498_vm2, %v2631_v49, 0.0  ;;  %v2633_v53 = vpop.eup %2632 }
 0x7cc   :  { %v790_v54 = vsel %vm498_vm2, %v2633_v53, 0.0  ;;  %v2635_v55 = vpop.eup %2634 }
 0x7cd   :  { %v787_v56 = vsel %vm498_vm2, %v2635_v55, 0.0 }
 0x7d3   :  { %794 = vadd.xlane.f32.xlu0 %v793_v51 }
 0x7db   :  { %791 = vadd.xlane.f32.xlu0 %v790_v54 }
 0x7e3   :  { %788 = vadd.xlane.f32.xlu0 %v787_v56 }
 0x82e   :  { %v909_v59 = vpop.xlane.xlu0 %908 }
 0x82f   :  { %v914_v60 = vsub.f32 %v902_v34, %v909_v59 }
 0x831   :  { %v918_v61 = vmul.f32 1.442695, %v914_v60 }
 0x833   :  { %2636 = vpow2.f32 %v918_v61 }
 0x836   :  { %v912_v63 = vpop.xlane.xlu0 %911 }
 0x837   :  { %v915_v0 = vsub.f32 %v903_v40, %v912_v63  ;;  %v972_v40 = vld [vmem:[%s3686_s1 + $0x270] sm:$0xff] }
 0x839   :  { %v2637_v1 = vpop.eup %2636  ;;  %v920_v2 = vmul.f32 1.442695, %v915_v0 }
 0x83a   :  { %v925_v14 = vsel %vm498_vm2, %v2637_v1, 0.0 }
 0x83b   :  { %2638 = vpow2.f32 %v920_v2  ;;  %926 = vadd.xlane.f32.xlu1 %v925_v14 }
 0x83e   :  { %v906_v3 = vpop.xlane.xlu0 %905 }
 0x83f   :  { %v913_v4 = vsub.f32 %v901_v44, %v906_v3 }
 0x841   :  { %v2639_v5 = vpop.eup %2638  ;;  %v916_v6 = vmul.f32 1.442695, %v913_v4 }
 0x842   :  { %v928_v8 = vsel %vm498_vm2, %v2639_v5, 0.0 }
 0x843   :  { %2640 = vpow2.f32 %v916_v6  ;;  %929 = vadd.xlane.f32.xlu2 %v928_v8 }
 0x846   :  { %v795_v9 = vpop.xlane.xlu0 %794 }
 0x847   :  { %2642 = vrcp.f32 %v795_v9 }
 0x849   :  { %v2641_v10 = vpop.eup %2640 }
 0x84a   :  { %v922_v11 = vsel %vm498_vm2, %v2641_v10, 0.0 }
 0x84b   :  { %923 = vadd.xlane.f32.xlu0 %v922_v11 }
 0x84d   :  { %v2643_v17 = vpop.eup %2642 }
 0x84e   :  { %v801_v13 = vmul.f32 %v2643_v17, %v2631_v49  ;;  %v792_v18 = vpop.xlane.xlu0 %791 }
 0x84f   :  { %2644 = vrcp.f32 %v792_v18 }
 0x850   :  { %2514 = vmatpush.xpose.msk.msra.mxu2 %vm498_vm2, %v801_v13 }
 0x854   :  { %326 = vperm.xlu1 %2596, %v268_v16   ;;  %v1124_v16 = vld [vmem:[%s3688_s2 + $0x30] sm:$0xff] }
 0x855   :  { %v2645_v19 = vpop.eup %2644  ;;  %1147 = vmatpush.msrb.mxu0 %v1124_v16 }
 0x856   :  { %v789_v20 = vpop.xlane.xlu0 %788  ;;  %v800_v21 = vmul.f32 %v2645_v19, %v2633_v53  ;;  %v1123_v19 = vld [vmem:[%s3688_s2 + $0x20] sm:$0xff] }
 0x857   :  { %2646 = vrcp.f32 %v789_v20  ;;  %1148 = vmatpush.msrb.mxu0 %v1123_v19  ;;  %v1122_v20 = vld [vmem:[%s3688_s2 + $0x10] sm:$0xff] }
 0x858   :  { %2515 = vmatpush.xpose.msk.msra.mxu2 %vm498_vm2, %v800_v21  ;;  %v1121_v21 = vld [vmem:[%s3688_s2] sm:$0xff] }
 0x859   :  { %1149 = vmatpush.msrb.mxu0 %v1122_v20 }
 0x85b   :  { %321 = vperm.xlu2 %2597, %v267_v22   ;;  %1150 = vmatpush.msrb.mxu0 %v1121_v21 }
 0x85d   :  { %v2647_v23 = vpop.eup %2646 }
 0x85e   :  { %v799_v7 = vmul.f32 %v2647_v23, %v2635_v55  ;;  %v2740_v55 = vld [vmem:[%s3686_s1 + $0x188] sm:$0xff] }
 0x860   :  { %2516 = vmatpush.xpose.msk.msra.mxu2 %vm498_vm2, %v799_v7 }
 0x874   :  { %973 = vxpose.xlu0.b32.start [1/4] (short) (narrow) %v3070_v37, 24 }
 0x87c   :  { %974 = vxpose.xlu0.b32.cont [2/4] (short) (narrow) %v3110_v31, 24  ;;  %v424_v31 = vpop.f32.mrf.mxu3 }
 0x8ae   :  { %v927_v12 = vpop.xlane.xlu1 %926 }
 0x8b6   :  { %v930_v24 = vpop.xlane.xlu2 %929 }
 0x8b7   :  { %2648 = vrcp.f32 %v930_v24 }
 0x8b8   :  { %2650 = vrcp.f32 %v927_v12 }
 0x8bd   :  { %v2649_v26 = vpop.eup %2648 }
 0x8be   :  { %v936_v27 = vmul.f32 %v2649_v26, %v2639_v5  ;;  %v322_v28 = vpop.permute.xlu2 %321  ;;  %v924_v32 = vpop.xlane.xlu0 %923 }
 0x8bf   :  { %v2651_v33 = vpop.eup %2650  ;;  %v422_v34 = vadd.f32 %v421_v25, %v322_v28  ;;  %2652 = vrcp.f32 %v924_v32 }
 0x8c0   :  { %2521 = vmatpush.xpose.msk.msrb.mxu2 %vm498_vm2, %v936_v27  ;;  %v935_v35 = vmul.f32 %v2651_v33, %v2637_v1 }
 0x8c1   :  { %2517 = vmatmul.msk.f32.vlgmr.msra.gmra.mxu2 %vm498_vm2, %v422_v34 }
 0x8c4   :  { %2522 = vmatpush.xpose.msk.msrb.mxu2 %vm498_vm2, %v935_v35 }
 0x8c5   :  { %v2653_v37 = vpop.eup %2652 }
 0x8c6   :  { %v327_v36 = vpop.permute.xlu1 %326  ;;  %v934_v38 = vmul.f32 %v2653_v37, %v2641_v10 }
 0x8c7   :  { %v425_v39 = vadd.f32 %v424_v31, %v327_v36 }
 0x8c8   :  { %2523 = vmatpush.xpose.msk.msrb.mxu2 %vm498_vm2, %v934_v38 }
 0x8cb   :  { %2524 = vmatmul.msk.f32.vlgmr.msrb.gmra.mxu2 %vm498_vm2, %v425_v39  ;;  %v1047_v39 = vld [vmem:[%s3688_s2 + $0xc4] ss:$0 sm:$0xff] }
 0x8cc   :  { %1026 = vmatpush.msra.mxu2 %v972_v40 }
 0x8ce   :  { %1027 = vmatpush.msra.mxu2 %v971_v41 }
 0x8d0   :  { %1028 = vmatpush.msra.mxu2 %v970_v42 }
 0x8d2   :  { %1029 = vmatpush.msra.mxu2 %v969_v43 }
 0x944   :  { %v831_v44 = vpop.f32.mrf.mxu2 }
 0x945   :  { %975 = vxpose.xlu0.b32.cont [3/4] (short) (narrow) %v831_v44, 24  ;;  %v1048_v44 = vld [vmem:[%s3688_s2 + $0xc5] ss:$0 sm:$0xff] }
 0x94e   :  { %v966_v45 = vpop.f32.mrf.mxu2 }
 0x94f   :  { %976 = vxpose.xlu0.b32.end [4/4] (short) (narrow) %v966_v45, 24 }
 0x9db   :  { %v989_v46 = vpop.trf.xlu0 }
 0x9dc   :  { %2525 = vmatmul.msk.f32.vlgmr.msra.gmra.mxu2 %vm165_vm0, %v989_v46 }
 0x9e3   :  { %v990_v47 = vpop.trf.xlu0 }
 0x9e4   :  { %2526 = vmatmul.msk.f32.gmra.mxu2 %vm165_vm0, %v990_v47 }
 0x9eb   :  { %v991_v48 = vpop.trf.xlu0 }
 0x9ec   :  { %2527 = vmatmul.msk.f32.gmra.mxu2 %vm165_vm0, %v991_v48 }
 0xa5f   :  { %v1031_v49 = vpop.f32.mrf.mxu2 }
 0xa60   :  { %v1040_v51 = vadd.f32 %v1031_v49, %v2944_v15  ;;  %v2741_v15 = vld [vmem:[%s3686_s1 + $0x190] sm:$0xff] }
 0xa62   :  { %v3170_v52 = vadd.f32 %v1043_v50, %v1040_v51 }
 0xa64   :  { %v1049_v53 = vsel %vm165_vm0, %v3170_v52, 0.0 }
 0xa65   :  { %1050 = vadd.xlane.f32.xlu2 %v1049_v53 }
 0xa67   :  { %v1034_v54 = vpop.f32.mrf.mxu2 }
 0xa68   :  { %v1041_v56 = vadd.f32 %v2740_v55, %v1034_v54 }
 0xa6a   :  { %v3177_v57 = vadd.f32 %v1043_v50, %v1041_v56 }
 0xa6c   :  { %v1052_v58 = vsel %vm165_vm0, %v3177_v57, 0.0 }
 0xa6d   :  { %1053 = vadd.xlane.f32.xlu1 %v1052_v58 }
 0xa6f   :  { %v1037_v59 = vpop.f32.mrf.mxu2 }
 0xa70   :  { %v1042_v60 = vadd.f32 %v2741_v15, %v1037_v59 }
 0xa72   :  { %v3184_v61 = vadd.f32 %v1043_v50, %v1042_v60 }
 0xa74   :  { %v1055_v63 = vsel %vm165_vm0, %v3184_v61, 0.0 }
 0xa75   :  { %1056 = vadd.xlane.f32.xlu2 %v1055_v63 }
 0xad8   :  { %v1051_v0 = vpop.xlane.xlu2 %1050 }
 0xad9   :  { %v1058_v1 = vmul.f32 %v1051_v0, %v2931_v62 }
 0xadb   :  { %v1061_v2 = vsub.f32 %v3170_v52, %v1058_v1 }
 0xadd   :  { %v1064_v14 = vmul.f32 %v1061_v2, %v1061_v2 }
 0xadf   :  { %v1067_v3 = vsel %vm165_vm0, %v1064_v14, 0.0  ;;  %v1198_v14 = vld [vmem:[%s3686_s1 + $0x2c8] sm:$0xff] }
 0xae0   :  { %1068 = vadd.xlane.f32.xlu0 %v1067_v3  ;;  %v1054_v4 = vpop.xlane.xlu1 %1053  ;;  %v1197_v3 = vld [vmem:[%s3686_s1 + $0x2c0] sm:$0xff] }
 0xae1   :  { %v1059_v5 = vmul.f32 %v1054_v4, %v2931_v62  ;;  %v1196_v4 = vld [vmem:[%s3686_s1 + $0x2b8] sm:$0xff] }
 0xae3   :  { %v1062_v6 = vsub.f32 %v3177_v57, %v1059_v5  ;;  %v1195_v5 = vld [vmem:[%s3686_s1 + $0x2b0] sm:$0xff] }
 0xae5   :  { %v1065_v8 = vmul.f32 %v1062_v6, %v1062_v6 }
 0xae7   :  { %v1070_v9 = vsel %vm165_vm0, %v1065_v8, 0.0  ;;  %v1193_v8 = vld [vmem:[%s3686_s1 + $0x2a0] sm:$0xff] }
 0xae8   :  { %1071 = vadd.xlane.f32.xlu1 %v1070_v9  ;;  %v1057_v10 = vpop.xlane.xlu2 %1056  ;;  %v1192_v9 = vld [vmem:[%s3686_s1 + $0x298] sm:$0xff] }
 0xae9   :  { %v1060_v11 = vmul.f32 %v1057_v10, %v2931_v62  ;;  %v1191_v10 = vld [vmem:[%s3686_s1 + $0x290] sm:$0xff] }
 0xaeb   :  { %v3196_v17 = vsub.f32 %v3184_v61, %v1060_v11  ;;  %v1190_v11 = vld [vmem:[%s3686_s1 + $0x288] sm:$0xff] }
 0xaed   :  { %v1066_v13 = vmul.f32 %v3196_v17, %v3196_v17 }
 0xaef   :  { %v1073_v18 = vsel %vm165_vm0, %v1066_v13, 0.0  ;;  %v1188_v13 = vld [vmem:[%s3686_s1 + $0x278] sm:$0xff] }
 0xaf0   :  { %1074 = vadd.xlane.f32.xlu2 %v1073_v18  ;;  %v1125_v18 = vld [vmem:[%s3688_s2 + $0xc6] ss:$0 sm:$0xff] }
 0xb53   :  { %v1069_v22 = vpop.xlane.xlu0 %1068 }
 0xb54   :  { %v1076_v23 = vmul.f32 %v1069_v22, %v2931_v62 }
 0xb56   :  { %v1079_v7 = vadd.f32 1e-06, %v1076_v23 }
 0xb58   :  { %2654 = vrsqrt.f32 %v1079_v7  ;;  %vm1088_vm6 = vweird.f32 %v1079_v7 }
 0xb5b   :  { %v1072_v12 = vpop.xlane.xlu1 %1071 }
 0xb5c   :  { %v1077_v24 = vmul.f32 %v1072_v12, %v2931_v62 }
 0xb5e   :  { %v2655_v25 = vpop.eup %2654  ;;  %v1080_v26 = vadd.f32 1e-06, %v1077_v24 }
 0xb5f   :  { %v1083_v27 = vmul.f32 %v2655_v25, %v1079_v7  ;;  %vm1089_vm5 = vweird.f32 %v2655_v25 }
 0xb60   :  { %2656 = vrsqrt.f32 %v1080_v26  ;;  %vm1090_vm7 = vmor %vm1088_vm6, %vm1089_vm5  ;;  %vm1098_vm9 = vweird.f32 %v1080_v26 }
 0xb61   :  { %v1084_v28 = vmul.f32 %v2655_v25, %v1083_v27 }
 0xb63   :  { %v1085_v32 = vmul.f32 0.5, %v1084_v28  ;;  %v1075_v33 = vpop.xlane.xlu2 %1074 }
 0xb64   :  { %v1078_v34 = vmul.f32 %v1075_v33, %v2931_v62 }
 0xb65   :  { %v1086_v35 = vsub.f32 1.5, %v1085_v32 }
 0xb66   :  { %v2657_v37 = vpop.eup %2656  ;;  %v1081_v31 = vadd.f32 1e-06, %v1078_v34 }
 0xb67   :  { %v1087_v36 = vmul.f32 %v2655_v25, %v1086_v35  ;;  %v1093_v38 = vmul.f32 %v2657_v37, %v1080_v26  ;;  %vm1099_vm8 = vweird.f32 %v2657_v37 }
 0xb68   :  { %2658 = vrsqrt.f32 %v1081_v31  ;;  %vm1100_vm10 = vmor %vm1098_vm9, %vm1099_vm8  ;;  %vm1108_vm13 = vweird.f32 %v1081_v31 }
 0xb69   :  { %v1091_v40 = vsel %vm1090_vm7, %v2655_v25, %v1087_v36  ;;  %v1094_v41 = vmul.f32 %v2657_v37, %v1093_v38 }
 0xb6a   :  { %v1112_v42 = vmul.f32 %v1091_v40, %v1061_v2  ;;  %v1199_v2 = vld [vmem:[%s3686_s1 + $0x2d0] sm:$0xff] }
 0xb6b   :  { %v1095_v43 = vmul.f32 0.5, %v1094_v41  ;;  %1215 = vmatpush.msrb.mxu1 %v1199_v2 }
 0xb6c   :  { %v1115_v45 = vmul.f32 %v1112_v42, %v1047_v39 }
 0xb6d   :  { %v1096_v46 = vsub.f32 1.5, %v1095_v43  ;;  %1216 = vmatpush.msrb.mxu1 %v1198_v14 }
 0xb6e   :  { %v2659_v47 = vpop.eup %2658  ;;  %v1118_v48 = vadd.f32 %v1115_v45, %v1048_v44 }
 0xb6f   :  { %v1097_v49 = vmul.f32 %v2657_v37, %v1096_v46  ;;  %v1103_v50 = vmul.f32 %v2659_v47, %v1081_v31  ;;  %vm1109_vm12 = vweird.f32 %v2659_v47  ;;  %1217 = vmatpush.msrb.mxu1 %v1197_v3 }
 0xb70   :  { %2528 = vmatmul.msk.f32.vlgmr.msrb.gmra.mxu0 %vm165_vm0, %v1118_v48  ;;  %vm1110_vm14 = vmor %vm1108_vm13, %vm1109_vm12 }
 0xb71   :  { %v1101_v51 = vsel %vm1100_vm10, %v2657_v37, %v1097_v49  ;;  %v1104_v53 = vmul.f32 %v2659_v47, %v1103_v50  ;;  %1218 = vmatpush.msrb.mxu1 %v1196_v4 }
 0xb72   :  { %v1113_v54 = vmul.f32 %v1101_v51, %v1062_v6  ;;  %v1194_v6 = vld [vmem:[%s3686_s1 + $0x2a8] sm:$0xff] }
 0xb73   :  { %v1105_v55 = vmul.f32 0.5, %v1104_v53  ;;  %1219 = vmatpush.msrb.mxu1 %v1195_v5  ;;  %v1200_v53 = vld [vmem:[%s3688_s2 + $0xc7] ss:$0 sm:$0xff] }
 0xb74   :  { %v1116_v56 = vmul.f32 %v1113_v54, %v1047_v39 }
 0xb75   :  { %v1106_v58 = vsub.f32 1.5, %v1105_v55  ;;  %1220 = vmatpush.msrb.mxu1 %v1194_v6 }
 0xb76   :  { %v1119_v59 = vadd.f32 %v1116_v56, %v1048_v44 }
 0xb77   :  { %v1107_v15 = vmul.f32 %v2659_v47, %v1106_v58  ;;  %1221 = vmatpush.msrb.mxu1 %v1193_v8 }
 0xb78   :  { %2529 = vmatmul.msk.f32.gmra.mxu0 %vm165_vm0, %v1119_v59 }
 0xb79   :  { %v1111_v60 = vsel %vm1110_vm14, %v2659_v47, %v1107_v15  ;;  %1222 = vmatpush.msrb.mxu1 %v1192_v9 }
 0xb7a   :  { %v1114_v63 = vmul.f32 %v1111_v60, %v3196_v17  ;;  %v1189_v17 = vld [vmem:[%s3686_s1 + $0x280] sm:$0xff] }
 0xb7b   :  { %1223 = vmatpush.msrb.mxu1 %v1191_v10 }
 0xb7c   :  { %v1117_v0 = vmul.f32 %v1114_v63, %v1047_v39 }
 0xb7d   :  { %1224 = vmatpush.msrb.mxu1 %v1190_v11 }
 0xb7e   :  { %v1120_v1 = vadd.f32 %v1117_v0, %v1048_v44 }
 0xb7f   :  { %1225 = vmatpush.msrb.mxu1 %v1189_v17 }
 0xb80   :  { %2530 = vmatmul.msk.f32.gmra.mxu0 %vm165_vm0, %v1120_v1 }
 0xb81   :  { %1226 = vmatpush.msrb.mxu1 %v1188_v13 }
 0xbed   :  { %v1152_v16 = vpop.f32.mrf.mxu0 }
 0xbee   :  { %v1153_v19 = vadd.f32 %v1152_v16, %v1125_v18  ;;  %v1326_v16 = vld [vmem:[%s3686_s1 + $0x338] sm:$0xff] }
 0xbf0   :  { %v1164_v20 = vmul.f32 0.044715, %v1153_v19  ;;  %v1161_v31 = vmul.f32 0.5, %v1153_v19 }
 0xbf2   :  { %v1167_v21 = vmul.f32 %v1164_v20, %v1153_v19  ;;  %v1327_v20 = vld [vmem:[%s3686_s1 + $0x340] sm:$0xff] }
 0xbf4   :  { %v1170_v22 = vmul.f32 %v1167_v21, %v1153_v19  ;;  %v1330_v21 = vld [vmem:[%s3686_s1 + $0x358] sm:$0xff] }
 0xbf5   :  { %v1155_v23 = vpop.f32.mrf.mxu0 }
 0xbf6   :  { %v1173_v7 = vadd.f32 %v1170_v22, %v1153_v19  ;;  %v1156_v12 = vadd.f32 %v1155_v23, %v1125_v18  ;;  %v1331_v19 = vld [vmem:[%s3686_s1 + $0x360] sm:$0xff] }
 0xbf8   :  { %v1176_v24 = vmul.f32 0.7978846, %v1173_v7  ;;  %v1165_v25 = vmul.f32 0.044715, %v1156_v12  ;;  %v1162_v44 = vmul.f32 0.5, %v1156_v12 }
 0xbfa   :  { %2660 = vtanh.f32 %v1176_v24  ;;  %v1168_v26 = vmul.f32 %v1165_v25, %v1156_v12 }
 0xbfc   :  { %v1171_v27 = vmul.f32 %v1168_v26, %v1156_v12 }
 0xbfd   :  { %v1158_v28 = vpop.f32.mrf.mxu0 }
 0xbfe   :  { %v1159_v32 = vadd.f32 %v1158_v28, %v1125_v18  ;;  %v1174_v33 = vadd.f32 %v1171_v27, %v1156_v12 }
 0xc00   :  { %v2661_v34 = vpop.eup %2660  ;;  %v1166_v35 = vmul.f32 0.044715, %v1159_v32  ;;  %v1177_v37 = vmul.f32 0.7978846, %v1174_v33  ;;  %v1163_v48 = vmul.f32 0.5, %v1159_v32 }
 0xc01   :  { %v1182_v36 = vadd.f32 1.0, %v2661_v34 }
 0xc02   :  { %2662 = vtanh.f32 %v1177_v37  ;;  %v1169_v38 = vmul.f32 %v1166_v35, %v1159_v32 }
 0xc03   :  { %v1185_v39 = vmul.f32 %v1182_v36, %v1161_v31 }
 0xc04   :  { %v1172_v40 = vmul.f32 %v1169_v38, %v1159_v32 }
 0xc05   :  { %2531 = vmatmul.msk.f32.vlgmr.msrb.gmra.mxu1 %vm1201_vm15, %v1185_v39 }
 0xc06   :  { %v1175_v41 = vadd.f32 %v1172_v40, %v1159_v32 }
 0xc08   :  { %v2663_v42 = vpop.eup %2662  ;;  %v1178_v43 = vmul.f32 0.7978846, %v1175_v41 }
 0xc09   :  { %v1183_v45 = vadd.f32 1.0, %v2663_v42 }
 0xc0a   :  { %2664 = vtanh.f32 %v1178_v43 }
 0xc0b   :  { %v1186_v46 = vmul.f32 %v1183_v45, %v1162_v44 }
 0xc0d   :  { %2532 = vmatmul.msk.f32.gmra.mxu1 %vm1201_vm15, %v1186_v46 }
 0xc10   :  { %v2665_v47 = vpop.eup %2664 }
 0xc11   :  { %v1184_v49 = vadd.f32 1.0, %v2665_v47 }
 0xc13   :  { %v1187_v50 = vmul.f32 %v1184_v49, %v1163_v48 }
 0xc15   :  { %2533 = vmatmul.msk.f32.gmra.mxu1 %vm1201_vm15, %v1187_v50  ;;  %v1240_v50 = vld [vmem:[%s3688_s2 + $0xd0] ss:$0 sm:$0xff] }
 0xc82   :  { %v1228_v51 = vpop.f32.mrf.mxu1 }
 0xc83   :  { %v1229_v63 = vadd.f32 %v1228_v51, %v1200_v53 }
 0xc85   :  { %v3282_v1 = vadd.f32 %v1229_v63, %v3170_v52 }
 0xc8a   :  { %v1231_v54 = vpop.f32.mrf.mxu1 }
 0xc8b   :  { %v1232_v55 = vadd.f32 %v1231_v54, %v1200_v53 }
 0xc8d   :  { %v3272_v56 = vadd.f32 %v1232_v55, %v3177_v57  ;;  %v1242_v57 = vsel %vm165_vm0, %v3282_v1, 0.0  ;;  %v1241_v55 = vld [vmem:[%s3688_s2 + $0xd1] ss:$0 sm:$0xff] }
 0xc8f   :  { %v1245_v58 = vsel %vm165_vm0, %v3272_v56, 0.0 }
 0xc90   :  { %1246 = vadd.xlane.f32.xlu2 %v1245_v58 }
 0xc92   :  { %v1234_v59 = vpop.f32.mrf.mxu1 }
 0xc93   :  { %v1235_v15 = vadd.f32 %v1234_v59, %v1200_v53 }
 0xc95   :  { %v3277_v60 = vadd.f32 %v1235_v15, %v3184_v61 }
 0xc97   :  { %v1248_v0 = vsel %vm165_vm0, %v3277_v60, 0.0 }
 0xc98   :  { %1249 = vadd.xlane.f32.xlu1 %v1248_v0 }
 0xca0   :  { %1243 = vadd.xlane.f32.xlu1 %v1242_v57 }
 0xd03   :  { %v1247_v2 = vpop.xlane.xlu2 %1246 }
 0xd04   :  { %v1252_v14 = vmul.f32 %v1247_v2, %v2931_v62 }
 0xd06   :  { %v1255_v3 = vsub.f32 %v3272_v56, %v1252_v14 }
 0xd08   :  { %v1258_v4 = vmul.f32 %v1255_v3, %v1255_v3 }
 0xd0a   :  { %v1263_v61 = vsel %vm165_vm0, %v1258_v4, 0.0  ;;  %v1315_v4 = vld [vmem:[%s3686_s1 + $0x2e0] sm:$0xff] }
 0xd0b   :  { %v1250_v5 = vpop.xlane.xlu1 %1249  ;;  %1264 = vadd.xlane.f32.xlu1 %v1263_v61  ;;  %v1316_v61 = vld [vmem:[%s3686_s1 + $0x2e8] sm:$0xff] }
 0xd0c   :  { %v1253_v6 = vmul.f32 %v1250_v5, %v2931_v62  ;;  %v1317_v5 = vld [vmem:[%s3686_s1 + $0x2f0] sm:$0xff] }
 0xd0e   :  { %v1256_v8 = vsub.f32 %v3277_v60, %v1253_v6  ;;  %v1318_v6 = vld [vmem:[%s3686_s1 + $0x2f8] sm:$0xff] }
 0xd10   :  { %v1259_v52 = vmul.f32 %v1256_v8, %v1256_v8 }
 0xd12   :  { %v1266_v9 = vsel %vm165_vm0, %v1259_v52, 0.0 }
 0xd13   :  { %1267 = vadd.xlane.f32.xlu2 %v1266_v9  ;;  %v1244_v10 = vpop.xlane.xlu1 %1243 }
 0xd14   :  { %v1251_v11 = vmul.f32 %v1244_v10, %v2931_v62 }
 0xd16   :  { %v3294_v17 = vsub.f32 %v3282_v1, %v1251_v11 }
 0xd18   :  { %v1257_v13 = vmul.f32 %v3294_v17, %v3294_v17 }
 0xd1a   :  { %v1260_v18 = vsel %vm165_vm0, %v1257_v13, 0.0 }
 0xd1b   :  { %1261 = vadd.xlane.f32.xlu2 %v1260_v18 }
 0xd24   :  { %1340 = vperm.xlu1 %2596, %v1326_v16  }
 0xd2c   :  { %1365 = vperm.xlu1 %2596, %v1331_v19  }
 0xd33   :  { %1345 = vperm.xlu2 %2597, %v1327_v20  }
 0xd3b   :  { %1360 = vperm.xlu2 %2597, %v1330_v21  }
 0xd7e   :  { %v1265_v22 = vpop.xlane.xlu1 %1264 }
 0xd7f   :  { %v1270_v23 = vmul.f32 %v1265_v22, %v2931_v62 }
 0xd81   :  { %v1273_v7 = vadd.f32 1e-06, %v1270_v23 }
 0xd83   :  { %2666 = vrsqrt.f32 %v1273_v7  ;;  %vm1291_vm6 = vweird.f32 %v1273_v7 }
 0xd86   :  { %v1268_v12 = vpop.xlane.xlu2 %1267 }
 0xd87   :  { %v1271_v24 = vmul.f32 %v1268_v12, %v2931_v62 }
 0xd89   :  { %v2667_v25 = vpop.eup %2666  ;;  %v1274_v26 = vadd.f32 1e-06, %v1271_v24 }
 0xd8a   :  { %v1286_v27 = vmul.f32 %v2667_v25, %v1273_v7  ;;  %vm1292_vm5 = vweird.f32 %v2667_v25 }
 0xd8b   :  { %2668 = vrsqrt.f32 %v1274_v26  ;;  %vm1293_vm8 = vmor %vm1291_vm6, %vm1292_vm5  ;;  %vm1301_vm9 = vweird.f32 %v1274_v26 }
 0xd8c   :  { %v1287_v28 = vmul.f32 %v2667_v25, %v1286_v27 }
 0xd8e   :  { %v1288_v32 = vmul.f32 0.5, %v1287_v28  ;;  %v1262_v33 = vpop.xlane.xlu2 %1261 }
 0xd8f   :  { %v1269_v34 = vmul.f32 %v1262_v33, %v2931_v62  ;;  %v1321_v33 = vld [vmem:[%s3686_s1 + $0x310] sm:$0xff] }
 0xd90   :  { %v1289_v31 = vsub.f32 1.5, %v1288_v32  ;;  %v1320_v32 = vld [vmem:[%s3686_s1 + $0x308] sm:$0xff] }
 0xd91   :  { %v2669_v35 = vpop.eup %2668  ;;  %v1272_v37 = vadd.f32 1e-06, %v1269_v34 }
 0xd92   :  { %v1296_v36 = vmul.f32 %v2669_v35, %v1274_v26  ;;  %v1290_v39 = vmul.f32 %v2667_v25, %v1289_v31  ;;  %vm1302_vm7 = vweird.f32 %v2669_v35 }
 0xd93   :  { %2670 = vrsqrt.f32 %v1272_v37  ;;  %vm1303_vm10 = vmor %vm1301_vm9, %vm1302_vm7  ;;  %vm1281_vm13 = vweird.f32 %v1272_v37 }
 0xd94   :  { %v1297_v38 = vmul.f32 %v2669_v35, %v1296_v36  ;;  %v1294_v43 = vsel %vm1293_vm8, %v2667_v25, %v1290_v39 }
 0xd95   :  { %v1306_v48 = vmul.f32 %v1294_v43, %v1255_v3  ;;  %v1314_v3 = vld [vmem:[%s3686_s1 + $0x2d8] sm:$0xff] }
 0xd96   :  { %v1298_v40 = vmul.f32 0.5, %v1297_v38  ;;  %v1341_v52 = vpop.permute.xlu1 %1340  ;;  %v1346_v11 = vpop.permute.xlu2 %1345 }
 0xd97   :  { %v1309_v59 = vmul.f32 %v1306_v48, %v1240_v50 }
 0xd98   :  { %v1299_v41 = vsub.f32 1.5, %v1298_v40 }
 0xd99   :  { %v2671_v42 = vpop.eup %2670  ;;  %v1312_v57 = vadd.f32 %v1309_v59, %v1241_v55 }
 0xd9a   :  { %v1300_v44 = vmul.f32 %v2669_v35, %v1299_v41  ;;  %v1276_v45 = vmul.f32 %v2671_v42, %v1272_v37  ;;  %vm1282_vm12 = vweird.f32 %v2671_v42 }
 0xd9b   :  { %vm1283_vm14 = vmor %vm1281_vm13, %vm1282_vm12 }
 0xd9c   :  { %v1304_v46 = vsel %vm1303_vm10, %v2669_v35, %v1300_v44  ;;  %v1277_v47 = vmul.f32 %v2671_v42, %v1276_v45  ;;  %v1322_v35 = vld [vmem:[%s3686_s1 + $0x318] sm:$0xff] }
 0xd9d   :  { %v1307_v49 = vmul.f32 %v1304_v46, %v1256_v8  ;;  %v1319_v8 = vld [vmem:[%s3686_s1 + $0x300] sm:$0xff] }
 0xd9e   :  { %v1278_v51 = vmul.f32 0.5, %v1277_v47  ;;  %v1361_v19 = vpop.permute.xlu2 %1360  ;;  %v1366_v22 = vpop.permute.xlu1 %1365  ;;  %v1332_v47 = vld [vmem:[%s3686_s1 + $0x368] sm:$0xff] }
 0xd9f   :  { %v1310_v53 = vmul.f32 %v1307_v49, %v1240_v50 }
 0xda0   :  { %v1279_v54 = vsub.f32 1.5, %v1278_v51  ;;  %v1328_v51 = vld [vmem:[%s3686_s1 + $0x348] sm:$0xff] }
 0xda1   :  { %v1313_v58 = vadd.f32 %v1310_v53, %v1241_v55  ;;  %v1334_v53 = vld [vmem:[%s3686_s1 + $0x378] sm:$0xff] }
 0xda2   :  { %v1280_v15 = vmul.f32 %v2671_v42, %v1279_v54  ;;  %v1329_v54 = vld [vmem:[%s3686_s1 + $0x350] sm:$0xff] }
 0xda3   :  { %2534 = vmatpush.xpose.msk.msrb.mxu2 %vm165_vm0, %v1313_v58 }
 0xda4   :  { %v1284_v63 = vsel %vm1283_vm14, %v2671_v42, %v1280_v15 }
 0xda5   :  { %v1305_v0 = vmul.f32 %v1284_v63, %v3294_v17 }
 0xda7   :  { %2535 = vmatpush.xpose.msk.msrb.mxu2 %vm165_vm0, %v1312_v57  ;;  %v1308_v2 = vmul.f32 %v1305_v0, %v1240_v50  ;;  %v1333_v50 = vld [vmem:[%s3686_s1 + $0x370] sm:$0xff] }
 0xda9   :  { %v1311_v14 = vadd.f32 %v1308_v2, %v1241_v55 }
 0xdab   :  { %2536 = vmatpush.xpose.msk.msrb.mxu2 %vm165_vm0, %v1311_v14 }
 0xdae   :  { %2537 = vmatmul.msk.f32.vlgmr.msrb.gmra.mxu2 %vm165_vm0, %v1314_v3 }
 0xdb6   :  { %2538 = vmatmul.msk.f32.gmra.mxu2 %vm165_vm0, %v1315_v4 }
 0xdbe   :  { %2539 = vmatmul.msk.f32.gmra.mxu2 %vm165_vm0, %v1316_v61 }
 0xdc6   :  { %2540 = vmatmul.msk.f32.gmra.mxu2 %vm165_vm0, %v1317_v5 }
 0xdce   :  { %2541 = vmatmul.msk.f32.gmra.mxu2 %vm165_vm0, %v1318_v6 }
 0xdd6   :  { %2542 = vmatmul.msk.f32.gmra.mxu2 %vm165_vm0, %v1319_v8 }
 0xdde   :  { %2543 = vmatmul.msk.f32.gmra.mxu2 %vm165_vm0, %v1320_v32 }
 0xde6   :  { %2544 = vmatmul.msk.f32.gmra.mxu2 %vm165_vm0, %v1321_v33 }
 0xdee   :  { %2545 = vmatmul.msk.f32.gmra.mxu2 %vm165_vm0, %v1322_v35  ;;  %v1323_v35 = vld [vmem:[%s3686_s1 + $0x320] sm:$0xff] }
 0xdf6   :  { %2546 = vmatmul.msk.f32.gmra.mxu2 %vm165_vm0, %v1323_v35 }
 0xe31   :  { %v1460_v9 = vpop.f32.mrf.mxu2 }
 0xe32   :  { %v1461_v10 = vadd.f32 %v1460_v9, %v1341_v52 }
 0xe34   :  { %1496 = vxpose.xlu2.b32.start.end [1/1] (short) (narrow) %v1461_v10, 24 }
 0xe39   :  { %v1463_v17 = vpop.f32.mrf.mxu2 }
 0xe3a   :  { %v1464_v13 = vadd.f32 %v1463_v17, %v1346_v11 }
 0xe3c   :  { %1631 = vxpose.xlu1.b32.start.end [1/1] (short) (narrow) %v1464_v13, 24 }
 0xe41   :  { %v3348_v18 = vpop.f32.mrf.mxu2 }
 0xe49   :  { %v3350_v16 = vpop.f32.mrf.mxu2 }
 0xe51   :  { %v1472_v20 = vpop.f32.mrf.mxu2 }
 0xe52   :  { %v1473_v21 = vadd.f32 %v1472_v20, %v1361_v19 }
 0xe54   :  { %1552 = vmatpush.msrb.mxu3 %v1473_v21 }
 0xe59   :  { %v1475_v23 = vpop.f32.mrf.mxu2 }
 0xe5a   :  { %v1476_v7 = vadd.f32 %v1475_v23, %v1366_v22 }
 0xe5c   :  { %1687 = vmatpush.msra.mxu1 %v1476_v7 }
 0xe61   :  { %v3407_v14 = vpop.f32.mrf.mxu2 }
 0xe69   :  { %v1481_v5 = vpop.f32.mrf.mxu2 }
 0xecd   :  { %v1512_v12 = vpop.trf.xlu2 }
 0xece   :  { %2549 = vmatmul.msk.f32.vlgmr.msrb.gmra.mxu3 %vm459_vm11, %v1512_v12 }
 0xed5   :  { %v1513_v24 = vpop.trf.xlu2 }
 0xed6   :  { %2550 = vmatmul.msk.f32.gmra.mxu3 %vm459_vm11, %v1513_v24 }
 0xedd   :  { %v1514_v25 = vpop.trf.xlu2 }
 0xede   :  { %2551 = vmatmul.msk.f32.gmra.mxu3 %vm459_vm11, %v1514_v25 }
 0xee0   :  { %v1647_v26 = vpop.trf.xlu1 }
 0xee1   :  { %2556 = vmatmul.msk.f32.vlgmr.msra.gmra.mxu1 %vm459_vm11, %v1647_v26 }
 0xee8   :  { %v1648_v27 = vpop.trf.xlu1 }
 0xee9   :  { %2557 = vmatmul.msk.f32.gmra.mxu1 %vm459_vm11, %v1648_v27 }
 0xef0   :  { %v1649_v28 = vpop.trf.xlu1 }
 0xef1   :  { %2558 = vmatmul.msk.f32.gmra.mxu1 %vm459_vm11, %v1649_v28 }
 0xf51   :  { %v1554_v34 = vpop.f32.mrf.mxu3 }
 0xf52   :  { %v1563_v37 = vsel %vm3006_vm1, %v1554_v34, -1e+30 }
 0xf53   :  { %v1566_v31 = vsel %vm498_vm2, %v1563_v37, -inf }
 0xf54   :  { %1567 = vmax.xlane.f32.xlu1 %v1566_v31 }
 0xf59   :  { %v1557_v36 = vpop.f32.mrf.mxu3 }
 0xf5a   :  { %v1564_v38 = vsel %vm2480_vm3, %v1557_v36, -1e+30 }
 0xf5b   :  { %v1569_v39 = vsel %vm498_vm2, %v1564_v38, -inf }
 0xf5c   :  { %1570 = vmax.xlane.f32.xlu0 %v1569_v39 }
 0xf5e   :  { %v1689_v40 = vpop.f32.mrf.mxu1 }
 0xf5f   :  { %v1698_v48 = vsel %vm3006_vm1, %v1689_v40, -1e+30 }
 0xf60   :  { %v1701_v49 = vsel %vm498_vm2, %v1698_v48, -inf }
 0xf61   :  { %v1560_v41 = vpop.f32.mrf.mxu3 }
 0xf62   :  { %v1565_v42 = vsel %vm2481_vm4, %v1560_v41, -1e+30 }
 0xf63   :  { %v1572_v43 = vsel %vm498_vm2, %v1565_v42, -inf }
 0xf64   :  { %1573 = vmax.xlane.f32.xlu2 %v1572_v43 }
 0xf66   :  { %v1692_v44 = vpop.f32.mrf.mxu1 }
 0xf67   :  { %v1699_v45 = vsel %vm2480_vm3, %v1692_v44, -1e+30 }
 0xf68   :  { %v1704_v46 = vsel %vm498_vm2, %v1699_v45, -inf }
 0xf69   :  { %1705 = vmax.xlane.f32.xlu0 %v1704_v46 }
 0xf6d   :  { %1370 = vperm.xlu1 %2596, %v1332_v47  }
 0xf6e   :  { %v1695_v55 = vpop.f32.mrf.mxu1 }
 0xf6f   :  { %v1700_v58 = vsel %vm2481_vm4, %v1695_v55, -1e+30 }
 0xf70   :  { %v1707_v59 = vsel %vm498_vm2, %v1700_v58, -inf }
 0xf71   :  { %1702 = vmax.xlane.f32.xlu0 %v1701_v49 }
 0xf7c   :  { %1375 = vperm.xlu2 %2597, %v1333_v50  }
 0xf85   :  { %1350 = vperm.xlu0 %2595, %v1328_v51   ;;  %v1484_v51 = vpop.f32.mrf.mxu2 }
 0xf8d   :  { %1380 = vperm.xlu0 %2595, %v1334_v53  }
 0xf95   :  { %1355 = vperm.xlu0 %2595, %v1329_v54  }
 0xfbf   :  { %1708 = vmax.xlane.f32.xlu0 %v1707_v59 }
 0xfc7   :  { %v1568_v15 = vpop.xlane.xlu1 %1567 }
 0xfc8   :  { %v1575_v63 = vsub.f32 %v1563_v37, %v1568_v15 }
 0xfca   :  { %v1578_v0 = vmul.f32 1.442695, %v1575_v63 }
 0xfcc   :  { %2672 = vpow2.f32 %v1578_v0 }
 0xfcf   :  { %v1571_v3 = vpop.xlane.xlu0 %1570 }
 0xfd0   :  { %v1576_v10 = vsub.f32 %v1564_v38, %v1571_v3 }
 0xfd2   :  { %v3403_v57 = vpop.eup %2672  ;;  %v1580_v17 = vmul.f32 1.442695, %v1576_v10 }
 0xfd3   :  { %v1584_v2 = vsel %vm498_vm2, %v3403_v57, 0.0 }
 0xfd4   :  { %1585 = vadd.xlane.f32.xlu0 %v1584_v2 }
 0xfd7   :  { %v1574_v4 = vpop.xlane.xlu2 %1573 }
 0xfd8   :  { %v1577_v23 = vsub.f32 %v1565_v42, %v1574_v4 }
 0xfda   :  { %v1582_v24 = vmul.f32 1.442695, %v1577_v23 }
 0xfdc   :  { %v1706_v61 = vpop.xlane.xlu0 %1705 }
 0xfdd   :  { %v1711_v19 = vsub.f32 %v1699_v45, %v1706_v61  ;;  %v1487_v61 = vpop.f32.mrf.mxu2 }
 0xfdf   :  { %v1376_v6 = vpop.permute.xlu2 %1375  ;;  %v1715_v21 = vmul.f32 1.442695, %v1711_v19  ;;  %v1371_v54 = vpop.permute.xlu1 %1370 }
 0xfe0   :  { %v1482_v8 = vadd.f32 %v1481_v5, %v1376_v6  ;;  %v1479_v4 = vadd.f32 %v3407_v14, %v1371_v54 }
 0xfe2   :  { %1957 = vmatpush.msrb.mxu1 %v1482_v8 }
 0xfe4   :  { %v1703_v52 = vpop.xlane.xlu0 %1702 }
 0xfe5   :  { %v1710_v9 = vsub.f32 %v1698_v48, %v1703_v52 }
 0xfe7   :  { %v1713_v11 = vmul.f32 1.442695, %v1710_v9 }
 0xfe9   :  { %2674 = vpow2.f32 %v1713_v11 }
 0xfea   :  { %2676 = vpow2.f32 %v1580_v17 }
 0xfeb   :  { %2678 = vpow2.f32 %v1715_v21 }
 0xfec   :  { %2680 = vpow2.f32 %v1582_v24 }
 0xfef   :  { %v3409_v13 = vpop.eup %2674 }
 0xff0   :  { %v1719_v20 = vsel %vm498_vm2, %v3409_v13, 0.0  ;;  %v2677_v22 = vpop.eup %2676 }
 0xff1   :  { %1720 = vadd.xlane.f32.xlu0 %v1719_v20  ;;  %v1587_v12 = vsel %vm498_vm2, %v2677_v22, 0.0  ;;  %v2679_v25 = vpop.eup %2678 }
 0xff2   :  { %v1722_v27 = vsel %vm498_vm2, %v2679_v25, 0.0  ;;  %v2681_v28 = vpop.eup %2680 }
 0xff3   :  { %v1590_v34 = vsel %vm498_vm2, %v2681_v28, 0.0 }
 0xff7   :  { %v1351_v7 = vpop.permute.xlu0 %1350 }
 0xff8   :  { %v1467_v43 = vadd.f32 %v3348_v18, %v1351_v7 }
 0xff9   :  { %1588 = vadd.xlane.f32.xlu0 %v1587_v12 }
 0xfff   :  { %v1381_v26 = vpop.permute.xlu0 %1380 }
0x1000   :  { %v1485_v18 = vadd.f32 %v1484_v51, %v1381_v26 }
0x1001   :  { %1723 = vadd.xlane.f32.xlu0 %v1722_v27 }
0x1007   :  { %v1356_v32 = vpop.permute.xlu0 %1355 }
0x1008   :  { %v1470_v33 = vadd.f32 %v3350_v16, %v1356_v32  ;;  %v1335_v16 = vld [vmem:[%s3686_s1 + $0x380] sm:$0xff] }
0x1009   :  { %1591 = vadd.xlane.f32.xlu0 %v1590_v34 }
0x100a   :  { %1901 = vxpose.xlu1.b32.start.end [1/1] (short) (narrow) %v1470_v33, 24  ;;  %v1324_v33 = vld [vmem:[%s3686_s1 + $0x328] sm:$0xff] }
0x100b   :  { %2547 = vmatmul.msk.f32.gmra.mxu2 %vm165_vm0, %v1324_v33 }
0x1032   :  { %v1709_v37 = vpop.xlane.xlu0 %1708 }
0x1033   :  { %v1712_v31 = vsub.f32 %v1700_v58, %v1709_v37 }
0x1035   :  { %v1717_v36 = vmul.f32 1.442695, %v1712_v31 }
0x1037   :  { %2682 = vpow2.f32 %v1717_v36 }
0x103d   :  { %v2683_v38 = vpop.eup %2682 }
0x103e   :  { %v1725_v39 = vsel %vm498_vm2, %v2683_v38, 0.0 }
0x103f   :  { %1726 = vadd.xlane.f32.xlu0 %v1725_v39 }
0x1047   :  { %v1586_v40 = vpop.xlane.xlu0 %1585 }
0x1053   :  { %1385 = vperm.xlu0 %2595, %v1335_v16  }
0x1064   :  { %v1721_v41 = vpop.xlane.xlu0 %1720 }
0x106c   :  { %v1589_v42 = vpop.xlane.xlu0 %1588 }
0x1074   :  { %v1724_v44 = vpop.xlane.xlu0 %1723 }
0x1075   :  { %1766 = vxpose.xlu0.b32.start.end [1/1] (short) (narrow) %v1467_v43, 24 }
0x107c   :  { %v1592_v45 = vpop.xlane.xlu0 %1591 }
0x107d   :  { %2684 = vrcp.f32 %v1592_v45 }
0x107e   :  { %2686 = vrcp.f32 %v1589_v42 }
0x107f   :  { %2688 = vrcp.f32 %v1586_v40 }
0x1083   :  { %v2685_v46 = vpop.eup %2684 }
0x1084   :  { %v1598_v47 = vmul.f32 %v2685_v46, %v2681_v28  ;;  %v2687_v48 = vpop.eup %2686 }
0x1085   :  { %v1597_v49 = vmul.f32 %v2687_v48, %v2677_v22  ;;  %v2689_v50 = vpop.eup %2688 }
0x1086   :  { %2552 = vmatpush.xpose.msk.msra.mxu0 %vm498_vm2, %v1598_v47  ;;  %v1596_v53 = vmul.f32 %v2689_v50, %v3403_v57  ;;  %v1336_v50 = vld [vmem:[%s3686_s1 + $0x388] sm:$0xff] }
0x108a   :  { %2553 = vmatpush.xpose.msk.msra.mxu0 %vm498_vm2, %v1597_v49 }
0x108e   :  { %2554 = vmatpush.xpose.msk.msra.mxu0 %vm498_vm2, %v1596_v53 }
0x1091   :  { %2555 = vmatmul.msk.f32.vlgmr.msra.gmra.mxu0 %vm498_vm2, %v1485_v18 }
0x10ae   :  { %v1917_v55 = vpop.trf.xlu1 }
0x10af   :  { %2570 = vmatmul.msk.f32.vlgmr.msrb.gmra.mxu1 %vm459_vm11, %v1917_v55 }
0x10b2   :  { %v1727_v58 = vpop.xlane.xlu0 %1726 }
0x10b3   :  { %2690 = vrcp.f32 %v1727_v58 }
0x10b4   :  { %2692 = vrcp.f32 %v1724_v44 }
0x10b5   :  { %2694 = vrcp.f32 %v1721_v41 }
0x10b6   :  { %v1918_v59 = vpop.trf.xlu1 }
0x10b7   :  { %2571 = vmatmul.msk.f32.gmra.mxu1 %vm459_vm11, %v1918_v59 }
0x10b9   :  { %v2691_v15 = vpop.eup %2690 }
0x10ba   :  { %v1733_v63 = vmul.f32 %v2691_v15, %v2683_v38  ;;  %v2693_v0 = vpop.eup %2692 }
0x10bb   :  { %v1732_v57 = vmul.f32 %v2693_v0, %v2679_v25  ;;  %v2695_v2 = vpop.eup %2694 }
0x10bc   :  { %2559 = vmatpush.xpose.msk.msrb.mxu0 %vm498_vm2, %v1733_v63  ;;  %v1731_v3 = vmul.f32 %v2695_v2, %v3409_v13  ;;  %v1325_v63 = vld [vmem:[%s3686_s1 + $0x330] sm:$0xff] }
0x10bd   :  { %2548 = vmatmul.msk.f32.gmra.mxu2 %vm165_vm0, %v1325_v63 }
0x10be   :  { %v1919_v8 = vpop.trf.xlu1 }
0x10bf   :  { %2572 = vmatmul.msk.f32.gmra.mxu1 %vm459_vm11, %v1919_v8  ;;  %v1337_v8 = vld [vmem:[%s3686_s1 + $0x390] sm:$0xff] }
0x10c0   :  { %2560 = vmatpush.xpose.msk.msrb.mxu0 %vm498_vm2, %v1732_v57 }
0x10c4   :  { %2561 = vmatpush.xpose.msk.msrb.mxu0 %vm498_vm2, %v1731_v3 }
0x10c5   :  { %v1386_v5 = vpop.permute.xlu0 %1385 }
0x10c6   :  { %v1488_v6 = vadd.f32 %v1487_v61, %v1386_v5 }
0x10c8   :  { %1822 = vmatpush.msra.mxu0 %v1479_v4 }
0x10c9   :  { %2562 = vmatmul.msk.f32.vlgmr.msrb.gmra.mxu0 %vm498_vm2, %v1488_v6 }
0x110e   :  { %v1628_v13 = vpop.f32.mrf.mxu0 }
0x1119   :  { %v1782_v52 = vpop.trf.xlu0 }
0x111a   :  { %2563 = vmatmul.msk.f32.vlgmr.msra.gmra.mxu0 %vm459_vm11, %v1782_v52 }
0x1121   :  { %v1783_v9 = vpop.trf.xlu0 }
0x1122   :  { %2564 = vmatmul.msk.f32.gmra.mxu0 %vm459_vm11, %v1783_v9 }
0x1129   :  { %v1784_v20 = vpop.trf.xlu0 }
0x112a   :  { %2565 = vmatmul.msk.f32.gmra.mxu0 %vm459_vm11, %v1784_v20 }
0x112c   :  { %v1959_v10 = vpop.f32.mrf.mxu1 }
0x112d   :  { %v1968_v28 = vsel %vm3006_vm1, %v1959_v10, -1e+30 }
0x112e   :  { %v1971_v32 = vsel %vm498_vm2, %v1968_v28, -inf }
0x1134   :  { %v1962_v11 = vpop.f32.mrf.mxu1 }
0x1135   :  { %v1969_v14 = vsel %vm2480_vm3, %v1962_v11, -1e+30 }
0x1136   :  { %v1974_v17 = vsel %vm498_vm2, %v1969_v14, -inf }
0x1137   :  { %1975 = vmax.xlane.f32.xlu1 %v1974_v17 }
0x113c   :  { %v1965_v7 = vpop.f32.mrf.mxu1 }
0x113d   :  { %v1970_v12 = vsel %vm2481_vm4, %v1965_v7, -1e+30 }
0x113e   :  { %v1977_v25 = vsel %vm498_vm2, %v1970_v12, -inf }
0x1146   :  { %v1763_v19 = vpop.f32.mrf.mxu0 }
0x1197   :  { %v1824_v21 = vpop.f32.mrf.mxu0 }
0x1198   :  { %v1833_v22 = vsel %vm3006_vm1, %v1824_v21, -1e+30 }
0x1199   :  { %v1836_v23 = vsel %vm498_vm2, %v1833_v22, -inf }
0x119a   :  { %1837 = vmax.xlane.f32.xlu2 %v1836_v23 }
0x119f   :  { %v1827_v24 = vpop.f32.mrf.mxu0 }
0x11a0   :  { %v1834_v26 = vsel %vm2480_vm3, %v1827_v24, -1e+30 }
0x11a1   :  { %v1839_v27 = vsel %vm498_vm2, %v1834_v26, -inf }
0x11a2   :  { %1840 = vmax.xlane.f32.xlu0 %v1839_v27  ;;  %1978 = vmax.xlane.f32.xlu2 %v1977_v25 }
0x11a7   :  { %v1830_v47 = vpop.f32.mrf.mxu0 }
0x11a8   :  { %v1835_v48 = vsel %vm2481_vm4, %v1830_v47, -1e+30 }
0x11a9   :  { %v1842_v49 = vsel %vm498_vm2, %v1835_v48, -inf }
0x11aa   :  { %1972 = vmax.xlane.f32.xlu2 %v1971_v32  ;;  %v1976_v35 = vpop.xlane.xlu1 %1975 }
0x11ab   :  { %v1981_v36 = vsub.f32 %v1969_v14, %v1976_v35  ;;  %v2038_v35 = vld [vmem:[%s3686_s1 + $0x3a8] sm:$0xff] }
0x11ad   :  { %v1985_v30 = vmul.f32 1.442695, %v1981_v36 }
0x11cb   :  { %2040 = vxpose.xlu0.b32.start [1/4] (short) (narrow) %v1628_v13, 24 }
0x11d3   :  { %2041 = vxpose.xlu0.b32.cont [2/4] (short) (narrow) %v1763_v19, 24 }
0x120d   :  { %v1838_v34 = vpop.xlane.xlu2 %1837 }
0x120e   :  { %v1845_v51 = vsub.f32 %v1833_v22, %v1838_v34  ;;  %v1490_v22 = vpop.f32.mrf.mxu2  ;;  %v2039_v34 = vld [vmem:[%s3686_s1 + $0x3b0] sm:$0xff] }
0x1210   :  { %v1848_v53 = vmul.f32 1.442695, %v1845_v51 }
0x1215   :  { %v1979_v37 = vpop.xlane.xlu2 %1978  ;;  %v1841_v18 = vpop.xlane.xlu0 %1840 }
0x1216   :  { %v1982_v31 = vsub.f32 %v1970_v12, %v1979_v37  ;;  %v1846_v54 = vsub.f32 %v1834_v26, %v1841_v18  ;;  %v1493_v27 = vpop.f32.mrf.mxu2  ;;  %v2037_v37 = vld [vmem:[%s3686_s1 + $0x3a0] sm:$0xff] }
0x1218   :  { %v1987_v38 = vmul.f32 1.442695, %v1982_v31  ;;  %v1850_v55 = vmul.f32 1.442695, %v1846_v54  ;;  %v2036_v31 = vld [vmem:[%s3686_s1 + $0x398] sm:$0xff] }
0x121a   :  { %2696 = vpow2.f32 %v1987_v38 }
0x121b   :  { %2698 = vpow2.f32 %v1985_v30 }
0x121d   :  { %v1973_v39 = vpop.xlane.xlu2 %1972 }
0x121e   :  { %v1980_v40 = vsub.f32 %v1968_v28, %v1973_v39 }
0x1220   :  { %v3462_v16 = vpop.eup %2696  ;;  %v1983_v42 = vmul.f32 1.442695, %v1980_v40 }
0x1221   :  { %v1995_v41 = vsel %vm498_vm2, %v3462_v16, 0.0  ;;  %v3466_v43 = vpop.eup %2698 }
0x1222   :  { %1996 = vadd.xlane.f32.xlu2 %v1995_v41  ;;  %2700 = vpow2.f32 %v1983_v42  ;;  %v1992_v44 = vsel %vm498_vm2, %v3466_v43, 0.0  ;;  %v2110_v41 = vld [vmem:[%s3688_s2 + $0xd2] ss:$0 sm:$0xff] }
0x1223   :  { %2702 = vpow2.f32 %v1848_v53 }
0x1224   :  { %2704 = vpow2.f32 %v1850_v55 }
0x1228   :  { %v3470_v45 = vpop.eup %2700 }
0x1229   :  { %v1989_v46 = vsel %vm498_vm2, %v3470_v45, 0.0  ;;  %v2703_v58 = vpop.eup %2702 }
0x122a   :  { %1993 = vadd.xlane.f32.xlu2 %v1992_v44  ;;  %v1854_v59 = vsel %vm498_vm2, %v2703_v58, 0.0  ;;  %v2705_v29 = vpop.eup %2704 }
0x122b   :  { %v1857_v15 = vsel %vm498_vm2, %v2705_v29, 0.0 }
0x1232   :  { %1990 = vadd.xlane.f32.xlu2 %v1989_v46 }
0x123a   :  { %1843 = vmax.xlane.f32.xlu2 %v1842_v49 }
0x1252   :  { %1390 = vperm.xlu2 %2597, %v1336_v50  }
0x127b   :  { %1855 = vadd.xlane.f32.xlu2 %v1854_v59 }
0x1283   :  { %1858 = vadd.xlane.f32.xlu2 %v1857_v15 }
0x1295   :  { %v1997_v0 = vpop.xlane.xlu2 %1996 }
0x129d   :  { %v1994_v57 = vpop.xlane.xlu2 %1993 }
0x12a5   :  { %v1991_v2 = vpop.xlane.xlu2 %1990 }
0x12ad   :  { %v1844_v3 = vpop.xlane.xlu2 %1843 }
0x12ae   :  { %v1847_v4 = vsub.f32 %v1835_v48, %v1844_v3 }
0x12b0   :  { %v1852_v61 = vmul.f32 1.442695, %v1847_v4  ;;  %v2191_v4 = vld [vmem:[%s3688_s2 + $0x70] sm:$0xff] }
0x12b1   :  { %2214 = vmatpush.msrb.mxu0 %v2191_v4 }
0x12b2   :  { %2706 = vpow2.f32 %v1852_v61  ;;  %v2190_v61 = vld [vmem:[%s3688_s2 + $0x60] sm:$0xff] }
0x12b3   :  { %2215 = vmatpush.msrb.mxu0 %v2190_v61 }
0x12b5   :  { %v1391_v52 = vpop.permute.xlu2 %1390 }
0x12b6   :  { %v1491_v24 = vadd.f32 %v1490_v22, %v1391_v52 }
0x12b8   :  { %v2707_v5 = vpop.eup %2706 }
0x12b9   :  { %v1860_v6 = vsel %vm498_vm2, %v2707_v5, 0.0 }
0x12ba   :  { %1861 = vadd.xlane.f32.xlu2 %v1860_v6  ;;  %v2188_v6 = vld [vmem:[%s3688_s2 + $0x40] sm:$0xff] }
0x12d2   :  { %1395 = vperm.xlu2 %2597, %v1337_v8  }
0x12ee   :  { %v1856_v9 = vpop.xlane.xlu2 %1855 }
0x12f6   :  { %v1859_v10 = vpop.xlane.xlu2 %1858 }
0x132d   :  { %v1862_v11 = vpop.xlane.xlu2 %1861 }
0x132e   :  { %2708 = vrcp.f32 %v1862_v11 }
0x132f   :  { %2710 = vrcp.f32 %v1859_v10 }
0x1330   :  { %2712 = vrcp.f32 %v1856_v9 }
0x1331   :  { %2714 = vrcp.f32 %v1997_v0 }
0x1332   :  { %2716 = vrcp.f32 %v1994_v57 }
0x1333   :  { %2718 = vrcp.f32 %v1991_v2 }
0x1334   :  { %v2709_v14 = vpop.eup %2708 }
0x1335   :  { %v1868_v17 = vmul.f32 %v2709_v14, %v2707_v5  ;;  %v2711_v13 = vpop.eup %2710  ;;  %v1396_v28 = vpop.permute.xlu2 %1395  ;;  %v2189_v5 = vld [vmem:[%s3688_s2 + $0x50] sm:$0xff] }
0x1336   :  { %v1867_v19 = vmul.f32 %v2711_v13, %v2705_v29  ;;  %v2713_v20 = vpop.eup %2712  ;;  %v1494_v33 = vadd.f32 %v1493_v27, %v1396_v28  ;;  %2216 = vmatpush.msrb.mxu0 %v2189_v5 }
0x1337   :  { %2566 = vmatpush.xpose.msk.msra.mxu3 %vm498_vm2, %v1868_v17  ;;  %v2715_v21 = vpop.eup %2714  ;;  %v1866_v23 = vmul.f32 %v2713_v20, %v2703_v58 }
0x1338   :  { %v2003_v7 = vmul.f32 %v2715_v21, %v3462_v16  ;;  %v2717_v12 = vpop.eup %2716  ;;  %2217 = vmatpush.msrb.mxu0 %v2188_v6 }
0x1339   :  { %v2002_v25 = vmul.f32 %v2717_v12, %v3466_v43  ;;  %v2719_v26 = vpop.eup %2718 }
0x133a   :  { %v2001_v32 = vmul.f32 %v2719_v26, %v3470_v45  ;;  %v2114_v26 = vld [vmem:[%s3688_s2 + $0xd3] ss:$0 sm:$0xff] }
0x133b   :  { %2567 = vmatpush.xpose.msk.msra.mxu3 %vm498_vm2, %v1867_v19 }
0x133f   :  { %2568 = vmatpush.xpose.msk.msra.mxu3 %vm498_vm2, %v1866_v23 }
0x1342   :  { %2569 = vmatmul.msk.f32.vlgmr.msra.gmra.mxu3 %vm498_vm2, %v1491_v24 }
0x1343   :  { %2573 = vmatpush.xpose.msk.msrb.mxu3 %vm498_vm2, %v2003_v7 }
0x1347   :  { %2574 = vmatpush.xpose.msk.msrb.mxu3 %vm498_vm2, %v2002_v25 }
0x134b   :  { %2575 = vmatpush.xpose.msk.msrb.mxu3 %vm498_vm2, %v2001_v32 }
0x134e   :  { %2576 = vmatmul.msk.f32.vlgmr.msrb.gmra.mxu3 %vm498_vm2, %v1494_v33 }
0x134f   :  { %2093 = vmatpush.msra.mxu3 %v2039_v34  ;;  %v2115_v34 = vld [vmem:[%s3688_s2 + $0xd4] ss:$0 sm:$0xff] }
0x1351   :  { %2094 = vmatpush.msra.mxu3 %v2038_v35 }
0x1353   :  { %2095 = vmatpush.msra.mxu3 %v2037_v37 }
0x1355   :  { %2096 = vmatpush.msra.mxu3 %v2036_v31 }
0x13c5   :  { %v1898_v36 = vpop.f32.mrf.mxu3 }
0x13c6   :  { %2042 = vxpose.xlu0.b32.cont [3/4] (short) (narrow) %v1898_v36, 24 }
0x13d1   :  { %v2033_v38 = vpop.f32.mrf.mxu3 }
0x13d2   :  { %2043 = vxpose.xlu0.b32.end [4/4] (short) (narrow) %v2033_v38, 24 }
0x145e   :  { %v2056_v30 = vpop.trf.xlu0 }
0x145f   :  { %2577 = vmatmul.msk.f32.vlgmr.msra.gmra.mxu3 %vm165_vm0, %v2056_v30 }
0x1466   :  { %v2057_v39 = vpop.trf.xlu0 }
0x1467   :  { %2578 = vmatmul.msk.f32.gmra.mxu3 %vm165_vm0, %v2057_v39 }
0x146e   :  { %v2058_v16 = vpop.trf.xlu0 }
0x146f   :  { %2579 = vmatmul.msk.f32.gmra.mxu3 %vm165_vm0, %v2058_v16 }
0x14e2   :  { %v2098_v40 = vpop.f32.mrf.mxu3 }
0x14e3   :  { %v2107_v42 = vadd.f32 %v2098_v40, %v3282_v1 }
0x14e5   :  { %v2111_v43 = vadd.f32 %v2110_v41, %v2107_v42 }
0x14e7   :  { %v2116_v44 = vsel %vm165_vm0, %v2111_v43, 0.0 }
0x14e8   :  { %2117 = vadd.xlane.f32.xlu2 %v2116_v44 }
0x14ea   :  { %v2101_v45 = vpop.f32.mrf.mxu3 }
0x14eb   :  { %v2108_v46 = vadd.f32 %v2101_v45, %v3272_v56 }
0x14ed   :  { %v3522_v47 = vadd.f32 %v2110_v41, %v2108_v46 }
0x14ef   :  { %v2119_v48 = vsel %vm165_vm0, %v3522_v47, 0.0 }
0x14f0   :  { %2120 = vadd.xlane.f32.xlu1 %v2119_v48 }
0x14f2   :  { %v2104_v49 = vpop.f32.mrf.mxu3 }
0x14f3   :  { %v2109_v50 = vadd.f32 %v2104_v49, %v3277_v60 }
0x14f5   :  { %v3527_v51 = vadd.f32 %v2110_v41, %v2109_v50 }
0x14f7   :  { %v2122_v1 = vsel %vm165_vm0, %v3527_v51, 0.0 }
0x14f8   :  { %2123 = vadd.xlane.f32.xlu1 %v2122_v1  ;;  %v2266_v1 = vld [vmem:[%s3686_s1 + $0x410] sm:$0xff] }
0x14f9   :  { %2281 = vmatpush.msra.mxu1 %v2266_v1 }
0x155b   :  { %v2118_v53 = vpop.xlane.xlu2 %2117 }
0x155c   :  { %v2125_v18 = vmul.f32 %v2118_v53, %v2931_v62  ;;  %v2265_v53 = vld [vmem:[%s3686_s1 + $0x408] sm:$0xff] }
0x155d   :  { %2282 = vmatpush.msra.mxu1 %v2265_v53 }
0x155e   :  { %v2128_v54 = vsub.f32 %v2111_v43, %v2125_v18  ;;  %v2264_v18 = vld [vmem:[%s3686_s1 + $0x400] sm:$0xff] }
0x155f   :  { %2283 = vmatpush.msra.mxu1 %v2264_v18 }
0x1560   :  { %v2131_v56 = vmul.f32 %v2128_v54, %v2128_v54 }
0x1562   :  { %v2134_v55 = vsel %vm165_vm0, %v2131_v56, 0.0  ;;  %v2262_v56 = vld [vmem:[%s3686_s1 + $0x3f0] sm:$0xff] }
0x1563   :  { %v2121_v58 = vpop.xlane.xlu1 %2120  ;;  %2135 = vadd.xlane.f32.xlu1 %v2134_v55  ;;  %v2261_v55 = vld [vmem:[%s3686_s1 + $0x3e8] sm:$0xff] }
0x1564   :  { %v2126_v59 = vmul.f32 %v2121_v58, %v2931_v62  ;;  %v2260_v58 = vld [vmem:[%s3686_s1 + $0x3e0] sm:$0xff] }
0x1566   :  { %v2129_v29 = vsub.f32 %v3522_v47, %v2126_v59  ;;  %v2259_v59 = vld [vmem:[%s3686_s1 + $0x3d8] sm:$0xff] }
0x1568   :  { %v2132_v60 = vmul.f32 %v2129_v29, %v2129_v29 }
0x156a   :  { %v2137_v15 = vsel %vm165_vm0, %v2132_v60, 0.0  ;;  %v2257_v60 = vld [vmem:[%s3686_s1 + $0x3c8] sm:$0xff] }
0x156b   :  { %2138 = vadd.xlane.f32.xlu2 %v2137_v15  ;;  %v2124_v63 = vpop.xlane.xlu1 %2123  ;;  %v2256_v15 = vld [vmem:[%s3686_s1 + $0x3c0] sm:$0xff] }
0x156c   :  { %v2127_v0 = vmul.f32 %v2124_v63, %v2931_v62  ;;  %v2255_v63 = vld [vmem:[%s3686_s1 + $0x3b8] sm:$0xff] }
0x156e   :  { %v3538_v57 = vsub.f32 %v3527_v51, %v2127_v0  ;;  %v2192_v0 = vld [vmem:[%s3688_s2 + $0xd5] ss:$0 sm:$0xff] }
0x1570   :  { %v2133_v2 = vmul.f32 %v3538_v57, %v3538_v57 }
0x1572   :  { %v2140_v3 = vsel %vm165_vm0, %v2133_v2, 0.0 }
0x1573   :  { %2141 = vadd.xlane.f32.xlu1 %v2140_v3 }
0x15d6   :  { %v2136_v8 = vpop.xlane.xlu1 %2135 }
0x15d7   :  { %v2143_v52 = vmul.f32 %v2136_v8, %v2931_v62 }
0x15d9   :  { %v2146_v9 = vadd.f32 1e-06, %v2143_v52 }
0x15db   :  { %2720 = vrsqrt.f32 %v2146_v9  ;;  %vm2155_vm1 = vweird.f32 %v2146_v9 }
0x15de   :  { %v2139_v10 = vpop.xlane.xlu2 %2138 }
0x15df   :  { %v2144_v11 = vmul.f32 %v2139_v10, %v2931_v62 }
0x15e1   :  { %v2721_v14 = vpop.eup %2720  ;;  %v2147_v17 = vadd.f32 1e-06, %v2144_v11 }
0x15e2   :  { %v2150_v13 = vmul.f32 %v2721_v14, %v2146_v9  ;;  %vm2156_vm11 = vweird.f32 %v2721_v14 }
0x15e3   :  { %2722 = vrsqrt.f32 %v2147_v17  ;;  %vm2157_vm2 = vmor %vm2155_vm1, %vm2156_vm11  ;;  %vm2165_vm4 = vweird.f32 %v2147_v17 }
0x15e4   :  { %v2151_v19 = vmul.f32 %v2721_v14, %v2150_v13 }
0x15e6   :  { %v2152_v20 = vmul.f32 0.5, %v2151_v19  ;;  %v2142_v21 = vpop.xlane.xlu1 %2141 }
0x15e7   :  { %v2145_v22 = vmul.f32 %v2142_v21, %v2931_v62 }
0x15e8   :  { %v2153_v23 = vsub.f32 1.5, %v2152_v20 }
0x15e9   :  { %v2723_v7 = vpop.eup %2722  ;;  %v2148_v12 = vadd.f32 1e-06, %v2145_v22 }
0x15ea   :  { %v2154_v24 = vmul.f32 %v2721_v14, %v2153_v23  ;;  %v2160_v25 = vmul.f32 %v2723_v7, %v2147_v17  ;;  %vm2166_vm3 = vweird.f32 %v2723_v7 }
0x15eb   :  { %2724 = vrsqrt.f32 %v2148_v12  ;;  %vm2167_vm5 = vmor %vm2165_vm4, %vm2166_vm3  ;;  %vm2175_vm7 = vweird.f32 %v2148_v12 }
0x15ec   :  { %v2158_v27 = vsel %vm2157_vm2, %v2721_v14, %v2154_v24  ;;  %v2161_v28 = vmul.f32 %v2723_v7, %v2160_v25 }
0x15ed   :  { %v2179_v32 = vmul.f32 %v2158_v27, %v2128_v54  ;;  %v2263_v54 = vld [vmem:[%s3686_s1 + $0x3f8] sm:$0xff] }
0x15ee   :  { %v2162_v33 = vmul.f32 0.5, %v2161_v28  ;;  %2284 = vmatpush.msra.mxu1 %v2263_v54 }
0x15ef   :  { %v2182_v35 = vmul.f32 %v2179_v32, %v2114_v26 }
0x15f0   :  { %v2163_v37 = vsub.f32 1.5, %v2162_v33  ;;  %2285 = vmatpush.msra.mxu1 %v2262_v56 }
0x15f1   :  { %v2725_v31 = vpop.eup %2724  ;;  %v2185_v36 = vadd.f32 %v2182_v35, %v2115_v34 }
0x15f2   :  { %v2164_v38 = vmul.f32 %v2723_v7, %v2163_v37  ;;  %v2170_v30 = vmul.f32 %v2725_v31, %v2148_v12  ;;  %vm2176_vm6 = vweird.f32 %v2725_v31  ;;  %2286 = vmatpush.msra.mxu1 %v2261_v55 }
0x15f3   :  { %2580 = vmatmul.msk.f32.vlgmr.msrb.gmra.mxu0 %vm165_vm0, %v2185_v36  ;;  %vm2177_vm8 = vmor %vm2175_vm7, %vm2176_vm6  ;;  %vm2472_vm6 = vcmask 523264  }
0x15f4   :  { %v2168_v39 = vsel %vm2167_vm5, %v2723_v7, %v2164_v38  ;;  %v2171_v16 = vmul.f32 %v2725_v31, %v2170_v30  ;;  %2287 = vmatpush.msra.mxu1 %v2260_v58  ;;  %v2267_v38 = vld [vmem:[%s3688_s2 + $0xd6] ss:$0 sm:$0xff] }
0x15f5   :  { %v2180_v40 = vmul.f32 %v2168_v39, %v2129_v29  ;;  %v2258_v29 = vld [vmem:[%s3686_s1 + $0x3d0] sm:$0xff] }
0x15f6   :  { %v2172_v41 = vmul.f32 0.5, %v2171_v16  ;;  %2288 = vmatpush.msra.mxu1 %v2259_v59 }
0x15f7   :  { %v2183_v42 = vmul.f32 %v2180_v40, %v2114_v26 }
0x15f8   :  { %v2173_v43 = vsub.f32 1.5, %v2172_v41  ;;  %2289 = vmatpush.msra.mxu1 %v2258_v29 }
0x15f9   :  { %v2186_v44 = vadd.f32 %v2183_v42, %v2115_v34 }
0x15fa   :  { %v2174_v45 = vmul.f32 %v2725_v31, %v2173_v43  ;;  %2290 = vmatpush.msra.mxu1 %v2257_v60 }
0x15fb   :  { %2581 = vmatmul.msk.f32.gmra.mxu0 %vm165_vm0, %v2186_v44 }
0x15fc   :  { %v2178_v46 = vsel %vm2177_vm8, %v2725_v31, %v2174_v45  ;;  %2291 = vmatpush.msra.mxu1 %v2256_v15 }
0x15fd   :  { %v2181_v48 = vmul.f32 %v2178_v46, %v3538_v57 }
0x15fe   :  { %2292 = vmatpush.msra.mxu1 %v2255_v63 }
0x15ff   :  { %v2184_v49 = vmul.f32 %v2181_v48, %v2114_v26 }
0x1601   :  { %v2187_v50 = vadd.f32 %v2184_v49, %v2115_v34 }
0x1603   :  { %2582 = vmatmul.msk.f32.gmra.mxu0 %vm165_vm0, %v2187_v50 }
0x1670   :  { %v2219_v57 = vpop.f32.mrf.mxu0 }
0x1671   :  { %v2220_v2 = vadd.f32 %v2219_v57, %v2192_v0 }
0x1673   :  { %v2231_v3 = vmul.f32 0.044715, %v2220_v2  ;;  %v2228_v22 = vmul.f32 0.5, %v2220_v2 }
0x1675   :  { %v2234_v4 = vmul.f32 %v2231_v3, %v2220_v2 }
0x1677   :  { %v2237_v61 = vmul.f32 %v2234_v4, %v2220_v2 }
0x1678   :  { %v2222_v5 = vpop.f32.mrf.mxu0 }
0x1679   :  { %v2240_v6 = vadd.f32 %v2237_v61, %v2220_v2  ;;  %v2223_v8 = vadd.f32 %v2222_v5, %v2192_v0  ;;  %v2304_v5 = vld [vmem:[%s3688_s2 + $0xd7] ss:$0 sm:$0xff] }
0x167b   :  { %v2243_v52 = vmul.f32 0.7978846, %v2240_v6  ;;  %v2232_v9 = vmul.f32 0.044715, %v2223_v8  ;;  %v2229_v28 = vmul.f32 0.5, %v2223_v8 }
0x167d   :  { %2726 = vtanh.f32 %v2243_v52  ;;  %v2235_v10 = vmul.f32 %v2232_v9, %v2223_v8  ;;  %v2305_v9 = vld [vmem:[%s3688_s2 + $0xe0] ss:$0 sm:$0xff] }
0x167f   :  { %v2238_v11 = vmul.f32 %v2235_v10, %v2223_v8 }
0x1680   :  { %v2225_v14 = vpop.f32.mrf.mxu0 }
0x1681   :  { %v2226_v17 = vadd.f32 %v2225_v14, %v2192_v0  ;;  %v2241_v13 = vadd.f32 %v2238_v11, %v2223_v8 }
0x1683   :  { %v2727_v19 = vpop.eup %2726  ;;  %v2233_v20 = vmul.f32 0.044715, %v2226_v17  ;;  %v2244_v21 = vmul.f32 0.7978846, %v2241_v13  ;;  %v2230_v35 = vmul.f32 0.5, %v2226_v17 }
0x1684   :  { %v2249_v23 = vadd.f32 1.0, %v2727_v19 }
0x1685   :  { %2728 = vtanh.f32 %v2244_v21  ;;  %v2236_v7 = vmul.f32 %v2233_v20, %v2226_v17 }
0x1686   :  { %v2252_v12 = vmul.f32 %v2249_v23, %v2228_v22 }
0x1687   :  { %v2239_v24 = vmul.f32 %v2236_v7, %v2226_v17 }
0x1688   :  { %2583 = vmatmul.msk.f32.vlgmr.msra.gmra.mxu1 %vm1201_vm15, %v2252_v12 }
0x1689   :  { %v2242_v25 = vadd.f32 %v2239_v24, %v2226_v17 }
0x168b   :  { %v2729_v26 = vpop.eup %2728  ;;  %v2245_v27 = vmul.f32 0.7978846, %v2242_v25 }
0x168c   :  { %v2250_v32 = vadd.f32 1.0, %v2729_v26 }
0x168d   :  { %2730 = vtanh.f32 %v2245_v27 }
0x168e   :  { %v2253_v33 = vmul.f32 %v2250_v32, %v2229_v28 }
0x1690   :  { %2584 = vmatmul.msk.f32.gmra.mxu1 %vm1201_vm15, %v2253_v33 }
0x1693   :  { %v2731_v34 = vpop.eup %2730 }
0x1694   :  { %v2251_v37 = vadd.f32 1.0, %v2731_v34 }
0x1696   :  { %v2254_v31 = vmul.f32 %v2251_v37, %v2230_v35  ;;  %v2410_v35 = vld [vmem:[%s3688_s2 + $0xb0] sm:$0xff]  ;;  %v2411_v37 = vld [vmem:[%s3688_s2 + $0xb8] sm:$0xff] }
0x1697   :  { %2437 = vmatpush.msrb.mxu3 %v2410_v35  ;;  %2460 = vmatpush.msra.mxu0 %v2411_v37 }
0x1698   :  { %2585 = vmatmul.msk.f32.gmra.mxu1 %vm1201_vm15, %v2254_v31  ;;  %v2408_v31 = vld [vmem:[%s3688_s2 + $0xa0] sm:$0xff] }
0x1699   :  { %2438 = vmatpush.msrb.mxu3 %v2408_v31 }
0x1705   :  { %v2294_v36 = vpop.f32.mrf.mxu1 }
0x1706   :  { %v2409_v36 = vld [vmem:[%s3688_s2 + $0xa8] sm:$0xff] }
0x1707   :  { %2461 = vmatpush.msra.mxu0 %v2409_v36 }
0x170d   :  { %v2296_v30 = vpop.f32.mrf.mxu1 }
0x170e   :  { %v2297_v39 = vadd.f32 %v2296_v30, %v2267_v38  ;;  %v2407_v30 = vld [vmem:[%s3688_s2 + $0x98] sm:$0xff] }
0x170f   :  { %2462 = vmatpush.msra.mxu0 %v2407_v30 }
0x1710   :  { %v2302_v16 = vadd.f32 %v2297_v39, %v3522_v47  ;;  %v2404_v39 = vld [vmem:[%s3688_s2 + $0x80] sm:$0xff] }
0x1712   :  { %v2306_v40 = vsel %vm165_vm0, %v2302_v16, 0.0 }
0x1713   :  { %2307 = vadd.xlane.f32.xlu2 %v2306_v40 }
0x1715   :  { %v2299_v41 = vpop.f32.mrf.mxu1 }
0x1716   :  { %v2300_v42 = vadd.f32 %v2299_v41, %v2267_v38  ;;  %v2406_v38 = vld [vmem:[%s3688_s2 + $0x90] sm:$0xff] }
0x1717   :  { %2439 = vmatpush.msrb.mxu3 %v2406_v38 }
0x1718   :  { %v2303_v43 = vadd.f32 %v2300_v42, %v3527_v51 }
0x1719   :  { %2440 = vmatpush.msrb.mxu3 %v2404_v39 }
0x171a   :  { %v2309_v44 = vsel %vm165_vm0, %v2303_v43, 0.0 }
0x171b   :  { %2310 = vadd.xlane.f32.xlu1 %v2309_v44 }
0x1786   :  { %v2308_v45 = vpop.xlane.xlu2 %2307 }
0x1787   :  { %v2312_v46 = vmul.f32 %v2308_v45, %v2931_v62 }
0x1789   :  { %v2314_v48 = vsub.f32 %v2302_v16, %v2312_v46  ;;  %v2405_v16 = vld [vmem:[%s3688_s2 + $0x88] sm:$0xff] }
0x178a   :  { %2463 = vmatpush.msra.mxu0 %v2405_v16 }
0x178b   :  { %v2316_v49 = vmul.f32 %v2314_v48, %v2314_v48 }
0x178d   :  { %v2318_v50 = vsel %vm165_vm0, %v2316_v49, 0.0 }
0x178e   :  { %2319 = vadd.xlane.f32.xlu2 %v2318_v50  ;;  %v2311_v1 = vpop.xlane.xlu1 %2310 }
0x178f   :  { %v2313_v47 = vmul.f32 %v2311_v1, %v2931_v62 }
0x1791   :  { %v2315_v53 = vsub.f32 %v2303_v43, %v2313_v47 }
0x1793   :  { %v2317_v18 = vmul.f32 %v2315_v53, %v2315_v53 }
0x1795   :  { %v2321_v54 = vsel %vm165_vm0, %v2317_v18, 0.0 }
0x1796   :  { %2322 = vadd.xlane.f32.xlu1 %v2321_v54  ;;  %v2354_v54 = vld [vmem:[%s3688_s2 + $0xe1] ss:$0 sm:$0xff] }
0x1801   :  { %v2320_v51 = vpop.xlane.xlu2 %2319 }
0x1802   :  { %v2324_v56 = vmul.f32 %v2320_v51, %v2931_v62 }
0x1804   :  { %v2326_v55 = vadd.f32 1e-06, %v2324_v56 }
0x1806   :  { %2732 = vrsqrt.f32 %v2326_v55  ;;  %vm2334_vm9 = vweird.f32 %v2326_v55 }
0x1809   :  { %v2323_v58 = vpop.xlane.xlu1 %2322 }
0x180a   :  { %v2325_v59 = vmul.f32 %v2323_v58, %v2931_v62  ;;  %v2355_v58 = vld [vmem:[%s3688_s2 + $0xe2] ss:$0 sm:$0xff] }
0x180c   :  { %v2733_v29 = vpop.eup %2732  ;;  %v2327_v60 = vadd.f32 1e-06, %v2325_v59 }
0x180d   :  { %v2329_v15 = vmul.f32 %v2733_v29, %v2326_v55  ;;  %vm2335_vm15 = vweird.f32 %v2733_v29 }
0x180e   :  { %2734 = vrsqrt.f32 %v2327_v60  ;;  %vm2336_vm10 = vmor %vm2334_vm9, %vm2335_vm15  ;;  %vm2344_vm13 = vweird.f32 %v2327_v60 }
0x180f   :  { %v2330_v63 = vmul.f32 %v2733_v29, %v2329_v15 }
0x1811   :  { %v2331_v0 = vmul.f32 0.5, %v2330_v63 }
0x1813   :  { %v2332_v57 = vsub.f32 1.5, %v2331_v0 }
0x1814   :  { %v2735_v2 = vpop.eup %2734 }
0x1815   :  { %v2333_v3 = vmul.f32 %v2733_v29, %v2332_v57  ;;  %v2339_v4 = vmul.f32 %v2735_v2, %v2327_v60  ;;  %vm2345_vm12 = vweird.f32 %v2735_v2 }
0x1816   :  { %vm2346_vm14 = vmor %vm2344_vm13, %vm2345_vm12 }
0x1817   :  { %v2340_v61 = vmul.f32 %v2735_v2, %v2339_v4  ;;  %v2337_v6 = vsel %vm2336_vm10, %v2733_v29, %v2333_v3  ;;  %v2586_v3 = vld [vmem:[%s3688_s2 + $0xe3] ss:$8 sm:$0x3] }
0x1818   :  { %v2348_v8 = vmul.f32 %v2337_v6, %v2314_v48  ;;  %v2416_v4 = vperm.slane %v2586_v3, 1  ;;  %v2415_v6 = vperm.slane %v2586_v3, 0 }
0x1819   :  { %v2341_v52 = vmul.f32 0.5, %v2340_v61 }
0x181a   :  { %v2350_v10 = vmul.f32 %v2348_v8, %v2304_v5 }
0x181b   :  { %v2342_v11 = vsub.f32 1.5, %v2341_v52 }
0x181c   :  { %v2352_v14 = vadd.f32 %v2350_v10, %v2305_v9 }
0x181d   :  { %v2343_v17 = vmul.f32 %v2735_v2, %v2342_v11 }
0x181e   :  { %v2356_v13 = vsel %vm165_vm0, %v2352_v14, 0.0 }
0x181f   :  { %2357 = vadd.xlane.f32.xlu0 %v2356_v13  ;;  %v2347_v19 = vsel %vm2346_vm14, %v2735_v2, %v2343_v17 }
0x1820   :  { %v2349_v20 = vmul.f32 %v2347_v19, %v2315_v53 }
0x1822   :  { %v2351_v21 = vmul.f32 %v2349_v20, %v2304_v5 }
0x1824   :  { %v2353_v22 = vadd.f32 %v2351_v21, %v2305_v9 }
0x1826   :  { %v2359_v23 = vsel %vm165_vm0, %v2353_v22, 0.0 }
0x1827   :  { %2360 = vadd.xlane.f32.xlu2 %v2359_v23 }
0x1892   :  { %v2358_v7 = vpop.xlane.xlu0 %2357 }
0x1893   :  { %v2362_v12 = vmul.f32 %v2358_v7, %v2931_v62 }
0x1895   :  { %v2364_v24 = vsub.f32 %v2352_v14, %v2362_v12 }
0x1897   :  { %v2366_v25 = vmul.f32 %v2364_v24, %v2364_v24 }
0x1899   :  { %v2368_v26 = vsel %vm165_vm0, %v2366_v25, 0.0 }
0x189a   :  { %2369 = vadd.xlane.f32.xlu1 %v2368_v26  ;;  %v2361_v27 = vpop.xlane.xlu2 %2360 }
0x189b   :  { %v2363_v28 = vmul.f32 %v2361_v27, %v2931_v62 }
0x189d   :  { %v2365_v32 = vsub.f32 %v2353_v22, %v2363_v28 }
0x189f   :  { %v2367_v33 = vmul.f32 %v2365_v32, %v2365_v32 }
0x18a1   :  { %v2371_v34 = vsel %vm165_vm0, %v2367_v33, 0.0 }
0x18a2   :  { %2372 = vadd.xlane.f32.xlu2 %v2371_v34 }
0x190d   :  { %v2370_v40 = vpop.xlane.xlu1 %2369 }
0x190e   :  { %v2374_v41 = vmul.f32 %v2370_v40, %v2931_v62 }
0x1910   :  { %v2376_v42 = vadd.f32 1e-05, %v2374_v41 }
0x1912   :  { %2736 = vrsqrt.f32 %v2376_v42  ;;  %vm2384_vm1 = vweird.f32 %v2376_v42 }
0x1915   :  { %v2373_v43 = vpop.xlane.xlu2 %2372 }
0x1916   :  { %v2375_v44 = vmul.f32 %v2373_v43, %v2931_v62 }
0x1918   :  { %v2737_v45 = vpop.eup %2736  ;;  %v2377_v46 = vadd.f32 1e-05, %v2375_v44 }
0x1919   :  { %v2379_v48 = vmul.f32 %v2737_v45, %v2376_v42  ;;  %vm2385_vm11 = vweird.f32 %v2737_v45 }
0x191a   :  { %2738 = vrsqrt.f32 %v2377_v46  ;;  %vm2386_vm2 = vmor %vm2384_vm1, %vm2385_vm11  ;;  %vm2394_vm4 = vweird.f32 %v2377_v46 }
0x191b   :  { %v2380_v49 = vmul.f32 %v2737_v45, %v2379_v48 }
0x191d   :  { %v2381_v50 = vmul.f32 0.5, %v2380_v49 }
0x191f   :  { %v2382_v1 = vsub.f32 1.5, %v2381_v50 }
0x1920   :  { %v2739_v47 = vpop.eup %2738 }
0x1921   :  { %v2383_v53 = vmul.f32 %v2737_v45, %v2382_v1  ;;  %v2389_v18 = vmul.f32 %v2739_v47, %v2377_v46  ;;  %vm2395_vm3 = vweird.f32 %v2739_v47 }
0x1922   :  { %vm2396_vm5 = vmor %vm2394_vm4, %vm2395_vm3 }
0x1923   :  { %v2387_v51 = vsel %vm2386_vm2, %v2737_v45, %v2383_v53  ;;  %v2390_v56 = vmul.f32 %v2739_v47, %v2389_v18 }
0x1924   :  { %v2398_v62 = vmul.f32 %v2387_v51, %v2364_v24 }
0x1925   :  { %v2391_v55 = vmul.f32 0.5, %v2390_v56 }
0x1926   :  { %v2400_v59 = vmul.f32 %v2398_v62, %v2354_v54 }
0x1927   :  { %v2392_v29 = vsub.f32 1.5, %v2391_v55 }
0x1928   :  { %v2402_v60 = vadd.f32 %v2400_v59, %v2355_v58 }
0x1929   :  { %v2393_v15 = vmul.f32 %v2739_v47, %v2392_v29 }
0x192a   :  { %2587 = vmatmul.msk.f32.vlgmr.msrb.gmra.mxu3 %vm165_vm0, %v2402_v60  ;;  %2589 = vmatmul.msk.f32.vlgmr.msra.gmra.mxu0 %vm165_vm0, %v2402_v60 }
0x192b   :  { %v2397_v63 = vsel %vm2396_vm5, %v2739_v47, %v2393_v15 }
0x192c   :  { %v2399_v0 = vmul.f32 %v2397_v63, %v2365_v32 }
0x192e   :  { %v2401_v57 = vmul.f32 %v2399_v0, %v2354_v54 }
0x1930   :  { %v2403_v2 = vadd.f32 %v2401_v57, %v2355_v58 }
0x1932   :  { %2588 = vmatmul.msk.f32.gmra.mxu3 %vm165_vm0, %v2403_v2  ;;  %2590 = vmatmul.msk.f32.gmra.mxu0 %vm165_vm0, %v2403_v2 }
0x19a7   :  { %v2465_v61 = vpop.f32.mrf.mxu0 }
0x19a8   :  { %v2466_v5 = vadd.f32 %v2465_v61, %v2416_v4 }
0x19aa   :  { %2473 = vst.msk [vmem:[%s3689_s3 + $0x8] sm:$0xff] %vm2472_vm6, %v2466_v5 }
0x19ad   :  { %v2442_v8 = vpop.f32.mrf.mxu3 }
0x19ae   :  { %v2443_v52 = vadd.f32 %v2442_v8, %v2415_v6 }
0x19af   :  { %v2468_v9 = vpop.f32.mrf.mxu0 }
0x19b0   :  { %2471 = vst [vmem:[%s3689_s3] sm:$0xff] %v2443_v52  ;;  %v2469_v10 = vadd.f32 %v2468_v9, %v2416_v4 }
0x19b2   :  { %2475 = vst.msk [vmem:[%s3689_s3 + $0x18] sm:$0xff] %vm2472_vm6, %v2469_v10 }
0x19b5   :  { %v2445_v11 = vpop.f32.mrf.mxu3 }
0x19b6   :  { %v2446_v14 = vadd.f32 %v2445_v11, %v2415_v6 }
0x19b8   :  { %2474 = vst [vmem:[%s3689_s3 + $0x10] sm:$0xff] %v2446_v14 }

</bundles_post_ra>
